<compile_context>
chip_gen: v5e
topology: v5e:2x2
jax: 0.10.0
libtpu: 0.0.40
codegen_flags: <defaults>
</compile_context>

<pallas_src>
import functools

import numpy as np
import jax
import jax.numpy as jnp
from jax.experimental import pallas as pl
from jax.experimental.pallas import tpu as pltpu

BN_EPS = 1e-5
_PAD0 = 8   # image interior starts at row 8 of every padded buffer so all
            # bulk slab stores/loads are sublane-aligned.


# ----------------------------------------------------------------------------
# One-time host-side (numpy) weight packing -> no per-call XLA repacking.
# ----------------------------------------------------------------------------
def _np(a):
    return np.asarray(a, dtype=np.float32)


def _pack_conv1x1(k, cin, cout, width):
    """1x1 conv as a block-diagonal row matmul: (width*cin, width*cout)."""
    k2 = _np(k)[:, :, 0, 0]                                    # (cout, cin)
    m = np.zeros((width * cin, width * cout), np.float32)
    for w in range(width):
        m[w * cin:(w + 1) * cin, w * cout:(w + 1) * cout] = k2.T
    return m


def _pack_conv3x3(k, c, width):
    """3x3/pad-1 conv as 3 banded row matmuls (one per vertical tap dy).

    Row features are (image column j, channel); the matrix encodes the
    horizontal taps and the horizontal zero padding (out-of-image taps are
    simply absent), so the kernel never slices along the lane axis."""
    k_ = _np(k)                                                 # (cout, cin, 3, 3)
    m = np.zeros((3, width * c, width * c), np.float32)
    for dy in range(3):
        for jo in range(width):
            for dx in range(3):
                ji = jo + dx - 1
                if 0 <= ji < width:
                    m[dy, ji * c:(ji + 1) * c, jo * c:(jo + 1) * c] = \
                        k_[:, :, dy, dx].T
    return m


def _pack_convT4x4s2(k, cin, cout, width, group_stride):
    """ConvTranspose2d(4, 2, 1) via sub-pixel decomposition, as 3 banded row
    matmuls.  Output columns are [r=0 output row | r=1 output row] at a
    lane-aligned stride `group_stride`; inside a row-phase the order is
    (output column, channel), i.e. the horizontal phase interleave is already
    baked into the matrix.  Output row 2q+r uses input row q-1+dy with kernel
    row kh = r+3-2dy; output col 2p+s uses input col p-1+v with kw = s+3-2v."""
    k_ = _np(k)                                                 # (cin, cout, 4, 4)
    m = np.zeros((3, width * cin, 2 * group_stride), np.float32)
    for dy in range(3):
        for r in range(2):
            kh = r + 3 - 2 * dy
            if not 0 <= kh < 4:
                continue
            for ow in range(2 * width):
                s, p = ow % 2, ow // 2
                for v in range(3):
                    kw = s + 3 - 2 * v
                    j = p - 1 + v
                    if 0 <= kw < 4 and 0 <= j < width:
                        c0 = r * group_stride + ow * cout
                        m[dy, j * cin:(j + 1) * cin, c0:c0 + cout] = \
                            k_[:, :, kh, kw]
    return m


def _fold_mats(row_width, c):
    """0/1 matrices mapping row-feature columns <-> channels (for BatchNorm)."""
    f = np.zeros((row_width, c), np.float32)
    f[np.arange(row_width), np.arange(row_width) % c] = 1.0
    return f, np.ascontiguousarray(f.T)


def pack_params(p, embedding_dim, channels, output_channels, H, W):
    """Pack the PyTorch-layout Decoder parameters into the matrices the fused
    Pallas kernel consumes.  Runs once on the host, outside jit."""
    C, E, O = channels, embedding_dim, output_channels
    rw0 = W * C                  # row width of the HxW stage
    rw1 = 2 * W * C              # row width of one row-phase of the 2Hx2W stage
    assert rw0 % 128 == 0 and rw1 % 128 == 0 and H % 8 == 0

    f1, ft1 = _fold_mats(rw0, C)
    f2, ft2 = _fold_mats(2 * rw1, C)

    # b_conv0 / b_ct1 are intentionally not applied: the training-mode
    # (batch statistics) BatchNorm that immediately follows each of them
    # subtracts the batch mean, so a constant per-channel bias cancels exactly.
    gammas = np.stack([_np(p["g_bn0"]),
                       _np(p["r1_g1"]), _np(p["r1_g2"]),
                       _np(p["r2_g1"]), _np(p["r2_g2"]),
                       _np(p["g_bn1"])])
    betas = np.stack([_np(p["b_bn0"]),
                      _np(p["r1_b1"]), _np(p["r1_b2"]),
                      _np(p["r2_b1"]), _np(p["r2_b2"]),
                      _np(p["b_bn1"])])

    ct2_group = -(-(2 * (2 * W) * O) // 128) * 128      # lane-aligned phase stride
    ct2_b = np.zeros((1, 2 * ct2_group), np.float32)
    for r in range(2):
        ct2_b[0, r * ct2_group: r * ct2_group + 2 * (2 * W) * O] = \
            np.tile(_np(p["b_ct2"]), 2 * (2 * W))

    packed = {
        "w0": _pack_conv1x1(p["w_conv0"], E, C, W),
        "gammas": gammas, "betas": betas,
        "r1_w3": _pack_conv3x3(p["r1_w1"], C, W),
        "r1_w1": _pack_conv1x1(p["r1_w2"], C, C, W),
        "r2_w3": _pack_conv3x3(p["r2_w1"], C, W),
        "r2_w1": _pack_conv1x1(p["r2_w2"], C, C, W),
        "ct1_w": _pack_convT4x4s2(p["w_ct1"], C, C, W, rw1),
        "ct2_w": _pack_convT4x4s2(p["w_ct2"], C, O, 2 * W, ct2_group),
        "ct2_b": ct2_b,
        "f1": f1, "ft1": ft1, "f2": f2, "ft2": ft2,
    }
    return {k: jnp.asarray(v) for k, v in packed.items()}


# ----------------------------------------------------------------------------
# The single fused Pallas kernel (whole decoder forward).
# ----------------------------------------------------------------------------
def _decoder_kernel(x_ref, w0_ref, gam_ref, bet_ref,
                    r1w3_ref, r1w1_ref, r2w3_ref, r2w1_ref,
                    ct1w_ref, ct2w_ref, ct2b_ref,
                    f1_ref, ft1_ref, f2_ref, ft2_ref,
                    out_ref,
                    pad_r1_ref, pad_r2_ref, pad_ct1_ref, pad_ct2_ref,
                    *, N, H, W, C, O):
    f32 = jnp.float32
    rw0 = W * C
    rw1 = 2 * W * C
    cnt0 = float(N * H * W)
    cnt1 = float(N * (2 * H) * (2 * W))
    P = _PAD0

    f1, ft1 = f1_ref[...], ft1_ref[...]
    f2, ft2 = f2_ref[...], ft2_ref[...]

    def bn(h, k, f, ft, cnt):
        # Training-mode BatchNorm from batch statistics, fully in-kernel.
        # Two-pass variance; channel <-> row-feature folding via tiny constant
        # 0/1 matmuls (no lane/sublane-crossing reshapes); rsqrt -> EUP.
        gamma, beta = gam_ref[k:k + 1, :], bet_ref[k:k + 1, :]
        mean_c = jnp.dot(jnp.sum(h, axis=0, keepdims=True), f,
                         preferred_element_type=f32) * (1.0 / cnt)
        d = h - jnp.dot(mean_c, ft, preferred_element_type=f32)
        var_c = jnp.dot(jnp.sum(d * d, axis=0, keepdims=True), f,
                        preferred_element_type=f32) * (1.0 / cnt)
        scale_c = gamma * jax.lax.rsqrt(var_c + BN_EPS)
        scale_row = jnp.dot(scale_c, ft, preferred_element_type=f32)
        shift_row = jnp.dot(beta, ft, preferred_element_type=f32)
        return d * scale_row + shift_row

    def fill(pad_ref, act, rows, width):
        # interior starts at row P -> sublane-aligned slab store.
        pad_ref[:, P:P + rows, :] = act.reshape(N, rows, width)

    def conv(pad_ref, w_ref, rows, width):
        # One matmul per vertical tap; horizontal taps / zero padding / (for
        # the transposed convs) the horizontal phase interleave are baked into
        # the pre-packed banded weight matrices.
        acc = None
        for dy in range(3):
            lhs = pad_ref[:, P - 1 + dy:P - 1 + dy + rows, :]
            part = jnp.dot(lhs.reshape(N * rows, width), w_ref[dy],
                           preferred_element_type=f32)
            acc = part if acc is None else acc + part
        return acc

    # Zero the padded buffers once; only their interiors are written later,
    # so the zero borders provide every conv's spatial padding.
    for ref in (pad_r1_ref, pad_r2_ref, pad_ct1_ref, pad_ct2_ref):
        ref[...] = jnp.zeros(ref.shape, f32)

    # --- Conv2d(E, C, 1) + BatchNorm (bias cancels under batch-stats BN) ----
    a = bn(jnp.dot(x_ref[...], w0_ref[...], preferred_element_type=f32),
           0, f1, ft1, cnt0)

    # --- 2x Residual: x + BN(Conv1x1(ReLU(BN(Conv3x3(ReLU(x)))))) -----------
    def residual(a_in, pad_ref, w3_ref, w1_ref, k_bn):
        fill(pad_ref, jnp.maximum(a_in, 0.0), H, rw0)
        t = conv(pad_ref, w3_ref, H, rw0)
        t = jnp.maximum(bn(t, k_bn, f1, ft1, cnt0), 0.0)
        t = jnp.dot(t, w1_ref[...], preferred_element_type=f32)
        return a_in + bn(t, k_bn + 1, f1, ft1, cnt0)

    a = residual(a, pad_r1_ref, r1w3_ref, r1w1_ref, 1)
    a = residual(a, pad_r2_ref, r2w3_ref, r2w1_ref, 3)

    # --- ReLU -> ConvTranspose2d(C, C, 4, 2, 1) -> BatchNorm -> ReLU --------
    fill(pad_ct1_ref, jnp.maximum(a, 0.0), H, rw0)
    ct1 = conv(pad_ct1_ref, ct1w_ref, H, rw0)               # (N*H, 2*rw1)
    g1 = jnp.maximum(bn(ct1, 5, f2, ft2, cnt1), 0.0)
    g1 = g1.reshape(N, H, 2 * rw1)
    # Vertical sub-pixel interleave: write even/odd upsampled rows straight
    # into the next transposed conv's zero-bordered padded buffer (no XLA
    # phase-interleave transpose, no HBM round trip).
    for r in range(2):
        for q in range(H):
            pad_ct2_ref[:, P + 2 * q + r:P + 2 * q + r + 1, :] = \
                g1[:, q:q + 1, r * rw1:(r + 1) * rw1]

    # --- ConvTranspose2d(C, O, 4, 2, 1) + bias -------------------------------
    ct2 = conv(pad_ct2_ref, ct2w_ref, 2 * H, rw1) + ct2b_ref[...]
    group = ct2b_ref.shape[-1] // 2
    ct2 = ct2.reshape(N, 2 * H, 2 * group)
    for r in range(2):
        for q in range(2 * H):
            out_ref[:, 2 * q + r:2 * q + r + 1, :] = \
                ct2[:, q:q + 1, r * group:r * group + 4 * W * O]


# ----------------------------------------------------------------------------
# Public forward (NCHW in / NCHW out, like the PyTorch module).
# ----------------------------------------------------------------------------
def decoder_forward(x_nchw, pk, *, output_channels):
    N, E, H, W = x_nchw.shape
    C = pk["gammas"].shape[1]
    O = output_channels
    rw0, rw1 = W * C, 2 * W * C

    # NCHW -> (N*H, W*E) channel-minor row matrix (boundary layout glue only).
    x_rows = jnp.transpose(x_nchw, (0, 2, 3, 1)).reshape(N * H, W * E)
    x_rows = x_rows.astype(jnp.float32)

    kernel = functools.partial(_decoder_kernel, N=N, H=H, W=W, C=C, O=O)
    vmem = pl.BlockSpec(memory_space=pltpu.MemorySpace.VMEM)
    args = (x_rows, pk["w0"], pk["gammas"], pk["betas"],
            pk["r1_w3"], pk["r1_w1"], pk["r2_w3"], pk["r2_w1"],
            pk["ct1_w"], pk["ct2_w"], pk["ct2_b"],
            pk["f1"], pk["ft1"], pk["f2"], pk["ft2"])

    out = pl.pallas_call(
        kernel,
        out_shape=jax.ShapeDtypeStruct((N, 4 * H, 4 * W * O), jnp.float32),
        in_specs=[vmem] * len(args),
        out_specs=vmem,
        scratch_shapes=[
            pltpu.VMEM((N, H + 2 * _PAD0, rw0), jnp.float32),       # residual 1
            pltpu.VMEM((N, H + 2 * _PAD0, rw0), jnp.float32),       # residual 2
            pltpu.VMEM((N, H + 2 * _PAD0, rw0), jnp.float32),       # convT1 in
            pltpu.VMEM((N, 2 * H + 2 * _PAD0, rw1), jnp.float32),   # convT2 in
        ],
    )(*args)

    y = out.reshape(N, 4 * H, 4 * W, O)
    return jnp.transpose(y, (0, 3, 1, 2))        # channel-minor -> NCHW


# ----------------------------------------------------------------------------
# PyTorch-layout parameters.
# ----------------------------------------------------------------------------
def make_params(key, embedding_dim, channels, output_channels):
    ks = iter(jax.random.split(key, 32))

    def w(shape, scale=0.1):
        return scale * jax.random.normal(next(ks), shape, jnp.float32)

    C, E, O = channels, embedding_dim, output_channels
    p = {
        # b_conv0 / b_ct1 exist for parameter parity with the PyTorch module,
        # but are not applied: the training-mode BN that follows cancels them.
        "w_conv0": w((C, E, 1, 1)), "b_conv0": w((C,)),
        "g_bn0": jnp.ones((C,), jnp.float32) + w((C,), 0.01),
        "b_bn0": w((C,), 0.01),
        "w_ct1": w((C, C, 4, 4)), "b_ct1": w((C,)),
        "g_bn1": jnp.ones((C,), jnp.float32) + w((C,), 0.01),
        "b_bn1": w((C,), 0.01),
        "w_ct2": w((C, O, 4, 4)), "b_ct2": w((O,)),
    }
    for tag in ("r1", "r2"):
        p[f"{tag}_w1"] = w((C, C, 3, 3))
        p[f"{tag}_g1"] = jnp.ones((C,), jnp.float32) + w((C,), 0.01)
        p[f"{tag}_b1"] = w((C,), 0.01)
        p[f"{tag}_w2"] = w((C, C, 1, 1))
        p[f"{tag}_g2"] = jnp.ones((C,), jnp.float32) + w((C,), 0.01)
        p[f"{tag}_b2"] = w((C,), 0.01)
    return p


if __name__ == "__main__":
    embedding_dim, channels, output_channels = 8, 16, 3
    N, H, W = 2, 8, 8

    key = jax.random.PRNGKey(0)
    k_x, k_p = jax.random.split(key)
    x = jax.random.normal(k_x, (N, embedding_dim, H, W), jnp.float32)   # NCHW
    params = make_params(k_p, embedding_dim, channels, output_channels)

    # One-time host-side packing (hoisted out of the jitted forward).
    packed = pack_params(params, embedding_dim, channels, output_channels, H, W)

    fwd = jax.jit(functools.partial(decoder_forward,
                                    output_channels=output_channels))
    y = jax.block_until_ready(fwd(x, packed))

    assert y.shape == (N, output_channels, 4 * H, 4 * W), y.shape
    assert bool(jnp.all(jnp.isfinite(y)))
    print("KERNEL_OK")
</pallas_src>

<mosaic_0001>
module attributes {stable_mosaic.version = 11 : i64} {
  func.func @_decoder_kernel(%arg0: memref<16x64xf32, #tpu.memory_space<vmem>>, %arg1: memref<64x128xf32, #tpu.memory_space<vmem>>, %arg2: memref<6x16xf32, #tpu.memory_space<vmem>>, %arg3: memref<6x16xf32, #tpu.memory_space<vmem>>, %arg4: memref<3x128x128xf32, #tpu.memory_space<vmem>>, %arg5: memref<128x128xf32, #tpu.memory_space<vmem>>, %arg6: memref<3x128x128xf32, #tpu.memory_space<vmem>>, %arg7: memref<128x128xf32, #tpu.memory_space<vmem>>, %arg8: memref<3x128x512xf32, #tpu.memory_space<vmem>>, %arg9: memref<3x256x256xf32, #tpu.memory_space<vmem>>, %arg10: memref<1x256xf32, #tpu.memory_space<vmem>>, %arg11: memref<128x16xf32, #tpu.memory_space<vmem>>, %arg12: memref<16x128xf32, #tpu.memory_space<vmem>>, %arg13: memref<512x16xf32, #tpu.memory_space<vmem>>, %arg14: memref<16x512xf32, #tpu.memory_space<vmem>>, %arg15: memref<2x32x96xf32, #tpu.memory_space<vmem>>, %arg16: memref<2x24x128xf32, #tpu.memory_space<vmem>>, %arg17: memref<2x24x128xf32, #tpu.memory_space<vmem>>, %arg18: memref<2x24x128xf32, #tpu.memory_space<vmem>>, %arg19: memref<2x32x256xf32, #tpu.memory_space<vmem>>) attributes {dimension_semantics = [], scalar_prefetch = 0 : i64, scratch_operands = 4 : i64, tpu.core_type = #tpu.core_type<tc>} {
    %c0 = arith.constant 0 : index
    %c0_0 = arith.constant 0 : index
    %0 = vector.load %arg11[%c0, %c0_0] : memref<128x16xf32, #tpu.memory_space<vmem>>, vector<128x16xf32>
    %c0_1 = arith.constant 0 : index
    %c0_2 = arith.constant 0 : index
    %1 = vector.load %arg12[%c0_1, %c0_2] : memref<16x128xf32, #tpu.memory_space<vmem>>, vector<16x128xf32>
    %c0_3 = arith.constant 0 : index
    %c0_4 = arith.constant 0 : index
    %2 = vector.load %arg13[%c0_3, %c0_4] : memref<512x16xf32, #tpu.memory_space<vmem>>, vector<512x16xf32>
    %c0_5 = arith.constant 0 : index
    %c0_6 = arith.constant 0 : index
    %3 = vector.load %arg14[%c0_5, %c0_6] : memref<16x512xf32, #tpu.memory_space<vmem>>, vector<16x512xf32>
    %cst = arith.constant 0.000000e+00 : f32
    %4 = vector.broadcast %cst : f32 to vector<2x24x128xf32>
    %c0_7 = arith.constant 0 : index
    %c0_8 = arith.constant 0 : index
    %c0_9 = arith.constant 0 : index
    %5 = vector.load %arg16[%c0_7, %c0_8, %c0_9] : memref<2x24x128xf32, #tpu.memory_space<vmem>>, vector<2x24x128xf32>
    tpu.vector_store %arg16[%c0_7, %c0_8, %c0_9], %4 {strides = array<i32>} : memref<2x24x128xf32, #tpu.memory_space<vmem>>, vector<2x24x128xf32>,
    %cst_10 = arith.constant 0.000000e+00 : f32
    %6 = vector.broadcast %cst_10 : f32 to vector<2x24x128xf32>
    %c0_11 = arith.constant 0 : index
    %c0_12 = arith.constant 0 : index
    %c0_13 = arith.constant 0 : index
    %7 = vector.load %arg17[%c0_11, %c0_12, %c0_13] : memref<2x24x128xf32, #tpu.memory_space<vmem>>, vector<2x24x128xf32>
    tpu.vector_store %arg17[%c0_11, %c0_12, %c0_13], %6 {strides = array<i32>} : memref<2x24x128xf32, #tpu.memory_space<vmem>>, vector<2x24x128xf32>,
    %cst_14 = arith.constant 0.000000e+00 : f32
    %8 = vector.broadcast %cst_14 : f32 to vector<2x24x128xf32>
    %c0_15 = arith.constant 0 : index
    %c0_16 = arith.constant 0 : index
    %c0_17 = arith.constant 0 : index
    %9 = vector.load %arg18[%c0_15, %c0_16, %c0_17] : memref<2x24x128xf32, #tpu.memory_space<vmem>>, vector<2x24x128xf32>
    tpu.vector_store %arg18[%c0_15, %c0_16, %c0_17], %8 {strides = array<i32>} : memref<2x24x128xf32, #tpu.memory_space<vmem>>, vector<2x24x128xf32>,
    %cst_18 = arith.constant 0.000000e+00 : f32
    %10 = vector.broadcast %cst_18 : f32 to vector<2x32x256xf32>
    %c0_19 = arith.constant 0 : index
    %c0_20 = arith.constant 0 : index
    %c0_21 = arith.constant 0 : index
    %11 = vector.load %arg19[%c0_19, %c0_20, %c0_21] : memref<2x32x256xf32, #tpu.memory_space<vmem>>, vector<2x32x256xf32>
    tpu.vector_store %arg19[%c0_19, %c0_20, %c0_21], %10 {strides = array<i32>} : memref<2x32x256xf32, #tpu.memory_space<vmem>>, vector<2x32x256xf32>,
    %c0_22 = arith.constant 0 : index
    %c0_23 = arith.constant 0 : index
    %12 = vector.load %arg0[%c0_22, %c0_23] : memref<16x64xf32, #tpu.memory_space<vmem>>, vector<16x64xf32>
    %c0_24 = arith.constant 0 : index
    %c0_25 = arith.constant 0 : index
    %13 = vector.load %arg1[%c0_24, %c0_25] : memref<64x128xf32, #tpu.memory_space<vmem>>, vector<64x128xf32>
    %cst_26 = arith.constant dense<0.000000e+00> : vector<16x128xf32>
    %14 = tpu.matmul %12, %13, %cst_26 {dimension_numbers = #tpu.dot_dimension_numbers<[1], [0], [0], [1], [0, 0, 1, 1], [], []>} : vector<16x64xf32>, vector<64x128xf32>, vector<16x128xf32> -> vector<16x128xf32>
    %c0_27 = arith.constant 0 : index
    %c0_28 = arith.constant 0 : index
    %15 = vector.load %arg2[%c0_27, %c0_28] : memref<6x16xf32, #tpu.memory_space<vmem>>, vector<1x16xf32>
    %c0_29 = arith.constant 0 : index
    %c0_30 = arith.constant 0 : index
    %16 = vector.load %arg3[%c0_29, %c0_30] : memref<6x16xf32, #tpu.memory_space<vmem>>, vector<1x16xf32>
    %cst_31 = arith.constant dense<0.000000e+00> : vector<128xf32>
    %17 = vector.multi_reduction <add>, %14, %cst_31 [0] : vector<16x128xf32> to vector<128xf32>
    %18 = vector.shape_cast %17 : vector<128xf32> to vector<1x128xf32>
    %cst_32 = arith.constant dense<0.000000e+00> : vector<1x16xf32>
    %19 = tpu.matmul %18, %0, %cst_32 {dimension_numbers = #tpu.dot_dimension_numbers<[1], [0], [0], [1], [0, 0, 1, 1], [], []>} : vector<1x128xf32>, vector<128x16xf32>, vector<1x16xf32> -> vector<1x16xf32>
    %cst_33 = arith.constant 7.812500e-03 : f32
    %20 = vector.broadcast %cst_33 : f32 to vector<1x16xf32>
    %21 = arith.mulf %19, %20 : vector<1x16xf32>
    %cst_34 = arith.constant dense<0.000000e+00> : vector<1x128xf32>
    %22 = tpu.matmul %21, %1, %cst_34 {dimension_numbers = #tpu.dot_dimension_numbers<[1], [0], [0], [1], [0, 0, 1, 1], [], []>} : vector<1x16xf32>, vector<16x128xf32>, vector<1x128xf32> -> vector<1x128xf32>
    %23 = vector.broadcast %22 : vector<1x128xf32> to vector<16x128xf32>
    %24 = arith.subf %14, %23 : vector<16x128xf32>
    %25 = arith.mulf %24, %24 : vector<16x128xf32>
    %cst_35 = arith.constant dense<0.000000e+00> : vector<128xf32>
    %26 = vector.multi_reduction <add>, %25, %cst_35 [0] : vector<16x128xf32> to vector<128xf32>
    %27 = vector.shape_cast %26 : vector<128xf32> to vector<1x128xf32>
    %cst_36 = arith.constant dense<0.000000e+00> : vector<1x16xf32>
    %28 = tpu.matmul %27, %0, %cst_36 {dimension_numbers = #tpu.dot_dimension_numbers<[1], [0], [0], [1], [0, 0, 1, 1], [], []>} : vector<1x128xf32>, vector<128x16xf32>, vector<1x16xf32> -> vector<1x16xf32>
    %cst_37 = arith.constant 7.812500e-03 : f32
    %29 = vector.broadcast %cst_37 : f32 to vector<1x16xf32>
    %30 = arith.mulf %28, %29 : vector<1x16xf32>
    %cst_38 = arith.constant 9.99999974E-6 : f32
    %31 = vector.broadcast %cst_38 : f32 to vector<1x16xf32>
    %32 = arith.addf %30, %31 : vector<1x16xf32>
    %33 = math.rsqrt %32 : vector<1x16xf32>
    %34 = arith.mulf %15, %33 : vector<1x16xf32>
    %cst_39 = arith.constant dense<0.000000e+00> : vector<1x128xf32>
    %35 = tpu.matmul %34, %1, %cst_39 {dimension_numbers = #tpu.dot_dimension_numbers<[1], [0], [0], [1], [0, 0, 1, 1], [], []>} : vector<1x16xf32>, vector<16x128xf32>, vector<1x128xf32> -> vector<1x128xf32>
    %cst_40 = arith.constant dense<0.000000e+00> : vector<1x128xf32>
    %36 = tpu.matmul %16, %1, %cst_40 {dimension_numbers = #tpu.dot_dimension_numbers<[1], [0], [0], [1], [0, 0, 1, 1], [], []>} : vector<1x16xf32>, vector<16x128xf32>, vector<1x128xf32> -> vector<1x128xf32>
    %37 = vector.broadcast %35 : vector<1x128xf32> to vector<16x128xf32>
    %38 = arith.mulf %24, %37 : vector<16x128xf32>
    %39 = vector.broadcast %36 : vector<1x128xf32> to vector<16x128xf32>
    %40 = arith.addf %38, %39 : vector<16x128xf32>
    %cst_41 = arith.constant 0.000000e+00 : f32
    %41 = vector.broadcast %cst_41 : f32 to vector<16x128xf32>
    %42 = arith.maximumf %40, %41 : vector<16x128xf32>
    %43 = vector.shape_cast %42 : vector<16x128xf32> to vector<2x8x128xf32>
    %c0_42 = arith.constant 0 : index
    %c8 = arith.constant 8 : index
    %c0_43 = arith.constant 0 : index
    %44 = vector.load %arg16[%c0_42, %c8, %c0_43] : memref<2x24x128xf32, #tpu.memory_space<vmem>>, vector<2x8x128xf32>
    tpu.vector_store %arg16[%c0_42, %c8, %c0_43], %43 {strides = array<i32>} : memref<2x24x128xf32, #tpu.memory_space<vmem>>, vector<2x8x128xf32>,
    %c0_44 = arith.constant 0 : index
    %c7 = arith.constant 7 : index
    %c0_45 = arith.constant 0 : index
    %45 = vector.load %arg16[%c0_44, %c7, %c0_45] : memref<2x24x128xf32, #tpu.memory_space<vmem>>, vector<2x8x128xf32>
    %46 = vector.shape_cast %45 : vector<2x8x128xf32> to vector<16x128xf32>
    %c0_46 = arith.constant 0 : index
    %c0_47 = arith.constant 0 : index
    %c0_48 = arith.constant 0 : index
    %47 = vector.load %arg4[%c0_46, %c0_47, %c0_48] : memref<3x128x128xf32, #tpu.memory_space<vmem>>, vector<1x128x128xf32>
    %48 = vector.shape_cast %47 : vector<1x128x128xf32> to vector<128x128xf32>
    %cst_49 = arith.constant dense<0.000000e+00> : vector<16x128xf32>
    %49 = tpu.matmul %46, %48, %cst_49 {dimension_numbers = #tpu.dot_dimension_numbers<[1], [0], [0], [1], [0, 0, 1, 1], [], []>} : vector<16x128xf32>, vector<128x128xf32>, vector<16x128xf32> -> vector<16x128xf32>
    %c0_50 = arith.constant 0 : index
    %c8_51 = arith.constant 8 : index
    %c0_52 = arith.constant 0 : index
    %50 = vector.load %arg16[%c0_50, %c8_51, %c0_52] : memref<2x24x128xf32, #tpu.memory_space<vmem>>, vector<2x8x128xf32>
    %51 = vector.shape_cast %50 : vector<2x8x128xf32> to vector<16x128xf32>
    %c1 = arith.constant 1 : index
    %c0_53 = arith.constant 0 : index
    %c0_54 = arith.constant 0 : index
    %52 = vector.load %arg4[%c1, %c0_53, %c0_54] : memref<3x128x128xf32, #tpu.memory_space<vmem>>, vector<1x128x128xf32>
    %53 = vector.shape_cast %52 : vector<1x128x128xf32> to vector<128x128xf32>
    %cst_55 = arith.constant dense<0.000000e+00> : vector<16x128xf32>
    %54 = tpu.matmul %51, %53, %cst_55 {dimension_numbers = #tpu.dot_dimension_numbers<[1], [0], [0], [1], [0, 0, 1, 1], [], []>} : vector<16x128xf32>, vector<128x128xf32>, vector<16x128xf32> -> vector<16x128xf32>
    %55 = arith.addf %49, %54 : vector<16x128xf32>
    %c0_56 = arith.constant 0 : index
    %c9 = arith.constant 9 : index
    %c0_57 = arith.constant 0 : index
    %56 = vector.load %arg16[%c0_56, %c9, %c0_57] : memref<2x24x128xf32, #tpu.memory_space<vmem>>, vector<2x8x128xf32>
    %57 = vector.shape_cast %56 : vector<2x8x128xf32> to vector<16x128xf32>
    %c2 = arith.constant 2 : index
    %c0_58 = arith.constant 0 : index
    %c0_59 = arith.constant 0 : index
    %58 = vector.load %arg4[%c2, %c0_58, %c0_59] : memref<3x128x128xf32, #tpu.memory_space<vmem>>, vector<1x128x128xf32>
    %59 = vector.shape_cast %58 : vector<1x128x128xf32> to vector<128x128xf32>
    %cst_60 = arith.constant dense<0.000000e+00> : vector<16x128xf32>
    %60 = tpu.matmul %57, %59, %cst_60 {dimension_numbers = #tpu.dot_dimension_numbers<[1], [0], [0], [1], [0, 0, 1, 1], [], []>} : vector<16x128xf32>, vector<128x128xf32>, vector<16x128xf32> -> vector<16x128xf32>
    %61 = arith.addf %55, %60 : vector<16x128xf32>
    %c1_61 = arith.constant 1 : index
    %c0_62 = arith.constant 0 : index
    %62 = vector.load %arg2[%c1_61, %c0_62] : memref<6x16xf32, #tpu.memory_space<vmem>>, vector<1x16xf32>
    %c1_63 = arith.constant 1 : index
    %c0_64 = arith.constant 0 : index
    %63 = vector.load %arg3[%c1_63, %c0_64] : memref<6x16xf32, #tpu.memory_space<vmem>>, vector<1x16xf32>
    %cst_65 = arith.constant dense<0.000000e+00> : vector<128xf32>
    %64 = vector.multi_reduction <add>, %61, %cst_65 [0] : vector<16x128xf32> to vector<128xf32>
    %65 = vector.shape_cast %64 : vector<128xf32> to vector<1x128xf32>
    %cst_66 = arith.constant dense<0.000000e+00> : vector<1x16xf32>
    %66 = tpu.matmul %65, %0, %cst_66 {dimension_numbers = #tpu.dot_dimension_numbers<[1], [0], [0], [1], [0, 0, 1, 1], [], []>} : vector<1x128xf32>, vector<128x16xf32>, vector<1x16xf32> -> vector<1x16xf32>
    %cst_67 = arith.constant 7.812500e-03 : f32
    %67 = vector.broadcast %cst_67 : f32 to vector<1x16xf32>
    %68 = arith.mulf %66, %67 : vector<1x16xf32>
    %cst_68 = arith.constant dense<0.000000e+00> : vector<1x128xf32>
    %69 = tpu.matmul %68, %1, %cst_68 {dimension_numbers = #tpu.dot_dimension_numbers<[1], [0], [0], [1], [0, 0, 1, 1], [], []>} : vector<1x16xf32>, vector<16x128xf32>, vector<1x128xf32> -> vector<1x128xf32>
    %70 = vector.broadcast %69 : vector<1x128xf32> to vector<16x128xf32>
    %71 = arith.subf %61, %70 : vector<16x128xf32>
    %72 = arith.mulf %71, %71 : vector<16x128xf32>
    %cst_69 = arith.constant dense<0.000000e+00> : vector<128xf32>
    %73 = vector.multi_reduction <add>, %72, %cst_69 [0] : vector<16x128xf32> to vector<128xf32>
    %74 = vector.shape_cast %73 : vector<128xf32> to vector<1x128xf32>
    %cst_70 = arith.constant dense<0.000000e+00> : vector<1x16xf32>
    %75 = tpu.matmul %74, %0, %cst_70 {dimension_numbers = #tpu.dot_dimension_numbers<[1], [0], [0], [1], [0, 0, 1, 1], [], []>} : vector<1x128xf32>, vector<128x16xf32>, vector<1x16xf32> -> vector<1x16xf32>
    %cst_71 = arith.constant 7.812500e-03 : f32
    %76 = vector.broadcast %cst_71 : f32 to vector<1x16xf32>
    %77 = arith.mulf %75, %76 : vector<1x16xf32>
    %cst_72 = arith.constant 9.99999974E-6 : f32
    %78 = vector.broadcast %cst_72 : f32 to vector<1x16xf32>
    %79 = arith.addf %77, %78 : vector<1x16xf32>
    %80 = math.rsqrt %79 : vector<1x16xf32>
    %81 = arith.mulf %62, %80 : vector<1x16xf32>
    %cst_73 = arith.constant dense<0.000000e+00> : vector<1x128xf32>
    %82 = tpu.matmul %81, %1, %cst_73 {dimension_numbers = #tpu.dot_dimension_numbers<[1], [0], [0], [1], [0, 0, 1, 1], [], []>} : vector<1x16xf32>, vector<16x128xf32>, vector<1x128xf32> -> vector<1x128xf32>
    %cst_74 = arith.constant dense<0.000000e+00> : vector<1x128xf32>
    %83 = tpu.matmul %63, %1, %cst_74 {dimension_numbers = #tpu.dot_dimension_numbers<[1], [0], [0], [1], [0, 0, 1, 1], [], []>} : vector<1x16xf32>, vector<16x128xf32>, vector<1x128xf32> -> vector<1x128xf32>
    %84 = vector.broadcast %82 : vector<1x128xf32> to vector<16x128xf32>
    %85 = arith.mulf %71, %84 : vector<16x128xf32>
    %86 = vector.broadcast %83 : vector<1x128xf32> to vector<16x128xf32>
    %87 = arith.addf %85, %86 : vector<16x128xf32>
    %cst_75 = arith.constant 0.000000e+00 : f32
    %88 = vector.broadcast %cst_75 : f32 to vector<16x128xf32>
    %89 = arith.maximumf %87, %88 : vector<16x128xf32>
    %c0_76 = arith.constant 0 : index
    %c0_77 = arith.constant 0 : index
    %90 = vector.load %arg5[%c0_76, %c0_77] : memref<128x128xf32, #tpu.memory_space<vmem>>, vector<128x128xf32>
    %cst_78 = arith.constant dense<0.000000e+00> : vector<16x128xf32>
    %91 = tpu.matmul %89, %90, %cst_78 {dimension_numbers = #tpu.dot_dimension_numbers<[1], [0], [0], [1], [0, 0, 1, 1], [], []>} : vector<16x128xf32>, vector<128x128xf32>, vector<16x128xf32> -> vector<16x128xf32>
    %c2_79 = arith.constant 2 : index
    %c0_80 = arith.constant 0 : index
    %92 = vector.load %arg2[%c2_79, %c0_80] : memref<6x16xf32, #tpu.memory_space<vmem>>, vector<1x16xf32>
    %c2_81 = arith.constant 2 : index
    %c0_82 = arith.constant 0 : index
    %93 = vector.load %arg3[%c2_81, %c0_82] : memref<6x16xf32, #tpu.memory_space<vmem>>, vector<1x16xf32>
    %cst_83 = arith.constant dense<0.000000e+00> : vector<128xf32>
    %94 = vector.multi_reduction <add>, %91, %cst_83 [0] : vector<16x128xf32> to vector<128xf32>
    %95 = vector.shape_cast %94 : vector<128xf32> to vector<1x128xf32>
    %cst_84 = arith.constant dense<0.000000e+00> : vector<1x16xf32>
    %96 = tpu.matmul %95, %0, %cst_84 {dimension_numbers = #tpu.dot_dimension_numbers<[1], [0], [0], [1], [0, 0, 1, 1], [], []>} : vector<1x128xf32>, vector<128x16xf32>, vector<1x16xf32> -> vector<1x16xf32>
    %cst_85 = arith.constant 7.812500e-03 : f32
    %97 = vector.broadcast %cst_85 : f32 to vector<1x16xf32>
    %98 = arith.mulf %96, %97 : vector<1x16xf32>
    %cst_86 = arith.constant dense<0.000000e+00> : vector<1x128xf32>
    %99 = tpu.matmul %98, %1, %cst_86 {dimension_numbers = #tpu.dot_dimension_numbers<[1], [0], [0], [1], [0, 0, 1, 1], [], []>} : vector<1x16xf32>, vector<16x128xf32>, vector<1x128xf32> -> vector<1x128xf32>
    %100 = vector.broadcast %99 : vector<1x128xf32> to vector<16x128xf32>
    %101 = arith.subf %91, %100 : vector<16x128xf32>
    %102 = arith.mulf %101, %101 : vector<16x128xf32>
    %cst_87 = arith.constant dense<0.000000e+00> : vector<128xf32>
    %103 = vector.multi_reduction <add>, %102, %cst_87 [0] : vector<16x128xf32> to vector<128xf32>
    %104 = vector.shape_cast %103 : vector<128xf32> to vector<1x128xf32>
    %cst_88 = arith.constant dense<0.000000e+00> : vector<1x16xf32>
    %105 = tpu.matmul %104, %0, %cst_88 {dimension_numbers = #tpu.dot_dimension_numbers<[1], [0], [0], [1], [0, 0, 1, 1], [], []>} : vector<1x128xf32>, vector<128x16xf32>, vector<1x16xf32> -> vector<1x16xf32>
    %cst_89 = arith.constant 7.812500e-03 : f32
    %106 = vector.broadcast %cst_89 : f32 to vector<1x16xf32>
    %107 = arith.mulf %105, %106 : vector<1x16xf32>
    %cst_90 = arith.constant 9.99999974E-6 : f32
    %108 = vector.broadcast %cst_90 : f32 to vector<1x16xf32>
    %109 = arith.addf %107, %108 : vector<1x16xf32>
    %110 = math.rsqrt %109 : vector<1x16xf32>
    %111 = arith.mulf %92, %110 : vector<1x16xf32>
    %cst_91 = arith.constant dense<0.000000e+00> : vector<1x128xf32>
    %112 = tpu.matmul %111, %1, %cst_91 {dimension_numbers = #tpu.dot_dimension_numbers<[1], [0], [0], [1], [0, 0, 1, 1], [], []>} : vector<1x16xf32>, vector<16x128xf32>, vector<1x128xf32> -> vector<1x128xf32>
    %cst_92 = arith.constant dense<0.000000e+00> : vector<1x128xf32>
    %113 = tpu.matmul %93, %1, %cst_92 {dimension_numbers = #tpu.dot_dimension_numbers<[1], [0], [0], [1], [0, 0, 1, 1], [], []>} : vector<1x16xf32>, vector<16x128xf32>, vector<1x128xf32> -> vector<1x128xf32>
    %114 = vector.broadcast %112 : vector<1x128xf32> to vector<16x128xf32>
    %115 = arith.mulf %101, %114 : vector<16x128xf32>
    %116 = vector.broadcast %113 : vector<1x128xf32> to vector<16x128xf32>
    %117 = arith.addf %115, %116 : vector<16x128xf32>
    %118 = arith.addf %40, %117 : vector<16x128xf32>
    %cst_93 = arith.constant 0.000000e+00 : f32
    %119 = vector.broadcast %cst_93 : f32 to vector<16x128xf32>
    %120 = arith.maximumf %118, %119 : vector<16x128xf32>
    %121 = vector.shape_cast %120 : vector<16x128xf32> to vector<2x8x128xf32>
    %c0_94 = arith.constant 0 : index
    %c8_95 = arith.constant 8 : index
    %c0_96 = arith.constant 0 : index
    %122 = vector.load %arg17[%c0_94, %c8_95, %c0_96] : memref<2x24x128xf32, #tpu.memory_space<vmem>>, vector<2x8x128xf32>
    tpu.vector_store %arg17[%c0_94, %c8_95, %c0_96], %121 {strides = array<i32>} : memref<2x24x128xf32, #tpu.memory_space<vmem>>, vector<2x8x128xf32>,
    %c0_97 = arith.constant 0 : index
    %c7_98 = arith.constant 7 : index
    %c0_99 = arith.constant 0 : index
    %123 = vector.load %arg17[%c0_97, %c7_98, %c0_99] : memref<2x24x128xf32, #tpu.memory_space<vmem>>, vector<2x8x128xf32>
    %124 = vector.shape_cast %123 : vector<2x8x128xf32> to vector<16x128xf32>
    %c0_100 = arith.constant 0 : index
    %c0_101 = arith.constant 0 : index
    %c0_102 = arith.constant 0 : index
    %125 = vector.load %arg6[%c0_100, %c0_101, %c0_102] : memref<3x128x128xf32, #tpu.memory_space<vmem>>, vector<1x128x128xf32>
    %126 = vector.shape_cast %125 : vector<1x128x128xf32> to vector<128x128xf32>
    %cst_103 = arith.constant dense<0.000000e+00> : vector<16x128xf32>
    %127 = tpu.matmul %124, %126, %cst_103 {dimension_numbers = #tpu.dot_dimension_numbers<[1], [0], [0], [1], [0, 0, 1, 1], [], []>} : vector<16x128xf32>, vector<128x128xf32>, vector<16x128xf32> -> vector<16x128xf32>
    %c0_104 = arith.constant 0 : index
    %c8_105 = arith.constant 8 : index
    %c0_106 = arith.constant 0 : index
    %128 = vector.load %arg17[%c0_104, %c8_105, %c0_106] : memref<2x24x128xf32, #tpu.memory_space<vmem>>, vector<2x8x128xf32>
    %129 = vector.shape_cast %128 : vector<2x8x128xf32> to vector<16x128xf32>
    %c1_107 = arith.constant 1 : index
    %c0_108 = arith.constant 0 : index
    %c0_109 = arith.constant 0 : index
    %130 = vector.load %arg6[%c1_107, %c0_108, %c0_109] : memref<3x128x128xf32, #tpu.memory_space<vmem>>, vector<1x128x128xf32>
    %131 = vector.shape_cast %130 : vector<1x128x128xf32> to vector<128x128xf32>
    %cst_110 = arith.constant dense<0.000000e+00> : vector<16x128xf32>
    %132 = tpu.matmul %129, %131, %cst_110 {dimension_numbers = #tpu.dot_dimension_numbers<[1], [0], [0], [1], [0, 0, 1, 1], [], []>} : vector<16x128xf32>, vector<128x128xf32>, vector<16x128xf32> -> vector<16x128xf32>
    %133 = arith.addf %127, %132 : vector<16x128xf32>
    %c0_111 = arith.constant 0 : index
    %c9_112 = arith.constant 9 : index
    %c0_113 = arith.constant 0 : index
    %134 = vector.load %arg17[%c0_111, %c9_112, %c0_113] : memref<2x24x128xf32, #tpu.memory_space<vmem>>, vector<2x8x128xf32>
    %135 = vector.shape_cast %134 : vector<2x8x128xf32> to vector<16x128xf32>
    %c2_114 = arith.constant 2 : index
    %c0_115 = arith.constant 0 : index
    %c0_116 = arith.constant 0 : index
    %136 = vector.load %arg6[%c2_114, %c0_115, %c0_116] : memref<3x128x128xf32, #tpu.memory_space<vmem>>, vector<1x128x128xf32>
    %137 = vector.shape_cast %136 : vector<1x128x128xf32> to vector<128x128xf32>
    %cst_117 = arith.constant dense<0.000000e+00> : vector<16x128xf32>
    %138 = tpu.matmul %135, %137, %cst_117 {dimension_numbers = #tpu.dot_dimension_numbers<[1], [0], [0], [1], [0, 0, 1, 1], [], []>} : vector<16x128xf32>, vector<128x128xf32>, vector<16x128xf32> -> vector<16x128xf32>
    %139 = arith.addf %133, %138 : vector<16x128xf32>
    %c3 = arith.constant 3 : index
    %c0_118 = arith.constant 0 : index
    %140 = vector.load %arg2[%c3, %c0_118] : memref<6x16xf32, #tpu.memory_space<vmem>>, vector<1x16xf32>
    %c3_119 = arith.constant 3 : index
    %c0_120 = arith.constant 0 : index
    %141 = vector.load %arg3[%c3_119, %c0_120] : memref<6x16xf32, #tpu.memory_space<vmem>>, vector<1x16xf32>
    %cst_121 = arith.constant dense<0.000000e+00> : vector<128xf32>
    %142 = vector.multi_reduction <add>, %139, %cst_121 [0] : vector<16x128xf32> to vector<128xf32>
    %143 = vector.shape_cast %142 : vector<128xf32> to vector<1x128xf32>
    %cst_122 = arith.constant dense<0.000000e+00> : vector<1x16xf32>
    %144 = tpu.matmul %143, %0, %cst_122 {dimension_numbers = #tpu.dot_dimension_numbers<[1], [0], [0], [1], [0, 0, 1, 1], [], []>} : vector<1x128xf32>, vector<128x16xf32>, vector<1x16xf32> -> vector<1x16xf32>
    %cst_123 = arith.constant 7.812500e-03 : f32
    %145 = vector.broadcast %cst_123 : f32 to vector<1x16xf32>
    %146 = arith.mulf %144, %145 : vector<1x16xf32>
    %cst_124 = arith.constant dense<0.000000e+00> : vector<1x128xf32>
    %147 = tpu.matmul %146, %1, %cst_124 {dimension_numbers = #tpu.dot_dimension_numbers<[1], [0], [0], [1], [0, 0, 1, 1], [], []>} : vector<1x16xf32>, vector<16x128xf32>, vector<1x128xf32> -> vector<1x128xf32>
    %148 = vector.broadcast %147 : vector<1x128xf32> to vector<16x128xf32>
    %149 = arith.subf %139, %148 : vector<16x128xf32>
    %150 = arith.mulf %149, %149 : vector<16x128xf32>
    %cst_125 = arith.constant dense<0.000000e+00> : vector<128xf32>
    %151 = vector.multi_reduction <add>, %150, %cst_125 [0] : vector<16x128xf32> to vector<128xf32>
    %152 = vector.shape_cast %151 : vector<128xf32> to vector<1x128xf32>
    %cst_126 = arith.constant dense<0.000000e+00> : vector<1x16xf32>
    %153 = tpu.matmul %152, %0, %cst_126 {dimension_numbers = #tpu.dot_dimension_numbers<[1], [0], [0], [1], [0, 0, 1, 1], [], []>} : vector<1x128xf32>, vector<128x16xf32>, vector<1x16xf32> -> vector<1x16xf32>
    %cst_127 = arith.constant 7.812500e-03 : f32
    %154 = vector.broadcast %cst_127 : f32 to vector<1x16xf32>
    %155 = arith.mulf %153, %154 : vector<1x16xf32>
    %cst_128 = arith.constant 9.99999974E-6 : f32
    %156 = vector.broadcast %cst_128 : f32 to vector<1x16xf32>
    %157 = arith.addf %155, %156 : vector<1x16xf32>
    %158 = math.rsqrt %157 : vector<1x16xf32>
    %159 = arith.mulf %140, %158 : vector<1x16xf32>
    %cst_129 = arith.constant dense<0.000000e+00> : vector<1x128xf32>
    %160 = tpu.matmul %159, %1, %cst_129 {dimension_numbers = #tpu.dot_dimension_numbers<[1], [0], [0], [1], [0, 0, 1, 1], [], []>} : vector<1x16xf32>, vector<16x128xf32>, vector<1x128xf32> -> vector<1x128xf32>
    %cst_130 = arith.constant dense<0.000000e+00> : vector<1x128xf32>
    %161 = tpu.matmul %141, %1, %cst_130 {dimension_numbers = #tpu.dot_dimension_numbers<[1], [0], [0], [1], [0, 0, 1, 1], [], []>} : vector<1x16xf32>, vector<16x128xf32>, vector<1x128xf32> -> vector<1x128xf32>
    %162 = vector.broadcast %160 : vector<1x128xf32> to vector<16x128xf32>
    %163 = arith.mulf %149, %162 : vector<16x128xf32>
    %164 = vector.broadcast %161 : vector<1x128xf32> to vector<16x128xf32>
    %165 = arith.addf %163, %164 : vector<16x128xf32>
    %cst_131 = arith.constant 0.000000e+00 : f32
    %166 = vector.broadcast %cst_131 : f32 to vector<16x128xf32>
    %167 = arith.maximumf %165, %166 : vector<16x128xf32>
    %c0_132 = arith.constant 0 : index
    %c0_133 = arith.constant 0 : index
    %168 = vector.load %arg7[%c0_132, %c0_133] : memref<128x128xf32, #tpu.memory_space<vmem>>, vector<128x128xf32>
    %cst_134 = arith.constant dense<0.000000e+00> : vector<16x128xf32>
    %169 = tpu.matmul %167, %168, %cst_134 {dimension_numbers = #tpu.dot_dimension_numbers<[1], [0], [0], [1], [0, 0, 1, 1], [], []>} : vector<16x128xf32>, vector<128x128xf32>, vector<16x128xf32> -> vector<16x128xf32>
    %c4 = arith.constant 4 : index
    %c0_135 = arith.constant 0 : index
    %170 = vector.load %arg2[%c4, %c0_135] : memref<6x16xf32, #tpu.memory_space<vmem>>, vector<1x16xf32>
    %c4_136 = arith.constant 4 : index
    %c0_137 = arith.constant 0 : index
    %171 = vector.load %arg3[%c4_136, %c0_137] : memref<6x16xf32, #tpu.memory_space<vmem>>, vector<1x16xf32>
    %cst_138 = arith.constant dense<0.000000e+00> : vector<128xf32>
    %172 = vector.multi_reduction <add>, %169, %cst_138 [0] : vector<16x128xf32> to vector<128xf32>
    %173 = vector.shape_cast %172 : vector<128xf32> to vector<1x128xf32>
    %cst_139 = arith.constant dense<0.000000e+00> : vector<1x16xf32>
    %174 = tpu.matmul %173, %0, %cst_139 {dimension_numbers = #tpu.dot_dimension_numbers<[1], [0], [0], [1], [0, 0, 1, 1], [], []>} : vector<1x128xf32>, vector<128x16xf32>, vector<1x16xf32> -> vector<1x16xf32>
    %cst_140 = arith.constant 7.812500e-03 : f32
    %175 = vector.broadcast %cst_140 : f32 to vector<1x16xf32>
    %176 = arith.mulf %174, %175 : vector<1x16xf32>
    %cst_141 = arith.constant dense<0.000000e+00> : vector<1x128xf32>
    %177 = tpu.matmul %176, %1, %cst_141 {dimension_numbers = #tpu.dot_dimension_numbers<[1], [0], [0], [1], [0, 0, 1, 1], [], []>} : vector<1x16xf32>, vector<16x128xf32>, vector<1x128xf32> -> vector<1x128xf32>
    %178 = vector.broadcast %177 : vector<1x128xf32> to vector<16x128xf32>
    %179 = arith.subf %169, %178 : vector<16x128xf32>
    %180 = arith.mulf %179, %179 : vector<16x128xf32>
    %cst_142 = arith.constant dense<0.000000e+00> : vector<128xf32>
    %181 = vector.multi_reduction <add>, %180, %cst_142 [0] : vector<16x128xf32> to vector<128xf32>
    %182 = vector.shape_cast %181 : vector<128xf32> to vector<1x128xf32>
    %cst_143 = arith.constant dense<0.000000e+00> : vector<1x16xf32>
    %183 = tpu.matmul %182, %0, %cst_143 {dimension_numbers = #tpu.dot_dimension_numbers<[1], [0], [0], [1], [0, 0, 1, 1], [], []>} : vector<1x128xf32>, vector<128x16xf32>, vector<1x16xf32> -> vector<1x16xf32>
    %cst_144 = arith.constant 7.812500e-03 : f32
    %184 = vector.broadcast %cst_144 : f32 to vector<1x16xf32>
    %185 = arith.mulf %183, %184 : vector<1x16xf32>
    %cst_145 = arith.constant 9.99999974E-6 : f32
    %186 = vector.broadcast %cst_145 : f32 to vector<1x16xf32>
    %187 = arith.addf %185, %186 : vector<1x16xf32>
    %188 = math.rsqrt %187 : vector<1x16xf32>
    %189 = arith.mulf %170, %188 : vector<1x16xf32>
    %cst_146 = arith.constant dense<0.000000e+00> : vector<1x128xf32>
    %190 = tpu.matmul %189, %1, %cst_146 {dimension_numbers = #tpu.dot_dimension_numbers<[1], [0], [0], [1], [0, 0, 1, 1], [], []>} : vector<1x16xf32>, vector<16x128xf32>, vector<1x128xf32> -> vector<1x128xf32>
    %cst_147 = arith.constant dense<0.000000e+00> : vector<1x128xf32>
    %191 = tpu.matmul %171, %1, %cst_147 {dimension_numbers = #tpu.dot_dimension_numbers<[1], [0], [0], [1], [0, 0, 1, 1], [], []>} : vector<1x16xf32>, vector<16x128xf32>, vector<1x128xf32> -> vector<1x128xf32>
    %192 = vector.broadcast %190 : vector<1x128xf32> to vector<16x128xf32>
    %193 = arith.mulf %179, %192 : vector<16x128xf32>
    %194 = vector.broadcast %191 : vector<1x128xf32> to vector<16x128xf32>
    %195 = arith.addf %193, %194 : vector<16x128xf32>
    %196 = arith.addf %118, %195 : vector<16x128xf32>
    %cst_148 = arith.constant 0.000000e+00 : f32
    %197 = vector.broadcast %cst_148 : f32 to vector<16x128xf32>
    %198 = arith.maximumf %196, %197 : vector<16x128xf32>
    %199 = vector.shape_cast %198 : vector<16x128xf32> to vector<2x8x128xf32>
    %c0_149 = arith.constant 0 : index
    %c8_150 = arith.constant 8 : index
    %c0_151 = arith.constant 0 : index
    %200 = vector.load %arg18[%c0_149, %c8_150, %c0_151] : memref<2x24x128xf32, #tpu.memory_space<vmem>>, vector<2x8x128xf32>
    tpu.vector_store %arg18[%c0_149, %c8_150, %c0_151], %199 {strides = array<i32>} : memref<2x24x128xf32, #tpu.memory_space<vmem>>, vector<2x8x128xf32>,
    %c0_152 = arith.constant 0 : index
    %c7_153 = arith.constant 7 : index
    %c0_154 = arith.constant 0 : index
    %201 = vector.load %arg18[%c0_152, %c7_153, %c0_154] : memref<2x24x128xf32, #tpu.memory_space<vmem>>, vector<2x8x128xf32>
    %202 = vector.shape_cast %201 : vector<2x8x128xf32> to vector<16x128xf32>
    %c0_155 = arith.constant 0 : index
    %c0_156 = arith.constant 0 : index
    %c0_157 = arith.constant 0 : index
    %203 = vector.load %arg8[%c0_155, %c0_156, %c0_157] : memref<3x128x512xf32, #tpu.memory_space<vmem>>, vector<1x128x512xf32>
    %204 = vector.shape_cast %203 : vector<1x128x512xf32> to vector<128x512xf32>
    %cst_158 = arith.constant dense<0.000000e+00> : vector<16x512xf32>
    %205 = tpu.matmul %202, %204, %cst_158 {dimension_numbers = #tpu.dot_dimension_numbers<[1], [0], [0], [1], [0, 0, 1, 1], [], []>} : vector<16x128xf32>, vector<128x512xf32>, vector<16x512xf32> -> vector<16x512xf32>
    %c0_159 = arith.constant 0 : index
    %c8_160 = arith.constant 8 : index
    %c0_161 = arith.constant 0 : index
    %206 = vector.load %arg18[%c0_159, %c8_160, %c0_161] : memref<2x24x128xf32, #tpu.memory_space<vmem>>, vector<2x8x128xf32>
    %207 = vector.shape_cast %206 : vector<2x8x128xf32> to vector<16x128xf32>
    %c1_162 = arith.constant 1 : index
    %c0_163 = arith.constant 0 : index
    %c0_164 = arith.constant 0 : index
    %208 = vector.load %arg8[%c1_162, %c0_163, %c0_164] : memref<3x128x512xf32, #tpu.memory_space<vmem>>, vector<1x128x512xf32>
    %209 = vector.shape_cast %208 : vector<1x128x512xf32> to vector<128x512xf32>
    %cst_165 = arith.constant dense<0.000000e+00> : vector<16x512xf32>
    %210 = tpu.matmul %207, %209, %cst_165 {dimension_numbers = #tpu.dot_dimension_numbers<[1], [0], [0], [1], [0, 0, 1, 1], [], []>} : vector<16x128xf32>, vector<128x512xf32>, vector<16x512xf32> -> vector<16x512xf32>
    %211 = arith.addf %205, %210 : vector<16x512xf32>
    %c0_166 = arith.constant 0 : index
    %c9_167 = arith.constant 9 : index
    %c0_168 = arith.constant 0 : index
    %212 = vector.load %arg18[%c0_166, %c9_167, %c0_168] : memref<2x24x128xf32, #tpu.memory_space<vmem>>, vector<2x8x128xf32>
    %213 = vector.shape_cast %212 : vector<2x8x128xf32> to vector<16x128xf32>
    %c2_169 = arith.constant 2 : index
    %c0_170 = arith.constant 0 : index
    %c0_171 = arith.constant 0 : index
    %214 = vector.load %arg8[%c2_169, %c0_170, %c0_171] : memref<3x128x512xf32, #tpu.memory_space<vmem>>, vector<1x128x512xf32>
    %215 = vector.shape_cast %214 : vector<1x128x512xf32> to vector<128x512xf32>
    %cst_172 = arith.constant dense<0.000000e+00> : vector<16x512xf32>
    %216 = tpu.matmul %213, %215, %cst_172 {dimension_numbers = #tpu.dot_dimension_numbers<[1], [0], [0], [1], [0, 0, 1, 1], [], []>} : vector<16x128xf32>, vector<128x512xf32>, vector<16x512xf32> -> vector<16x512xf32>
    %217 = arith.addf %211, %216 : vector<16x512xf32>
    %c5 = arith.constant 5 : index
    %c0_173 = arith.constant 0 : index
    %218 = vector.load %arg2[%c5, %c0_173] : memref<6x16xf32, #tpu.memory_space<vmem>>, vector<1x16xf32>
    %c5_174 = arith.constant 5 : index
    %c0_175 = arith.constant 0 : index
    %219 = vector.load %arg3[%c5_174, %c0_175] : memref<6x16xf32, #tpu.memory_space<vmem>>, vector<1x16xf32>
    %cst_176 = arith.constant dense<0.000000e+00> : vector<512xf32>
    %220 = vector.multi_reduction <add>, %217, %cst_176 [0] : vector<16x512xf32> to vector<512xf32>
    %221 = vector.shape_cast %220 : vector<512xf32> to vector<1x512xf32>
    %cst_177 = arith.constant dense<0.000000e+00> : vector<1x16xf32>
    %222 = tpu.matmul %221, %2, %cst_177 {dimension_numbers = #tpu.dot_dimension_numbers<[1], [0], [0], [1], [0, 0, 1, 1], [], []>} : vector<1x512xf32>, vector<512x16xf32>, vector<1x16xf32> -> vector<1x16xf32>
    %cst_178 = arith.constant 0.001953125 : f32
    %223 = vector.broadcast %cst_178 : f32 to vector<1x16xf32>
    %224 = arith.mulf %222, %223 : vector<1x16xf32>
    %cst_179 = arith.constant dense<0.000000e+00> : vector<1x512xf32>
    %225 = tpu.matmul %224, %3, %cst_179 {dimension_numbers = #tpu.dot_dimension_numbers<[1], [0], [0], [1], [0, 0, 1, 1], [], []>} : vector<1x16xf32>, vector<16x512xf32>, vector<1x512xf32> -> vector<1x512xf32>
    %226 = vector.broadcast %225 : vector<1x512xf32> to vector<16x512xf32>
    %227 = arith.subf %217, %226 : vector<16x512xf32>
    %228 = arith.mulf %227, %227 : vector<16x512xf32>
    %cst_180 = arith.constant dense<0.000000e+00> : vector<512xf32>
    %229 = vector.multi_reduction <add>, %228, %cst_180 [0] : vector<16x512xf32> to vector<512xf32>
    %230 = vector.shape_cast %229 : vector<512xf32> to vector<1x512xf32>
    %cst_181 = arith.constant dense<0.000000e+00> : vector<1x16xf32>
    %231 = tpu.matmul %230, %2, %cst_181 {dimension_numbers = #tpu.dot_dimension_numbers<[1], [0], [0], [1], [0, 0, 1, 1], [], []>} : vector<1x512xf32>, vector<512x16xf32>, vector<1x16xf32> -> vector<1x16xf32>
    %cst_182 = arith.constant 0.001953125 : f32
    %232 = vector.broadcast %cst_182 : f32 to vector<1x16xf32>
    %233 = arith.mulf %231, %232 : vector<1x16xf32>
    %cst_183 = arith.constant 9.99999974E-6 : f32
    %234 = vector.broadcast %cst_183 : f32 to vector<1x16xf32>
    %235 = arith.addf %233, %234 : vector<1x16xf32>
    %236 = math.rsqrt %235 : vector<1x16xf32>
    %237 = arith.mulf %218, %236 : vector<1x16xf32>
    %cst_184 = arith.constant dense<0.000000e+00> : vector<1x512xf32>
    %238 = tpu.matmul %237, %3, %cst_184 {dimension_numbers = #tpu.dot_dimension_numbers<[1], [0], [0], [1], [0, 0, 1, 1], [], []>} : vector<1x16xf32>, vector<16x512xf32>, vector<1x512xf32> -> vector<1x512xf32>
    %cst_185 = arith.constant dense<0.000000e+00> : vector<1x512xf32>
    %239 = tpu.matmul %219, %3, %cst_185 {dimension_numbers = #tpu.dot_dimension_numbers<[1], [0], [0], [1], [0, 0, 1, 1], [], []>} : vector<1x16xf32>, vector<16x512xf32>, vector<1x512xf32> -> vector<1x512xf32>
    %240 = vector.broadcast %238 : vector<1x512xf32> to vector<16x512xf32>
    %241 = arith.mulf %227, %240 : vector<16x512xf32>
    %242 = vector.broadcast %239 : vector<1x512xf32> to vector<16x512xf32>
    %243 = arith.addf %241, %242 : vector<16x512xf32>
    %cst_186 = arith.constant 0.000000e+00 : f32
    %244 = vector.broadcast %cst_186 : f32 to vector<16x512xf32>
    %245 = arith.maximumf %243, %244 : vector<16x512xf32>
    %246 = vector.shape_cast %245 : vector<16x512xf32> to vector<2x8x512xf32>
    %247 = vector.extract_strided_slice %246 {offsets = [0, 0, 0], sizes = [2, 1, 256], strides = [1, 1, 1]} : vector<2x8x512xf32> to vector<2x1x256xf32>
    %c0_187 = arith.constant 0 : index
    %c8_188 = arith.constant 8 : index
    %c0_189 = arith.constant 0 : index
    %248 = vector.load %arg19[%c0_187, %c8_188, %c0_189] : memref<2x32x256xf32, #tpu.memory_space<vmem>>, vector<2x1x256xf32>
    tpu.vector_store %arg19[%c0_187, %c8_188, %c0_189], %247 {strides = array<i32>} : memref<2x32x256xf32, #tpu.memory_space<vmem>>, vector<2x1x256xf32>,
    %249 = vector.extract_strided_slice %246 {offsets = [0, 1, 0], sizes = [2, 1, 256], strides = [1, 1, 1]} : vector<2x8x512xf32> to vector<2x1x256xf32>
    %c0_190 = arith.constant 0 : index
    %c10 = arith.constant 10 : index
    %c0_191 = arith.constant 0 : index
    %250 = vector.load %arg19[%c0_190, %c10, %c0_191] : memref<2x32x256xf32, #tpu.memory_space<vmem>>, vector<2x1x256xf32>
    tpu.vector_store %arg19[%c0_190, %c10, %c0_191], %249 {strides = array<i32>} : memref<2x32x256xf32, #tpu.memory_space<vmem>>, vector<2x1x256xf32>,
    %251 = vector.extract_strided_slice %246 {offsets = [0, 2, 0], sizes = [2, 1, 256], strides = [1, 1, 1]} : vector<2x8x512xf32> to vector<2x1x256xf32>
    %c0_192 = arith.constant 0 : index
    %c12 = arith.constant 12 : index
    %c0_193 = arith.constant 0 : index
    %252 = vector.load %arg19[%c0_192, %c12, %c0_193] : memref<2x32x256xf32, #tpu.memory_space<vmem>>, vector<2x1x256xf32>
    tpu.vector_store %arg19[%c0_192, %c12, %c0_193], %251 {strides = array<i32>} : memref<2x32x256xf32, #tpu.memory_space<vmem>>, vector<2x1x256xf32>,
    %253 = vector.extract_strided_slice %246 {offsets = [0, 3, 0], sizes = [2, 1, 256], strides = [1, 1, 1]} : vector<2x8x512xf32> to vector<2x1x256xf32>
    %c0_194 = arith.constant 0 : index
    %c14 = arith.constant 14 : index
    %c0_195 = arith.constant 0 : index
    %254 = vector.load %arg19[%c0_194, %c14, %c0_195] : memref<2x32x256xf32, #tpu.memory_space<vmem>>, vector<2x1x256xf32>
    tpu.vector_store %arg19[%c0_194, %c14, %c0_195], %253 {strides = array<i32>} : memref<2x32x256xf32, #tpu.memory_space<vmem>>, vector<2x1x256xf32>,
    %255 = vector.extract_strided_slice %246 {offsets = [0, 4, 0], sizes = [2, 1, 256], strides = [1, 1, 1]} : vector<2x8x512xf32> to vector<2x1x256xf32>
    %c0_196 = arith.constant 0 : index
    %c16 = arith.constant 16 : index
    %c0_197 = arith.constant 0 : index
    %256 = vector.load %arg19[%c0_196, %c16, %c0_197] : memref<2x32x256xf32, #tpu.memory_space<vmem>>, vector<2x1x256xf32>
    tpu.vector_store %arg19[%c0_196, %c16, %c0_197], %255 {strides = array<i32>} : memref<2x32x256xf32, #tpu.memory_space<vmem>>, vector<2x1x256xf32>,
    %257 = vector.extract_strided_slice %246 {offsets = [0, 5, 0], sizes = [2, 1, 256], strides = [1, 1, 1]} : vector<2x8x512xf32> to vector<2x1x256xf32>
    %c0_198 = arith.constant 0 : index
    %c18 = arith.constant 18 : index
    %c0_199 = arith.constant 0 : index
    %258 = vector.load %arg19[%c0_198, %c18, %c0_199] : memref<2x32x256xf32, #tpu.memory_space<vmem>>, vector<2x1x256xf32>
    tpu.vector_store %arg19[%c0_198, %c18, %c0_199], %257 {strides = array<i32>} : memref<2x32x256xf32, #tpu.memory_space<vmem>>, vector<2x1x256xf32>,
    %259 = vector.extract_strided_slice %246 {offsets = [0, 6, 0], sizes = [2, 1, 256], strides = [1, 1, 1]} : vector<2x8x512xf32> to vector<2x1x256xf32>
    %c0_200 = arith.constant 0 : index
    %c20 = arith.constant 20 : index
    %c0_201 = arith.constant 0 : index
    %260 = vector.load %arg19[%c0_200, %c20, %c0_201] : memref<2x32x256xf32, #tpu.memory_space<vmem>>, vector<2x1x256xf32>
    tpu.vector_store %arg19[%c0_200, %c20, %c0_201], %259 {strides = array<i32>} : memref<2x32x256xf32, #tpu.memory_space<vmem>>, vector<2x1x256xf32>,
    %261 = vector.extract_strided_slice %246 {offsets = [0, 7, 0], sizes = [2, 1, 256], strides = [1, 1, 1]} : vector<2x8x512xf32> to vector<2x1x256xf32>
    %c0_202 = arith.constant 0 : index
    %c22 = arith.constant 22 : index
    %c0_203 = arith.constant 0 : index
    %262 = vector.load %arg19[%c0_202, %c22, %c0_203] : memref<2x32x256xf32, #tpu.memory_space<vmem>>, vector<2x1x256xf32>
    tpu.vector_store %arg19[%c0_202, %c22, %c0_203], %261 {strides = array<i32>} : memref<2x32x256xf32, #tpu.memory_space<vmem>>, vector<2x1x256xf32>,
    %263 = vector.extract_strided_slice %246 {offsets = [0, 0, 256], sizes = [2, 1, 256], strides = [1, 1, 1]} : vector<2x8x512xf32> to vector<2x1x256xf32>
    %c0_204 = arith.constant 0 : index
    %c9_205 = arith.constant 9 : index
    %c0_206 = arith.constant 0 : index
    %264 = vector.load %arg19[%c0_204, %c9_205, %c0_206] : memref<2x32x256xf32, #tpu.memory_space<vmem>>, vector<2x1x256xf32>
    tpu.vector_store %arg19[%c0_204, %c9_205, %c0_206], %263 {strides = array<i32>} : memref<2x32x256xf32, #tpu.memory_space<vmem>>, vector<2x1x256xf32>,
    %265 = vector.extract_strided_slice %246 {offsets = [0, 1, 256], sizes = [2, 1, 256], strides = [1, 1, 1]} : vector<2x8x512xf32> to vector<2x1x256xf32>
    %c0_207 = arith.constant 0 : index
    %c11 = arith.constant 11 : index
    %c0_208 = arith.constant 0 : index
    %266 = vector.load %arg19[%c0_207, %c11, %c0_208] : memref<2x32x256xf32, #tpu.memory_space<vmem>>, vector<2x1x256xf32>
    tpu.vector_store %arg19[%c0_207, %c11, %c0_208], %265 {strides = array<i32>} : memref<2x32x256xf32, #tpu.memory_space<vmem>>, vector<2x1x256xf32>,
    %267 = vector.extract_strided_slice %246 {offsets = [0, 2, 256], sizes = [2, 1, 256], strides = [1, 1, 1]} : vector<2x8x512xf32> to vector<2x1x256xf32>
    %c0_209 = arith.constant 0 : index
    %c13 = arith.constant 13 : index
    %c0_210 = arith.constant 0 : index
    %268 = vector.load %arg19[%c0_209, %c13, %c0_210] : memref<2x32x256xf32, #tpu.memory_space<vmem>>, vector<2x1x256xf32>
    tpu.vector_store %arg19[%c0_209, %c13, %c0_210], %267 {strides = array<i32>} : memref<2x32x256xf32, #tpu.memory_space<vmem>>, vector<2x1x256xf32>,
    %269 = vector.extract_strided_slice %246 {offsets = [0, 3, 256], sizes = [2, 1, 256], strides = [1, 1, 1]} : vector<2x8x512xf32> to vector<2x1x256xf32>
    %c0_211 = arith.constant 0 : index
    %c15 = arith.constant 15 : index
    %c0_212 = arith.constant 0 : index
    %270 = vector.load %arg19[%c0_211, %c15, %c0_212] : memref<2x32x256xf32, #tpu.memory_space<vmem>>, vector<2x1x256xf32>
    tpu.vector_store %arg19[%c0_211, %c15, %c0_212], %269 {strides = array<i32>} : memref<2x32x256xf32, #tpu.memory_space<vmem>>, vector<2x1x256xf32>,
    %271 = vector.extract_strided_slice %246 {offsets = [0, 4, 256], sizes = [2, 1, 256], strides = [1, 1, 1]} : vector<2x8x512xf32> to vector<2x1x256xf32>
    %c0_213 = arith.constant 0 : index
    %c17 = arith.constant 17 : index
    %c0_214 = arith.constant 0 : index
    %272 = vector.load %arg19[%c0_213, %c17, %c0_214] : memref<2x32x256xf32, #tpu.memory_space<vmem>>, vector<2x1x256xf32>
    tpu.vector_store %arg19[%c0_213, %c17, %c0_214], %271 {strides = array<i32>} : memref<2x32x256xf32, #tpu.memory_space<vmem>>, vector<2x1x256xf32>,
    %273 = vector.extract_strided_slice %246 {offsets = [0, 5, 256], sizes = [2, 1, 256], strides = [1, 1, 1]} : vector<2x8x512xf32> to vector<2x1x256xf32>
    %c0_215 = arith.constant 0 : index
    %c19 = arith.constant 19 : index
    %c0_216 = arith.constant 0 : index
    %274 = vector.load %arg19[%c0_215, %c19, %c0_216] : memref<2x32x256xf32, #tpu.memory_space<vmem>>, vector<2x1x256xf32>
    tpu.vector_store %arg19[%c0_215, %c19, %c0_216], %273 {strides = array<i32>} : memref<2x32x256xf32, #tpu.memory_space<vmem>>, vector<2x1x256xf32>,
    %275 = vector.extract_strided_slice %246 {offsets = [0, 6, 256], sizes = [2, 1, 256], strides = [1, 1, 1]} : vector<2x8x512xf32> to vector<2x1x256xf32>
    %c0_217 = arith.constant 0 : index
    %c21 = arith.constant 21 : index
    %c0_218 = arith.constant 0 : index
    %276 = vector.load %arg19[%c0_217, %c21, %c0_218] : memref<2x32x256xf32, #tpu.memory_space<vmem>>, vector<2x1x256xf32>
    tpu.vector_store %arg19[%c0_217, %c21, %c0_218], %275 {strides = array<i32>} : memref<2x32x256xf32, #tpu.memory_space<vmem>>, vector<2x1x256xf32>,
    %277 = vector.extract_strided_slice %246 {offsets = [0, 7, 256], sizes = [2, 1, 256], strides = [1, 1, 1]} : vector<2x8x512xf32> to vector<2x1x256xf32>
    %c0_219 = arith.constant 0 : index
    %c23 = arith.constant 23 : index
    %c0_220 = arith.constant 0 : index
    %278 = vector.load %arg19[%c0_219, %c23, %c0_220] : memref<2x32x256xf32, #tpu.memory_space<vmem>>, vector<2x1x256xf32>
    tpu.vector_store %arg19[%c0_219, %c23, %c0_220], %277 {strides = array<i32>} : memref<2x32x256xf32, #tpu.memory_space<vmem>>, vector<2x1x256xf32>,
    %c0_221 = arith.constant 0 : index
    %c7_222 = arith.constant 7 : index
    %c0_223 = arith.constant 0 : index
    %279 = vector.load %arg19[%c0_221, %c7_222, %c0_223] : memref<2x32x256xf32, #tpu.memory_space<vmem>>, vector<2x16x256xf32>
    %280 = vector.shape_cast %279 : vector<2x16x256xf32> to vector<32x256xf32>
    %c0_224 = arith.constant 0 : index
    %c0_225 = arith.constant 0 : index
    %c0_226 = arith.constant 0 : index
    %281 = vector.load %arg9[%c0_224, %c0_225, %c0_226] : memref<3x256x256xf32, #tpu.memory_space<vmem>>, vector<1x256x256xf32>
    %282 = vector.shape_cast %281 : vector<1x256x256xf32> to vector<256x256xf32>
    %cst_227 = arith.constant dense<0.000000e+00> : vector<32x256xf32>
    %283 = tpu.matmul %280, %282, %cst_227 {dimension_numbers = #tpu.dot_dimension_numbers<[1], [0], [0], [1], [0, 0, 1, 1], [], []>} : vector<32x256xf32>, vector<256x256xf32>, vector<32x256xf32> -> vector<32x256xf32>
    %c0_228 = arith.constant 0 : index
    %c8_229 = arith.constant 8 : index
    %c0_230 = arith.constant 0 : index
    %284 = vector.load %arg19[%c0_228, %c8_229, %c0_230] : memref<2x32x256xf32, #tpu.memory_space<vmem>>, vector<2x16x256xf32>
    %285 = vector.shape_cast %284 : vector<2x16x256xf32> to vector<32x256xf32>
    %c1_231 = arith.constant 1 : index
    %c0_232 = arith.constant 0 : index
    %c0_233 = arith.constant 0 : index
    %286 = vector.load %arg9[%c1_231, %c0_232, %c0_233] : memref<3x256x256xf32, #tpu.memory_space<vmem>>, vector<1x256x256xf32>
    %287 = vector.shape_cast %286 : vector<1x256x256xf32> to vector<256x256xf32>
    %cst_234 = arith.constant dense<0.000000e+00> : vector<32x256xf32>
    %288 = tpu.matmul %285, %287, %cst_234 {dimension_numbers = #tpu.dot_dimension_numbers<[1], [0], [0], [1], [0, 0, 1, 1], [], []>} : vector<32x256xf32>, vector<256x256xf32>, vector<32x256xf32> -> vector<32x256xf32>
    %289 = arith.addf %283, %288 : vector<32x256xf32>
    %c0_235 = arith.constant 0 : index
    %c9_236 = arith.constant 9 : index
    %c0_237 = arith.constant 0 : index
    %290 = vector.load %arg19[%c0_235, %c9_236, %c0_237] : memref<2x32x256xf32, #tpu.memory_space<vmem>>, vector<2x16x256xf32>
    %291 = vector.shape_cast %290 : vector<2x16x256xf32> to vector<32x256xf32>
    %c2_238 = arith.constant 2 : index
    %c0_239 = arith.constant 0 : index
    %c0_240 = arith.constant 0 : index
    %292 = vector.load %arg9[%c2_238, %c0_239, %c0_240] : memref<3x256x256xf32, #tpu.memory_space<vmem>>, vector<1x256x256xf32>
    %293 = vector.shape_cast %292 : vector<1x256x256xf32> to vector<256x256xf32>
    %cst_241 = arith.constant dense<0.000000e+00> : vector<32x256xf32>
    %294 = tpu.matmul %291, %293, %cst_241 {dimension_numbers = #tpu.dot_dimension_numbers<[1], [0], [0], [1], [0, 0, 1, 1], [], []>} : vector<32x256xf32>, vector<256x256xf32>, vector<32x256xf32> -> vector<32x256xf32>
    %295 = arith.addf %289, %294 : vector<32x256xf32>
    %c0_242 = arith.constant 0 : index
    %c0_243 = arith.constant 0 : index
    %296 = vector.load %arg10[%c0_242, %c0_243] : memref<1x256xf32, #tpu.memory_space<vmem>>, vector<1x256xf32>
    %297 = vector.broadcast %296 : vector<1x256xf32> to vector<32x256xf32>
    %298 = arith.addf %295, %297 : vector<32x256xf32>
    %299 = vector.shape_cast %298 : vector<32x256xf32> to vector<2x16x256xf32>
    %300 = vector.extract_strided_slice %299 {offsets = [0, 0, 0], sizes = [2, 1, 96], strides = [1, 1, 1]} : vector<2x16x256xf32> to vector<2x1x96xf32>
    %c0_244 = arith.constant 0 : index
    %c0_245 = arith.constant 0 : index
    %c0_246 = arith.constant 0 : index
    %301 = vector.load %arg15[%c0_244, %c0_245, %c0_246] : memref<2x32x96xf32, #tpu.memory_space<vmem>>, vector<2x1x96xf32>
    tpu.vector_store %arg15[%c0_244, %c0_245, %c0_246], %300 {strides = array<i32>} : memref<2x32x96xf32, #tpu.memory_space<vmem>>, vector<2x1x96xf32>,
    %302 = vector.extract_strided_slice %299 {offsets = [0, 1, 0], sizes = [2, 1, 96], strides = [1, 1, 1]} : vector<2x16x256xf32> to vector<2x1x96xf32>
    %c0_247 = arith.constant 0 : index
    %c2_248 = arith.constant 2 : index
    %c0_249 = arith.constant 0 : index
    %303 = vector.load %arg15[%c0_247, %c2_248, %c0_249] : memref<2x32x96xf32, #tpu.memory_space<vmem>>, vector<2x1x96xf32>
    tpu.vector_store %arg15[%c0_247, %c2_248, %c0_249], %302 {strides = array<i32>} : memref<2x32x96xf32, #tpu.memory_space<vmem>>, vector<2x1x96xf32>,
    %304 = vector.extract_strided_slice %299 {offsets = [0, 2, 0], sizes = [2, 1, 96], strides = [1, 1, 1]} : vector<2x16x256xf32> to vector<2x1x96xf32>
    %c0_250 = arith.constant 0 : index
    %c4_251 = arith.constant 4 : index
    %c0_252 = arith.constant 0 : index
    %305 = vector.load %arg15[%c0_250, %c4_251, %c0_252] : memref<2x32x96xf32, #tpu.memory_space<vmem>>, vector<2x1x96xf32>
    tpu.vector_store %arg15[%c0_250, %c4_251, %c0_252], %304 {strides = array<i32>} : memref<2x32x96xf32, #tpu.memory_space<vmem>>, vector<2x1x96xf32>,
    %306 = vector.extract_strided_slice %299 {offsets = [0, 3, 0], sizes = [2, 1, 96], strides = [1, 1, 1]} : vector<2x16x256xf32> to vector<2x1x96xf32>
    %c0_253 = arith.constant 0 : index
    %c6 = arith.constant 6 : index
    %c0_254 = arith.constant 0 : index
    %307 = vector.load %arg15[%c0_253, %c6, %c0_254] : memref<2x32x96xf32, #tpu.memory_space<vmem>>, vector<2x1x96xf32>
    tpu.vector_store %arg15[%c0_253, %c6, %c0_254], %306 {strides = array<i32>} : memref<2x32x96xf32, #tpu.memory_space<vmem>>, vector<2x1x96xf32>,
    %308 = vector.extract_strided_slice %299 {offsets = [0, 4, 0], sizes = [2, 1, 96], strides = [1, 1, 1]} : vector<2x16x256xf32> to vector<2x1x96xf32>
    %c0_255 = arith.constant 0 : index
    %c8_256 = arith.constant 8 : index
    %c0_257 = arith.constant 0 : index
    %309 = vector.load %arg15[%c0_255, %c8_256, %c0_257] : memref<2x32x96xf32, #tpu.memory_space<vmem>>, vector<2x1x96xf32>
    tpu.vector_store %arg15[%c0_255, %c8_256, %c0_257], %308 {strides = array<i32>} : memref<2x32x96xf32, #tpu.memory_space<vmem>>, vector<2x1x96xf32>,
    %310 = vector.extract_strided_slice %299 {offsets = [0, 5, 0], sizes = [2, 1, 96], strides = [1, 1, 1]} : vector<2x16x256xf32> to vector<2x1x96xf32>
    %c0_258 = arith.constant 0 : index
    %c10_259 = arith.constant 10 : index
    %c0_260 = arith.constant 0 : index
    %311 = vector.load %arg15[%c0_258, %c10_259, %c0_260] : memref<2x32x96xf32, #tpu.memory_space<vmem>>, vector<2x1x96xf32>
    tpu.vector_store %arg15[%c0_258, %c10_259, %c0_260], %310 {strides = array<i32>} : memref<2x32x96xf32, #tpu.memory_space<vmem>>, vector<2x1x96xf32>,
    %312 = vector.extract_strided_slice %299 {offsets = [0, 6, 0], sizes = [2, 1, 96], strides = [1, 1, 1]} : vector<2x16x256xf32> to vector<2x1x96xf32>
    %c0_261 = arith.constant 0 : index
    %c12_262 = arith.constant 12 : index
    %c0_263 = arith.constant 0 : index
    %313 = vector.load %arg15[%c0_261, %c12_262, %c0_263] : memref<2x32x96xf32, #tpu.memory_space<vmem>>, vector<2x1x96xf32>
    tpu.vector_store %arg15[%c0_261, %c12_262, %c0_263], %312 {strides = array<i32>} : memref<2x32x96xf32, #tpu.memory_space<vmem>>, vector<2x1x96xf32>,
    %314 = vector.extract_strided_slice %299 {offsets = [0, 7, 0], sizes = [2, 1, 96], strides = [1, 1, 1]} : vector<2x16x256xf32> to vector<2x1x96xf32>
    %c0_264 = arith.constant 0 : index
    %c14_265 = arith.constant 14 : index
    %c0_266 = arith.constant 0 : index
    %315 = vector.load %arg15[%c0_264, %c14_265, %c0_266] : memref<2x32x96xf32, #tpu.memory_space<vmem>>, vector<2x1x96xf32>
    tpu.vector_store %arg15[%c0_264, %c14_265, %c0_266], %314 {strides = array<i32>} : memref<2x32x96xf32, #tpu.memory_space<vmem>>, vector<2x1x96xf32>,
    %316 = vector.extract_strided_slice %299 {offsets = [0, 8, 0], sizes = [2, 1, 96], strides = [1, 1, 1]} : vector<2x16x256xf32> to vector<2x1x96xf32>
    %c0_267 = arith.constant 0 : index
    %c16_268 = arith.constant 16 : index
    %c0_269 = arith.constant 0 : index
    %317 = vector.load %arg15[%c0_267, %c16_268, %c0_269] : memref<2x32x96xf32, #tpu.memory_space<vmem>>, vector<2x1x96xf32>
    tpu.vector_store %arg15[%c0_267, %c16_268, %c0_269], %316 {strides = array<i32>} : memref<2x32x96xf32, #tpu.memory_space<vmem>>, vector<2x1x96xf32>,
    %318 = vector.extract_strided_slice %299 {offsets = [0, 9, 0], sizes = [2, 1, 96], strides = [1, 1, 1]} : vector<2x16x256xf32> to vector<2x1x96xf32>
    %c0_270 = arith.constant 0 : index
    %c18_271 = arith.constant 18 : index
    %c0_272 = arith.constant 0 : index
    %319 = vector.load %arg15[%c0_270, %c18_271, %c0_272] : memref<2x32x96xf32, #tpu.memory_space<vmem>>, vector<2x1x96xf32>
    tpu.vector_store %arg15[%c0_270, %c18_271, %c0_272], %318 {strides = array<i32>} : memref<2x32x96xf32, #tpu.memory_space<vmem>>, vector<2x1x96xf32>,
    %320 = vector.extract_strided_slice %299 {offsets = [0, 10, 0], sizes = [2, 1, 96], strides = [1, 1, 1]} : vector<2x16x256xf32> to vector<2x1x96xf32>
    %c0_273 = arith.constant 0 : index
    %c20_274 = arith.constant 20 : index
    %c0_275 = arith.constant 0 : index
    %321 = vector.load %arg15[%c0_273, %c20_274, %c0_275] : memref<2x32x96xf32, #tpu.memory_space<vmem>>, vector<2x1x96xf32>
    tpu.vector_store %arg15[%c0_273, %c20_274, %c0_275], %320 {strides = array<i32>} : memref<2x32x96xf32, #tpu.memory_space<vmem>>, vector<2x1x96xf32>,
    %322 = vector.extract_strided_slice %299 {offsets = [0, 11, 0], sizes = [2, 1, 96], strides = [1, 1, 1]} : vector<2x16x256xf32> to vector<2x1x96xf32>
    %c0_276 = arith.constant 0 : index
    %c22_277 = arith.constant 22 : index
    %c0_278 = arith.constant 0 : index
    %323 = vector.load %arg15[%c0_276, %c22_277, %c0_278] : memref<2x32x96xf32, #tpu.memory_space<vmem>>, vector<2x1x96xf32>
    tpu.vector_store %arg15[%c0_276, %c22_277, %c0_278], %322 {strides = array<i32>} : memref<2x32x96xf32, #tpu.memory_space<vmem>>, vector<2x1x96xf32>,
    %324 = vector.extract_strided_slice %299 {offsets = [0, 12, 0], sizes = [2, 1, 96], strides = [1, 1, 1]} : vector<2x16x256xf32> to vector<2x1x96xf32>
    %c0_279 = arith.constant 0 : index
    %c24 = arith.constant 24 : index
    %c0_280 = arith.constant 0 : index
    %325 = vector.load %arg15[%c0_279, %c24, %c0_280] : memref<2x32x96xf32, #tpu.memory_space<vmem>>, vector<2x1x96xf32>
    tpu.vector_store %arg15[%c0_279, %c24, %c0_280], %324 {strides = array<i32>} : memref<2x32x96xf32, #tpu.memory_space<vmem>>, vector<2x1x96xf32>,
    %326 = vector.extract_strided_slice %299 {offsets = [0, 13, 0], sizes = [2, 1, 96], strides = [1, 1, 1]} : vector<2x16x256xf32> to vector<2x1x96xf32>
    %c0_281 = arith.constant 0 : index
    %c26 = arith.constant 26 : index
    %c0_282 = arith.constant 0 : index
    %327 = vector.load %arg15[%c0_281, %c26, %c0_282] : memref<2x32x96xf32, #tpu.memory_space<vmem>>, vector<2x1x96xf32>
    tpu.vector_store %arg15[%c0_281, %c26, %c0_282], %326 {strides = array<i32>} : memref<2x32x96xf32, #tpu.memory_space<vmem>>, vector<2x1x96xf32>,
    %328 = vector.extract_strided_slice %299 {offsets = [0, 14, 0], sizes = [2, 1, 96], strides = [1, 1, 1]} : vector<2x16x256xf32> to vector<2x1x96xf32>
    %c0_283 = arith.constant 0 : index
    %c28 = arith.constant 28 : index
    %c0_284 = arith.constant 0 : index
    %329 = vector.load %arg15[%c0_283, %c28, %c0_284] : memref<2x32x96xf32, #tpu.memory_space<vmem>>, vector<2x1x96xf32>
    tpu.vector_store %arg15[%c0_283, %c28, %c0_284], %328 {strides = array<i32>} : memref<2x32x96xf32, #tpu.memory_space<vmem>>, vector<2x1x96xf32>,
    %330 = vector.extract_strided_slice %299 {offsets = [0, 15, 0], sizes = [2, 1, 96], strides = [1, 1, 1]} : vector<2x16x256xf32> to vector<2x1x96xf32>
    %c0_285 = arith.constant 0 : index
    %c30 = arith.constant 30 : index
    %c0_286 = arith.constant 0 : index
    %331 = vector.load %arg15[%c0_285, %c30, %c0_286] : memref<2x32x96xf32, #tpu.memory_space<vmem>>, vector<2x1x96xf32>
    tpu.vector_store %arg15[%c0_285, %c30, %c0_286], %330 {strides = array<i32>} : memref<2x32x96xf32, #tpu.memory_space<vmem>>, vector<2x1x96xf32>,
    %332 = vector.extract_strided_slice %299 {offsets = [0, 0, 128], sizes = [2, 1, 96], strides = [1, 1, 1]} : vector<2x16x256xf32> to vector<2x1x96xf32>
    %c0_287 = arith.constant 0 : index
    %c1_288 = arith.constant 1 : index
    %c0_289 = arith.constant 0 : index
    %333 = vector.load %arg15[%c0_287, %c1_288, %c0_289] : memref<2x32x96xf32, #tpu.memory_space<vmem>>, vector<2x1x96xf32>
    tpu.vector_store %arg15[%c0_287, %c1_288, %c0_289], %332 {strides = array<i32>} : memref<2x32x96xf32, #tpu.memory_space<vmem>>, vector<2x1x96xf32>,
    %334 = vector.extract_strided_slice %299 {offsets = [0, 1, 128], sizes = [2, 1, 96], strides = [1, 1, 1]} : vector<2x16x256xf32> to vector<2x1x96xf32>
    %c0_290 = arith.constant 0 : index
    %c3_291 = arith.constant 3 : index
    %c0_292 = arith.constant 0 : index
    %335 = vector.load %arg15[%c0_290, %c3_291, %c0_292] : memref<2x32x96xf32, #tpu.memory_space<vmem>>, vector<2x1x96xf32>
    tpu.vector_store %arg15[%c0_290, %c3_291, %c0_292], %334 {strides = array<i32>} : memref<2x32x96xf32, #tpu.memory_space<vmem>>, vector<2x1x96xf32>,
    %336 = vector.extract_strided_slice %299 {offsets = [0, 2, 128], sizes = [2, 1, 96], strides = [1, 1, 1]} : vector<2x16x256xf32> to vector<2x1x96xf32>
    %c0_293 = arith.constant 0 : index
    %c5_294 = arith.constant 5 : index
    %c0_295 = arith.constant 0 : index
    %337 = vector.load %arg15[%c0_293, %c5_294, %c0_295] : memref<2x32x96xf32, #tpu.memory_space<vmem>>, vector<2x1x96xf32>
    tpu.vector_store %arg15[%c0_293, %c5_294, %c0_295], %336 {strides = array<i32>} : memref<2x32x96xf32, #tpu.memory_space<vmem>>, vector<2x1x96xf32>,
    %338 = vector.extract_strided_slice %299 {offsets = [0, 3, 128], sizes = [2, 1, 96], strides = [1, 1, 1]} : vector<2x16x256xf32> to vector<2x1x96xf32>
    %c0_296 = arith.constant 0 : index
    %c7_297 = arith.constant 7 : index
    %c0_298 = arith.constant 0 : index
    %339 = vector.load %arg15[%c0_296, %c7_297, %c0_298] : memref<2x32x96xf32, #tpu.memory_space<vmem>>, vector<2x1x96xf32>
    tpu.vector_store %arg15[%c0_296, %c7_297, %c0_298], %338 {strides = array<i32>} : memref<2x32x96xf32, #tpu.memory_space<vmem>>, vector<2x1x96xf32>,
    %340 = vector.extract_strided_slice %299 {offsets = [0, 4, 128], sizes = [2, 1, 96], strides = [1, 1, 1]} : vector<2x16x256xf32> to vector<2x1x96xf32>
    %c0_299 = arith.constant 0 : index
    %c9_300 = arith.constant 9 : index
    %c0_301 = arith.constant 0 : index
    %341 = vector.load %arg15[%c0_299, %c9_300, %c0_301] : memref<2x32x96xf32, #tpu.memory_space<vmem>>, vector<2x1x96xf32>
    tpu.vector_store %arg15[%c0_299, %c9_300, %c0_301], %340 {strides = array<i32>} : memref<2x32x96xf32, #tpu.memory_space<vmem>>, vector<2x1x96xf32>,
    %342 = vector.extract_strided_slice %299 {offsets = [0, 5, 128], sizes = [2, 1, 96], strides = [1, 1, 1]} : vector<2x16x256xf32> to vector<2x1x96xf32>
    %c0_302 = arith.constant 0 : index
    %c11_303 = arith.constant 11 : index
    %c0_304 = arith.constant 0 : index
    %343 = vector.load %arg15[%c0_302, %c11_303, %c0_304] : memref<2x32x96xf32, #tpu.memory_space<vmem>>, vector<2x1x96xf32>
    tpu.vector_store %arg15[%c0_302, %c11_303, %c0_304], %342 {strides = array<i32>} : memref<2x32x96xf32, #tpu.memory_space<vmem>>, vector<2x1x96xf32>,
    %344 = vector.extract_strided_slice %299 {offsets = [0, 6, 128], sizes = [2, 1, 96], strides = [1, 1, 1]} : vector<2x16x256xf32> to vector<2x1x96xf32>
    %c0_305 = arith.constant 0 : index
    %c13_306 = arith.constant 13 : index
    %c0_307 = arith.constant 0 : index
    %345 = vector.load %arg15[%c0_305, %c13_306, %c0_307] : memref<2x32x96xf32, #tpu.memory_space<vmem>>, vector<2x1x96xf32>
    tpu.vector_store %arg15[%c0_305, %c13_306, %c0_307], %344 {strides = array<i32>} : memref<2x32x96xf32, #tpu.memory_space<vmem>>, vector<2x1x96xf32>,
    %346 = vector.extract_strided_slice %299 {offsets = [0, 7, 128], sizes = [2, 1, 96], strides = [1, 1, 1]} : vector<2x16x256xf32> to vector<2x1x96xf32>
    %c0_308 = arith.constant 0 : index
    %c15_309 = arith.constant 15 : index
    %c0_310 = arith.constant 0 : index
    %347 = vector.load %arg15[%c0_308, %c15_309, %c0_310] : memref<2x32x96xf32, #tpu.memory_space<vmem>>, vector<2x1x96xf32>
    tpu.vector_store %arg15[%c0_308, %c15_309, %c0_310], %346 {strides = array<i32>} : memref<2x32x96xf32, #tpu.memory_space<vmem>>, vector<2x1x96xf32>,
    %348 = vector.extract_strided_slice %299 {offsets = [0, 8, 128], sizes = [2, 1, 96], strides = [1, 1, 1]} : vector<2x16x256xf32> to vector<2x1x96xf32>
    %c0_311 = arith.constant 0 : index
    %c17_312 = arith.constant 17 : index
    %c0_313 = arith.constant 0 : index
    %349 = vector.load %arg15[%c0_311, %c17_312, %c0_313] : memref<2x32x96xf32, #tpu.memory_space<vmem>>, vector<2x1x96xf32>
    tpu.vector_store %arg15[%c0_311, %c17_312, %c0_313], %348 {strides = array<i32>} : memref<2x32x96xf32, #tpu.memory_space<vmem>>, vector<2x1x96xf32>,
    %350 = vector.extract_strided_slice %299 {offsets = [0, 9, 128], sizes = [2, 1, 96], strides = [1, 1, 1]} : vector<2x16x256xf32> to vector<2x1x96xf32>
    %c0_314 = arith.constant 0 : index
    %c19_315 = arith.constant 19 : index
    %c0_316 = arith.constant 0 : index
    %351 = vector.load %arg15[%c0_314, %c19_315, %c0_316] : memref<2x32x96xf32, #tpu.memory_space<vmem>>, vector<2x1x96xf32>
    tpu.vector_store %arg15[%c0_314, %c19_315, %c0_316], %350 {strides = array<i32>} : memref<2x32x96xf32, #tpu.memory_space<vmem>>, vector<2x1x96xf32>,
    %352 = vector.extract_strided_slice %299 {offsets = [0, 10, 128], sizes = [2, 1, 96], strides = [1, 1, 1]} : vector<2x16x256xf32> to vector<2x1x96xf32>
    %c0_317 = arith.constant 0 : index
    %c21_318 = arith.constant 21 : index
    %c0_319 = arith.constant 0 : index
    %353 = vector.load %arg15[%c0_317, %c21_318, %c0_319] : memref<2x32x96xf32, #tpu.memory_space<vmem>>, vector<2x1x96xf32>
    tpu.vector_store %arg15[%c0_317, %c21_318, %c0_319], %352 {strides = array<i32>} : memref<2x32x96xf32, #tpu.memory_space<vmem>>, vector<2x1x96xf32>,
    %354 = vector.extract_strided_slice %299 {offsets = [0, 11, 128], sizes = [2, 1, 96], strides = [1, 1, 1]} : vector<2x16x256xf32> to vector<2x1x96xf32>
    %c0_320 = arith.constant 0 : index
    %c23_321 = arith.constant 23 : index
    %c0_322 = arith.constant 0 : index
    %355 = vector.load %arg15[%c0_320, %c23_321, %c0_322] : memref<2x32x96xf32, #tpu.memory_space<vmem>>, vector<2x1x96xf32>
    tpu.vector_store %arg15[%c0_320, %c23_321, %c0_322], %354 {strides = array<i32>} : memref<2x32x96xf32, #tpu.memory_space<vmem>>, vector<2x1x96xf32>,
    %356 = vector.extract_strided_slice %299 {offsets = [0, 12, 128], sizes = [2, 1, 96], strides = [1, 1, 1]} : vector<2x16x256xf32> to vector<2x1x96xf32>
    %c0_323 = arith.constant 0 : index
    %c25 = arith.constant 25 : index
    %c0_324 = arith.constant 0 : index
    %357 = vector.load %arg15[%c0_323, %c25, %c0_324] : memref<2x32x96xf32, #tpu.memory_space<vmem>>, vector<2x1x96xf32>
    tpu.vector_store %arg15[%c0_323, %c25, %c0_324], %356 {strides = array<i32>} : memref<2x32x96xf32, #tpu.memory_space<vmem>>, vector<2x1x96xf32>,
    %358 = vector.extract_strided_slice %299 {offsets = [0, 13, 128], sizes = [2, 1, 96], strides = [1, 1, 1]} : vector<2x16x256xf32> to vector<2x1x96xf32>
    %c0_325 = arith.constant 0 : index
    %c27 = arith.constant 27 : index
    %c0_326 = arith.constant 0 : index
    %359 = vector.load %arg15[%c0_325, %c27, %c0_326] : memref<2x32x96xf32, #tpu.memory_space<vmem>>, vector<2x1x96xf32>
    tpu.vector_store %arg15[%c0_325, %c27, %c0_326], %358 {strides = array<i32>} : memref<2x32x96xf32, #tpu.memory_space<vmem>>, vector<2x1x96xf32>,
    %360 = vector.extract_strided_slice %299 {offsets = [0, 14, 128], sizes = [2, 1, 96], strides = [1, 1, 1]} : vector<2x16x256xf32> to vector<2x1x96xf32>
    %c0_327 = arith.constant 0 : index
    %c29 = arith.constant 29 : index
    %c0_328 = arith.constant 0 : index
    %361 = vector.load %arg15[%c0_327, %c29, %c0_328] : memref<2x32x96xf32, #tpu.memory_space<vmem>>, vector<2x1x96xf32>
    tpu.vector_store %arg15[%c0_327, %c29, %c0_328], %360 {strides = array<i32>} : memref<2x32x96xf32, #tpu.memory_space<vmem>>, vector<2x1x96xf32>,
    %362 = vector.extract_strided_slice %299 {offsets = [0, 15, 128], sizes = [2, 1, 96], strides = [1, 1, 1]} : vector<2x16x256xf32> to vector<2x1x96xf32>
    %c0_329 = arith.constant 0 : index
    %c31 = arith.constant 31 : index
    %c0_330 = arith.constant 0 : index
    %363 = vector.load %arg15[%c0_329, %c31, %c0_330] : memref<2x32x96xf32, #tpu.memory_space<vmem>>, vector<2x1x96xf32>
    tpu.vector_store %arg15[%c0_329, %c31, %c0_330], %362 {strides = array<i32>} : memref<2x32x96xf32, #tpu.memory_space<vmem>>, vector<2x1x96xf32>,
    return
  }
}

</mosaic_0001>

<bundles_post_ra>
// kernel: decoder_forward.1
= control target key start
LH: loop header
LB: loop body
LE: loop exit
PB: predicated region body
PF: predicated region fallthrough
CT: control target
= control target key end

     0   :  { %20 = vsyncpa [#allocation7], 0  ;;  %s5858_s0 = inlined_call_operand.vmem [shape: f32[16,64], index: 0, kind: input, shape index: {}]   ;;  %s5859_s1 = inlined_call_operand.hbm [shape: f32[64,128], index: 1, kind: input, shape index: {}]   ;;  %s5860_s2 = inlined_call_operand.hbm [shape: f32[6,16], index: 2, kind: input, shape index: {}]   ;;  %s5861_s3 = inlined_call_operand.hbm [shape: f32[6,16], index: 3, kind: input, shape index: {}]   ;;  %s5862_s4 = inlined_call_operand.vmem [shape: f32[3,128,128], index: 4, kind: input, shape index: {}]   ;;  %s5863_s5 = inlined_call_operand.vmem [shape: f32[128,128], index: 5, kind: input, shape index: {}]   ;;  %s5864_s6 = inlined_call_operand.vmem [shape: f32[3,128,128], index: 6, kind: input, shape index: {}]   ;;  %s5865_s7 = inlined_call_operand.vmem [shape: f32[128,128], index: 7, kind: input, shape index: {}]   ;;  %s5866_s8 = inlined_call_operand.hbm [shape: f32[3,128,512], index: 8, kind: input, shape index: {}]   ;;  %s5867_s9 = inlined_call_operand.hbm [shape: f32[3,256,256], index: 9, kind: input, shape index: {}]   ;;  %s5868_s10 = inlined_call_operand.hbm [shape: f32[1,256], index: 10, kind: input, shape index: {}]   ;;  %s5869_s11 = inlined_call_operand.vmem [shape: f32[128,16], index: 11, kind: input, shape index: {}]   ;;  %s5870_s12 = inlined_call_operand.vmem [shape: f32[16,128], index: 12, kind: input, shape index: {}]   ;;  %s5871_s13 = inlined_call_operand.vmem [shape: f32[512,16], index: 13, kind: input, shape index: {}]   ;;  %s5872_s14 = inlined_call_operand.hbm [shape: f32[16,512], index: 14, kind: input, shape index: {}]   ;;  %s5873_s15 = inlined_call_operand.vmem [shape: f32[2,32,96], index: 15, kind: output, shape index: {}]  }
   0x1   :  { %21 = vsyncpa [#allocation9], 0 }
   0x2   :  { %22 = vsyncpa [#allocation12], 0  ;;  %s44_s20 = sshll.u32 %s5860_s2, 4  ;;  %s45_s20 = int_to_ptr.hbm [resolvable:$true] %s44_s20 }
   0x3   :  { %23 = vsyncpa [#allocation15], 0  ;;  %s3750_s21 = smov [#allocation8]   ;;  %s73_s25 = sshll.u32 %s5866_s8, 4  ;;  %s74_s25 = int_to_ptr.hbm [resolvable:$true] %s73_s25 }
   0x4   :  { %s46_s22 = sshll.u32 %s3750_s21, 4  ;;  %s3751_s26 = smov [#allocation11]   ;;  %s47_s22 = int_to_ptr.vmem [resolvable:$true] %s46_s22 }
   0x5   :  { %49 = dma.hbm_to_vmem [thread:$0]  %s45_s20, 128, %s47_s22, [#allocation9]  }
   0x6   :  { %s75_s27 = sshll.u32 %s3751_s26, 4  ;;  %s3752_s28 = smov 512   ;;  %s76_s27 = int_to_ptr.vmem [resolvable:$true] %s75_s27 }
   0x7   :  { %s3753_s29 = smov 32   ;;  %s100_s16 = sshll.u32 %s5868_s10, 4  ;;  %s101_s16 = int_to_ptr.hbm [resolvable:$true] %s100_s16 }
   0x8   :  { %81 = dma.hbm_to_vmem [thread:$0]  %s74_s25, 24576, %s76_s27, [#allocation12], %s3752_s28, %s3752_s28, %s3753_s29  }
   0x9   :  { %s3754_s17 = smov [#allocation14]   ;;  %s30_s20 = sshll.u32 %s5859_s1, 4  ;;  %s31_s20 = int_to_ptr.hbm [resolvable:$true] %s30_s20 }
   0xa   :  { %s102_s18 = sshll.u32 %s3754_s17, 4  ;;  %s3755_s21 = smov [#allocation6]   ;;  %s103_s18 = int_to_ptr.vmem [resolvable:$true] %s102_s18 }
   0xb   :  { %105 = dma.hbm_to_vmem [thread:$0]  %s101_s16, 32, %s103_s18, [#allocation15]  }
   0xc   :  { %s32_s22 = sshll.u32 %s3755_s21, 4  ;;  %s3756_s23 = smov 128   ;;  %s33_s22 = int_to_ptr.vmem [resolvable:$true] %s32_s22 }
   0xd   :  { %s3757_s24 = smov 8   ;;  %s55_s10 = sshll.u32 %s5861_s3, 4  ;;  %s56_s10 = int_to_ptr.hbm [resolvable:$true] %s55_s10 }
   0xe   :  { %38 = dma.hbm_to_vmem [thread:$0]  %s31_s20, 1024, %s33_s22, [#allocation7], %s3756_s23, %s3756_s23, %s3757_s24  }
   0xf   :  { %s3758_s27 = smov [#allocation10]   ;;  %s86_s1 = sshll.u32 %s5867_s9, 4  ;;  %s87_s1 = int_to_ptr.hbm [resolvable:$true] %s86_s1 }
  0x10   :  { %s57_s2 = sshll.u32 %s3758_s27, 4  ;;  %s3759_s16 = smov [#allocation13]   ;;  %s58_s2 = int_to_ptr.vmem [resolvable:$true] %s57_s2 }
  0x11   :  { %60 = dma.hbm_to_vmem [thread:$0]  %s56_s10, 128, %s58_s2, [#allocation9]  }
  0x12   :  { %s88_s18 = sshll.u32 %s3759_s16, 4  ;;  %s3760_s8 = smov 256   ;;  %s89_s18 = int_to_ptr.vmem [resolvable:$true] %s88_s18 }
  0x13   :  { %s3761_s19 = smov 16   ;;  %s116_s3 = sshll.u32 %s5872_s14, 4  ;;  %s117_s3 = int_to_ptr.hbm [resolvable:$true] %s116_s3 }
  0x14   :  { %94 = dma.hbm_to_vmem [thread:$0]  %s87_s1, 24576, %s89_s18, [#allocation12], %s3760_s8, %s3760_s8, %s3761_s19  }
  0x15   :  { %s3762_s22 = smov [#allocation16]  }
  0x16   :  { %s118_s23 = sshll.u32 %s3762_s22, 4  ;;  %s119_s23 = int_to_ptr.vmem [resolvable:$true] %s118_s23 }
  0x17   :  { %124 = dma.hbm_to_vmem [thread:$0]  %s117_s3, 1024, %s119_s23, [#allocation15], %s3752_s28, %s3752_s28, %s3753_s29  }
  0x18   :  { %3742 = dma.done.wait [#allocation7], 1024  }
  0x19   :  { %3743 = vsyncadd [#allocation7], 4294966272 }
  0x1a   :  { %3744 = dma.done.wait [#allocation9], 256  }
  0x1b   :  { %3745 = vsyncadd [#allocation9], 4294967040 }
  0x1c   :  { %3746 = dma.done.wait [#allocation12], 49152  }
  0x1d   :  { %3747 = vsyncadd [#allocation12], 4294918144 }
  0x1e   :  { %3748 = dma.done.wait [#allocation15], 1056  }
  0x1f   :  { %3749 = vsyncadd [#allocation15], 4294966240  ;;  %v286_v0 = vld [vmem:[#allocation6 + $0x38] sm:$0xff]  ;;  %v285_v1 = vld [vmem:[#allocation6 + $0x30] sm:$0xff]  ;;  %vm287_vm0 = vcmask 523264   ;;  %vm347_vm1 = vcmask 130048  }
  0x20   :  { %302 = vmatpush.msra.mxu0 %v286_v0  ;;  %v284_v2 = vld [vmem:[#allocation6 + $0x28] sm:$0xff]  ;;  %v3874_v3 = vld [vmem:[%s5869_s11 + $0x78] sm:$0xff]  ;;  %v3879_v4 = vld [vmem:[%s5869_s11 + $0x70] sm:$0xff] }
  0x21   :  { %v283_v5 = vld [vmem:[#allocation6 + $0x20] sm:$0xff]  ;;  %326 = vmatpush.msra.mxu1 %v3874_v3  ;;  %383 = vmatpush.msra.mxu3 %v3874_v3  ;;  %v3886_v6 = vld [vmem:[%s5869_s11 + $0x68] sm:$0xff]  ;;  %v282_v7 = vld [vmem:[#allocation6 + $0x18] sm:$0xff] }
  0x22   :  { %303 = vmatpush.msra.mxu0 %v285_v1  ;;  %v3893_v8 = vld [vmem:[%s5869_s11 + $0x60] sm:$0xff]  ;;  %v281_v9 = vld [vmem:[#allocation6 + $0x10] sm:$0xff]  ;;  %v279_v11 = vld [vmem:[#allocation6] sm:$0xff] }
  0x23   :  { %327 = vmatpush.msra.mxu1 %v3879_v4  ;;  %384 = vmatpush.msra.mxu3 %v3879_v4  ;;  %v280_v10 = vld [vmem:[#allocation6 + $0x8] sm:$0xff]  ;;  %v278_v13 = vld [vmem:[%s5858_s0 + $0x8] sm:$0xff]  ;;  %v3908_v14 = vld [vmem:[%s5869_s11 + $0x58] sm:$0xff] }
  0x24   :  { %304 = vmatpush.msra.mxu0 %v284_v2  ;;  %v277_v12 = vld [vmem:[%s5858_s0] sm:$0xff]  ;;  %v3914_v15 = vld [vmem:[%s5869_s11 + $0x50] sm:$0xff]  ;;  %v3920_v16 = vld [vmem:[%s5869_s11 + $0x48] sm:$0xff] }
  0x25   :  { %328 = vmatpush.msra.mxu1 %v3886_v6  ;;  %385 = vmatpush.msra.mxu3 %v3886_v6  ;;  %v3927_v17 = vld [vmem:[%s5869_s11 + $0x40] sm:$0xff]  ;;  %v3936_v18 = vld [vmem:[%s5869_s11 + $0x38] sm:$0xff]  ;;  %v3943_v19 = vld [vmem:[%s5869_s11 + $0x30] sm:$0xff] }
  0x26   :  { %305 = vmatpush.msra.mxu0 %v283_v5  ;;  %v3950_v20 = vld [vmem:[%s5869_s11 + $0x28] sm:$0xff]  ;;  %v3955_v21 = vld [vmem:[%s5869_s11 + $0x20] sm:$0xff]  ;;  %v3962_v22 = vld [vmem:[%s5869_s11 + $0x18] sm:$0xff] }
  0x27   :  { %329 = vmatpush.msra.mxu1 %v3893_v8  ;;  %386 = vmatpush.msra.mxu3 %v3893_v8  ;;  %v3969_v23 = vld [vmem:[%s5869_s11 + $0x10] sm:$0xff]  ;;  %v3976_v24 = vld [vmem:[%s5869_s11 + $0x8] sm:$0xff]  ;;  %v3983_v25 = vld [vmem:[%s5869_s11] sm:$0xff] }
  0x28   :  { %306 = vmatpush.msra.mxu0 %v282_v7  ;;  %v4008_v35 = vld [vmem:[%s5870_s12 + $0x8] sm:$0xff]  ;;  %v4014_v36 = vld [vmem:[%s5870_s12] sm:$0xff]  ;;  %v3457_v54 = vld [vmem:[%s5862_s4 + $0xf8] sm:$0xff] }
  0x29   :  { %330 = vmatpush.msra.mxu1 %v3908_v14  ;;  %387 = vmatpush.msra.mxu3 %v3908_v14  ;;  %v3473_v55 = vld [vmem:[%s5862_s4 + $0x178] sm:$0xff]  ;;  %v3456_v56 = vld [vmem:[%s5862_s4 + $0xf0] sm:$0xff]  ;;  %v3455_v59 = vld [vmem:[%s5862_s4 + $0xe8] sm:$0xff] }
  0x2a   :  { %307 = vmatpush.msra.mxu0 %v281_v9  ;;  %365 = vmatpush.msra.mxu2 %v4008_v35  ;;  %v3472_v57 = vld [vmem:[%s5862_s4 + $0x170] sm:$0xff]  ;;  %v3471_v60 = vld [vmem:[%s5862_s4 + $0x168] sm:$0xff]  ;;  %v3454_v61 = vld [vmem:[%s5862_s4 + $0xe0] sm:$0xff] }
  0x2b   :  { %331 = vmatpush.msra.mxu1 %v3914_v15  ;;  %388 = vmatpush.msra.mxu3 %v3914_v15  ;;  %v3470_v62 = vld [vmem:[%s5862_s4 + $0x160] sm:$0xff]  ;;  %v317_v9 = vld [vmem:[#allocation8] sm:$0x1] }
  0x2c   :  { %308 = vmatpush.msra.mxu0 %v280_v10  ;;  %366 = vmatpush.msra.mxu2 %v4014_v36 }
  0x2d   :  { %332 = vmatpush.msra.mxu1 %v3920_v16  ;;  %389 = vmatpush.msra.mxu3 %v3920_v16 }
  0x2e   :  { %309 = vmatpush.msra.mxu0 %v279_v11  ;;  %433 = vmatpush.msrb.mxu2 %v4008_v35 }
  0x2f   :  { %3437 = vmatmul.msk.f32.vlgmr.msra.gmra.mxu0 %vm287_vm0, %v277_v12  ;;  %333 = vmatpush.msra.mxu1 %v3927_v17  ;;  %v489_v12 = vld [vmem:[%s5862_s4 + $0x78] sm:$0xff] }
  0x30   :  { %390 = vmatpush.msra.mxu3 %v3927_v17  ;;  %434 = vmatpush.msrb.mxu2 %v4014_v36 }
  0x31   :  { %334 = vmatpush.msra.mxu1 %v3936_v18  ;;  %509 = vmatpush.msrb.mxu0 %v3457_v54  ;;  %v3464_v54 = vld [vmem:[%s5862_s4 + $0x130] sm:$0xff] }
  0x32   :  { %391 = vmatpush.msra.mxu3 %v3936_v18 }
  0x33   :  { %335 = vmatpush.msra.mxu1 %v3943_v19  ;;  %510 = vmatpush.msrb.mxu0 %v3456_v56  ;;  %v479_v56 = vld [vmem:[%s5862_s4 + $0x28] sm:$0xff] }
  0x34   :  { %392 = vmatpush.msra.mxu3 %v3943_v19 }
  0x35   :  { %336 = vmatpush.msra.mxu1 %v3950_v20  ;;  %511 = vmatpush.msrb.mxu0 %v3455_v59  ;;  %v478_v59 = vld [vmem:[%s5862_s4 + $0x20] sm:$0xff] }
  0x36   :  { %393 = vmatpush.msra.mxu3 %v3950_v20 }
  0x37   :  { %3438 = vmatmul.msk.f32.gmra.mxu0 %vm287_vm0, %v278_v13  ;;  %337 = vmatpush.msra.mxu1 %v3955_v21  ;;  %v488_v13 = vld [vmem:[%s5862_s4 + $0x70] sm:$0xff] }
  0x38   :  { %394 = vmatpush.msra.mxu3 %v3955_v21  ;;  %512 = vmatpush.msrb.mxu0 %v3454_v61  ;;  %v3442_v61 = vld [vmem:[%s5862_s4 + $0x80] sm:$0xff] }
  0x39   :  { %338 = vmatpush.msra.mxu1 %v3962_v22 }
  0x3a   :  { %395 = vmatpush.msra.mxu3 %v3962_v22 }
  0x3b   :  { %339 = vmatpush.msra.mxu1 %v3969_v23 }
  0x3c   :  { %396 = vmatpush.msra.mxu3 %v3969_v23 }
  0x3d   :  { %340 = vmatpush.msra.mxu1 %v3976_v24 }
  0x3e   :  { %397 = vmatpush.msra.mxu3 %v3976_v24 }
  0x3f   :  { %341 = vmatpush.msra.mxu1 %v3983_v25 }
  0x40   :  { %398 = vmatpush.msra.mxu3 %v3983_v25 }
  0x41   :  { %574 = vmatpush.msrb.mxu1 %v3473_v55  ;;  %v3444_v55 = vld [vmem:[%s5862_s4 + $0x90] sm:$0xff] }
  0x42   :  { %608 = vmatpush.msrb.mxu3 %v3874_v3 }
  0x43   :  { %575 = vmatpush.msrb.mxu1 %v3472_v57  ;;  %v3463_v57 = vld [vmem:[%s5862_s4 + $0x128] sm:$0xff] }
  0x44   :  { %609 = vmatpush.msrb.mxu3 %v3879_v4 }
  0x45   :  { %576 = vmatpush.msrb.mxu1 %v3471_v60  ;;  %v3462_v60 = vld [vmem:[%s5862_s4 + $0x120] sm:$0xff] }
  0x46   :  { %610 = vmatpush.msrb.mxu3 %v3886_v6 }
  0x47   :  { %577 = vmatpush.msrb.mxu1 %v3470_v62  ;;  %v477_v62 = vld [vmem:[%s5862_s4 + $0x18] sm:$0xff] }
  0x48   :  { %611 = vmatpush.msrb.mxu3 %v3893_v8 }
  0x4a   :  { %612 = vmatpush.msrb.mxu3 %v3908_v14 }
  0x4c   :  { %613 = vmatpush.msrb.mxu3 %v3914_v15 }
  0x4e   :  { %614 = vmatpush.msrb.mxu3 %v3920_v16 }
  0x50   :  { %615 = vmatpush.msrb.mxu3 %v3927_v17 }
  0x52   :  { %616 = vmatpush.msrb.mxu3 %v3936_v18 }
  0x54   :  { %617 = vmatpush.msrb.mxu3 %v3943_v19 }
  0x56   :  { %618 = vmatpush.msrb.mxu3 %v3950_v20 }
  0x58   :  { %619 = vmatpush.msrb.mxu3 %v3955_v21 }
  0x5a   :  { %620 = vmatpush.msrb.mxu3 %v3962_v22 }
  0x5c   :  { %621 = vmatpush.msrb.mxu3 %v3969_v23 }
  0x5e   :  { %622 = vmatpush.msrb.mxu3 %v3976_v24 }
  0x60   :  { %623 = vmatpush.msrb.mxu3 %v3983_v25 }
  0xac   :  { %v311_v26 = vpop.f32.mrf.mxu0 }
  0xb4   :  { %v314_v27 = vpop.f32.mrf.mxu0 }
  0xb5   :  { %v319_v28 = vadd.f32 %v314_v27, %v311_v26 }
  0xb7   :  { %v320_v29 = vrot.slane %v319_v28, 4 }
  0xb9   :  { %v321_v30 = vadd.f32 %v320_v29, %v319_v28  ;;  %v318_v28 = vld [vmem:[#allocation10] sm:$0x1]  ;;  %v3453_v29 = vld [vmem:[%s5862_s4 + $0xd8] sm:$0xff] }
  0xba   :  { %513 = vmatpush.msrb.mxu0 %v3453_v29 }
  0xbb   :  { %v322_v31 = vrot.slane %v321_v30, 2 }
  0xbd   :  { %v323_v32 = vadd.f32 %v322_v31, %v321_v30  ;;  %v3452_v30 = vld [vmem:[%s5862_s4 + $0xd0] sm:$0xff]  ;;  %v3451_v31 = vld [vmem:[%s5862_s4 + $0xc8] sm:$0xff] }
  0xbe   :  { %514 = vmatpush.msrb.mxu0 %v3452_v30 }
  0xbf   :  { %v324_v33 = vrot.slane %v323_v32, 1 }
  0xc0   :  { %515 = vmatpush.msrb.mxu0 %v3451_v31 }
  0xc1   :  { %v325_v34 = vadd.f32 %v324_v33, %v323_v32  ;;  %v3450_v32 = vld [vmem:[%s5862_s4 + $0xc0] sm:$0xff]  ;;  %v485_v33 = vld [vmem:[%s5862_s4 + $0x58] sm:$0xff] }
  0xc2   :  { %516 = vmatpush.msrb.mxu0 %v3450_v32 }
  0xc3   :  { %342 = vmatmul.f32.vlgmr.msra.gmra.mxu1 %v325_v34  ;;  %v3469_v34 = vld [vmem:[%s5862_s4 + $0x158] sm:$0xff] }
  0xc4   :  { %578 = vmatpush.msrb.mxu1 %v3469_v34 }
 0x140   :  { %v343_v37 = vpop.f32.mrf.mxu1 }
 0x141   :  { %v346_v38 = vmul.f32 0.0078125, %v343_v37  ;;  %v3449_v37 = vld [vmem:[%s5862_s4 + $0xb8] sm:$0xff] }
 0x142   :  { %517 = vmatpush.msrb.mxu0 %v3449_v37 }
 0x143   :  { %3439 = vmatmul.msk.f32.vlgmr.msra.gmra.mxu2 %vm347_vm1, %v346_v38  ;;  %v484_v38 = vld [vmem:[%s5862_s4 + $0x50] sm:$0xff] }
 0x144   :  { %456 = vmatpush.msra.mxu2 %v4008_v35 }
 0x146   :  { %457 = vmatpush.msra.mxu2 %v4014_v36 }
 0x1c6   :  { %v368_v39 = vpop.f32.mrf.mxu2 }
 0x1c7   :  { %v371_v40 = vperm.slane %v368_v39, 0  ;;  %v3468_v39 = vld [vmem:[%s5862_s4 + $0x150] sm:$0xff] }
 0x1c8   :  { %579 = vmatpush.msrb.mxu1 %v3468_v39 }
 0x1c9   :  { %v4022_v41 = vsub.f32 %v311_v26, %v371_v40  ;;  %v4024_v42 = vsub.f32 %v314_v27, %v371_v40  ;;  %v487_v26 = vld [vmem:[%s5862_s4 + $0x68] sm:$0xff]  ;;  %v486_v27 = vld [vmem:[%s5862_s4 + $0x60] sm:$0xff]  ;;  %v3448_v40 = vld [vmem:[%s5862_s4 + $0xb0] sm:$0xff] }
 0x1ca   :  { %518 = vmatpush.msrb.mxu0 %v3448_v40 }
 0x1cb   :  { %v374_v43 = vmul.f32 %v4022_v41, %v4022_v41  ;;  %v375_v44 = vmul.f32 %v4024_v42, %v4024_v42 }
 0x1cd   :  { %v376_v45 = vadd.f32 %v375_v44, %v374_v43  ;;  %v483_v43 = vld [vmem:[%s5862_s4 + $0x48] sm:$0xff] }
 0x1ce   :  { %v3467_v44 = vld [vmem:[%s5862_s4 + $0x148] sm:$0xff] }
 0x1cf   :  { %v377_v46 = vrot.slane %v376_v45, 4  ;;  %580 = vmatpush.msrb.mxu1 %v3467_v44 }
 0x1d1   :  { %v378_v47 = vadd.f32 %v377_v46, %v376_v45  ;;  %v482_v45 = vld [vmem:[%s5862_s4 + $0x40] sm:$0xff] }
 0x1d2   :  { %v3466_v46 = vld [vmem:[%s5862_s4 + $0x140] sm:$0xff] }
 0x1d3   :  { %v379_v48 = vrot.slane %v378_v47, 2  ;;  %581 = vmatpush.msrb.mxu1 %v3466_v46 }
 0x1d5   :  { %v380_v49 = vadd.f32 %v379_v48, %v378_v47  ;;  %v3763_v47 = vmov 0.0   ;;  %v3447_v48 = vld [vmem:[%s5862_s4 + $0xa8] sm:$0xff] }
 0x1d6   :  { %243 = vst [vmem:[#allocation2] sm:$0xff] %v3763_v47  ;;  %519 = vmatpush.msrb.mxu0 %v3447_v48 }
 0x1d7   :  { %v381_v50 = vrot.slane %v380_v49, 1  ;;  %245 = vst [vmem:[#allocation2 + $0x10] sm:$0xff] %v3763_v47 }
 0x1d8   :  { %246 = vst [vmem:[#allocation2 + $0x18] sm:$0xff] %v3763_v47 }
 0x1d9   :  { %v382_v51 = vadd.f32 %v381_v50, %v380_v49  ;;  %v3446_v49 = vld [vmem:[%s5862_s4 + $0xa0] sm:$0xff]  ;;  %248 = vst [vmem:[#allocation2 + $0x28] sm:$0xff] %v3763_v47  ;;  %v481_v50 = vld [vmem:[%s5862_s4 + $0x38] sm:$0xff] }
 0x1da   :  { %520 = vmatpush.msrb.mxu0 %v3446_v49  ;;  %249 = vst [vmem:[#allocation3] sm:$0xff] %v3763_v47 }
 0x1db   :  { %399 = vmatmul.f32.vlgmr.msra.gmra.mxu3 %v382_v51  ;;  %v3465_v51 = vld [vmem:[%s5862_s4 + $0x138] sm:$0xff]  ;;  %251 = vst [vmem:[#allocation3 + $0x10] sm:$0xff] %v3763_v47 }
 0x1dc   :  { %737 = vmatpush.msra.mxu3 %v4008_v35  ;;  %582 = vmatpush.msrb.mxu1 %v3465_v51  ;;  %252 = vst [vmem:[#allocation3 + $0x18] sm:$0xff] %v3763_v47 }
 0x1dd   :  { %254 = vst [vmem:[#allocation3 + $0x28] sm:$0xff] %v3763_v47 }
 0x1de   :  { %738 = vmatpush.msra.mxu3 %v4014_v36  ;;  %583 = vmatpush.msrb.mxu1 %v3464_v54  ;;  %255 = vst [vmem:[#allocation4] sm:$0xff] %v3763_v47 }
 0x1df   :  { %257 = vst [vmem:[#allocation4 + $0x10] sm:$0xff] %v3763_v47 }
 0x1e0   :  { %584 = vmatpush.msrb.mxu1 %v3463_v57  ;;  %258 = vst [vmem:[#allocation4 + $0x18] sm:$0xff] %v3763_v47 }
 0x1e1   :  { %260 = vst [vmem:[#allocation4 + $0x28] sm:$0xff] %v3763_v47 }
 0x1e2   :  { %585 = vmatpush.msrb.mxu1 %v3462_v60  ;;  %261 = vst [vmem:[#allocation5] sm:$0xff] %v3763_v47 }
 0x1e3   :  { %262 = vst [vmem:[#allocation5 + $0x8] sm:$0xff] %v3763_v47 }
 0x1e4   :  { %263 = vst [vmem:[#allocation5 + $0x10] sm:$0xff] %v3763_v47 }
 0x1e5   :  { %264 = vst [vmem:[#allocation5 + $0x18] sm:$0xff] %v3763_v47 }
 0x1e6   :  { %265 = vst [vmem:[#allocation5 + $0x20] sm:$0xff] %v3763_v47 }
 0x1e7   :  { %266 = vst [vmem:[#allocation5 + $0x28] sm:$0xff] %v3763_v47 }
 0x1e8   :  { %267 = vst [vmem:[#allocation5 + $0x30] sm:$0xff] %v3763_v47 }
 0x1e9   :  { %268 = vst [vmem:[#allocation5 + $0x38] sm:$0xff] %v3763_v47 }
 0x1ea   :  { %269 = vst [vmem:[#allocation5 + $0x40] sm:$0xff] %v3763_v47 }
 0x1eb   :  { %270 = vst [vmem:[#allocation5 + $0x48] sm:$0xff] %v3763_v47 }
 0x1ec   :  { %271 = vst [vmem:[#allocation5 + $0x50] sm:$0xff] %v3763_v47 }
 0x1ed   :  { %272 = vst [vmem:[#allocation5 + $0x58] sm:$0xff] %v3763_v47 }
 0x1ee   :  { %273 = vst [vmem:[#allocation5 + $0x60] sm:$0xff] %v3763_v47 }
 0x1ef   :  { %274 = vst [vmem:[#allocation5 + $0x68] sm:$0xff] %v3763_v47 }
 0x1f0   :  { %275 = vst [vmem:[#allocation5 + $0x70] sm:$0xff] %v3763_v47 }
 0x1f1   :  { %276 = vst [vmem:[#allocation5 + $0x78] sm:$0xff] %v3763_v47 }
 0x25e   :  { %v400_v52 = vpop.f32.mrf.mxu3 }
 0x25f   :  { %v403_v53 = vmul.f32 0.0078125, %v400_v52  ;;  %v3445_v52 = vld [vmem:[%s5862_s4 + $0x98] sm:$0xff] }
 0x260   :  { %521 = vmatpush.msrb.mxu0 %v3445_v52 }
 0x261   :  { %v404_v58 = vadd.f32 1e-05, %v403_v53  ;;  %v480_v53 = vld [vmem:[%s5862_s4 + $0x30] sm:$0xff] }
 0x262   :  { %522 = vmatpush.msrb.mxu0 %v3444_v55 }
 0x263   :  { %3544 = vrsqrt.f32 %v404_v58  ;;  %vm411_vm3 = vweird.f32 %v404_v58 }
 0x269   :  { %v3545_v63 = vpop.eup %3544 }
 0x26a   :  { %v406_v0 = vmul.f32 %v3545_v63, %v404_v58  ;;  %vm412_vm2 = vweird.f32 %v3545_v63  ;;  %v3443_v58 = vld [vmem:[%s5862_s4 + $0x88] sm:$0xff] }
 0x26b   :  { %vm413_vm4 = vmor %vm411_vm3, %vm412_vm2  ;;  %523 = vmatpush.msrb.mxu0 %v3443_v58 }
 0x26c   :  { %v407_v1 = vmul.f32 %v3545_v63, %v406_v0  ;;  %v476_v0 = vld [vmem:[%s5862_s4 + $0x10] sm:$0xff] }
 0x26d   :  { %524 = vmatpush.msrb.mxu0 %v3442_v61 }
 0x26e   :  { %v408_v2 = vmul.f32 0.5, %v407_v1  ;;  %v3460_v1 = vld [vmem:[%s5862_s4 + $0x110] sm:$0xff] }
 0x26f   :  { %646 = vmatpush.msra.mxu0 %v4008_v35 }
 0x270   :  { %v409_v5 = vsub.f32 1.5, %v408_v2  ;;  %v475_v2 = vld [vmem:[%s5862_s4 + $0x8] sm:$0xff] }
 0x271   :  { %647 = vmatpush.msra.mxu0 %v4014_v36 }
 0x272   :  { %v410_v7 = vmul.f32 %v3545_v63, %v409_v5  ;;  %v3459_v5 = vld [vmem:[%s5862_s4 + $0x108] sm:$0xff] }
 0x274   :  { %v414_v10 = vsel %vm413_vm4, %v3545_v63, %v410_v7  ;;  %v3461_v63 = vld [vmem:[%s5862_s4 + $0x118] sm:$0xff]  ;;  %v474_v7 = vld [vmem:[%s5862_s4] sm:$0xff] }
 0x275   :  { %v415_v11 = vmul.f32 %v414_v10, %v317_v9  ;;  %586 = vmatpush.msrb.mxu1 %v3461_v63  ;;  %v3458_v9 = vld [vmem:[%s5862_s4 + $0x100] sm:$0xff] }
 0x277   :  { %3440 = vmatmul.msk.f32.vlgmr.msrb.gmra.mxu2 %vm347_vm1, %v415_v11  ;;  %587 = vmatpush.msrb.mxu1 %v3460_v1 }
 0x278   :  { %532 = vmatpush.msrb.mxu2 %v489_v12 }
 0x279   :  { %588 = vmatpush.msrb.mxu1 %v3459_v5 }
 0x27a   :  { %533 = vmatpush.msrb.mxu2 %v488_v13 }
 0x27b   :  { %589 = vmatpush.msrb.mxu1 %v3458_v9 }
 0x27c   :  { %534 = vmatpush.msrb.mxu2 %v487_v26 }
 0x27e   :  { %535 = vmatpush.msrb.mxu2 %v486_v27 }
 0x27f   :  { %3441 = vmatmul.msk.f32.vlgmr.msra.gmra.mxu2 %vm347_vm1, %v318_v28 }
 0x280   :  { %536 = vmatpush.msrb.mxu2 %v485_v33 }
 0x282   :  { %537 = vmatpush.msrb.mxu2 %v484_v38 }
 0x284   :  { %538 = vmatpush.msrb.mxu2 %v483_v43 }
 0x286   :  { %539 = vmatpush.msrb.mxu2 %v482_v45 }
 0x288   :  { %540 = vmatpush.msrb.mxu2 %v481_v50 }
 0x28a   :  { %541 = vmatpush.msrb.mxu2 %v480_v53 }
 0x28c   :  { %542 = vmatpush.msrb.mxu2 %v479_v56 }
 0x28e   :  { %543 = vmatpush.msrb.mxu2 %v478_v59 }
 0x290   :  { %544 = vmatpush.msrb.mxu2 %v477_v62 }
 0x292   :  { %545 = vmatpush.msrb.mxu2 %v476_v0 }
 0x294   :  { %546 = vmatpush.msrb.mxu2 %v475_v2 }
 0x296   :  { %547 = vmatpush.msrb.mxu2 %v474_v7 }
 0x298   :  { %664 = vmatpush.msra.mxu2 %v3874_v3 }
 0x29a   :  { %665 = vmatpush.msra.mxu2 %v3879_v4 }
 0x29c   :  { %666 = vmatpush.msra.mxu2 %v3886_v6 }
 0x29e   :  { %667 = vmatpush.msra.mxu2 %v3893_v8 }
 0x2a0   :  { %668 = vmatpush.msra.mxu2 %v3908_v14 }
 0x2a2   :  { %669 = vmatpush.msra.mxu2 %v3914_v15 }
 0x2a4   :  { %670 = vmatpush.msra.mxu2 %v3920_v16 }
 0x2a6   :  { %671 = vmatpush.msra.mxu2 %v3927_v17 }
 0x2a8   :  { %672 = vmatpush.msra.mxu2 %v3936_v18 }
 0x2aa   :  { %673 = vmatpush.msra.mxu2 %v3943_v19 }
 0x2ac   :  { %674 = vmatpush.msra.mxu2 %v3950_v20 }
 0x2ae   :  { %675 = vmatpush.msra.mxu2 %v3955_v21 }
 0x2b0   :  { %676 = vmatpush.msra.mxu2 %v3962_v22 }
 0x2b2   :  { %677 = vmatpush.msra.mxu2 %v3969_v23 }
 0x2b4   :  { %678 = vmatpush.msra.mxu2 %v3976_v24 }
 0x2b6   :  { %679 = vmatpush.msra.mxu2 %v3983_v25 }
 0x2fa   :  { %v436_v10 = vpop.f32.mrf.mxu2 }
 0x2fb   :  { %v462_v11 = vperm.slane %v436_v10, 0  ;;  %v600_v10 = vld [vmem:[#allocation10 + $0x1] sm:$0x1] }
 0x2fd   :  { %v463_v13 = vmul.f32 %v462_v11, %v4022_v41  ;;  %v464_v26 = vmul.f32 %v462_v11, %v4024_v42  ;;  %v766_v11 = vld [vmem:[%s5863_s5 + $0x78] sm:$0xff] }
 0x2fe   :  { %767 = vmatpush.msra.mxu1 %v766_v11 }
 0x302   :  { %v459_v12 = vpop.f32.mrf.mxu2 }
 0x303   :  { %v465_v27 = vperm.slane %v459_v12, 0  ;;  %v765_v12 = vld [vmem:[%s5863_s5 + $0x70] sm:$0xff] }
 0x304   :  { %768 = vmatpush.msra.mxu1 %v765_v12 }
 0x305   :  { %v4220_v28 = vadd.f32 %v465_v27, %v463_v13  ;;  %v4222_v29 = vadd.f32 %v465_v27, %v464_v26  ;;  %v764_v13 = vld [vmem:[%s5863_s5 + $0x68] sm:$0xff]  ;;  %v763_v26 = vld [vmem:[%s5863_s5 + $0x60] sm:$0xff]  ;;  %v762_v27 = vld [vmem:[%s5863_s5 + $0x58] sm:$0xff] }
 0x306   :  { %769 = vmatpush.msra.mxu1 %v764_v13 }
 0x307   :  { %v468_v30 = vmax.f32 %v4220_v28, 0.0  ;;  %v469_v31 = vmax.f32 %v4222_v29, 0.0 }
 0x308   :  { %770 = vmatpush.msra.mxu1 %v763_v26 }
 0x309   :  { %470 = vst [vmem:[#allocation2 + $0x8] sm:$0xff] %v468_v30  ;;  %525 = vmatmul.f32.vlgmr.msrb.gmra.mxu0 %v468_v30 }
 0x30a   :  { %471 = vst [vmem:[#allocation2 + $0x20] sm:$0xff] %v469_v31  ;;  %714 = vmatpush.msrb.mxu0 %v4008_v35  ;;  %771 = vmatpush.msra.mxu1 %v762_v27 }
 0x30c   :  { %715 = vmatpush.msrb.mxu0 %v4014_v36 }
 0x310   :  { %v472_v41 = vld [vmem:[#allocation2 + $0x7] sm:$0xff] }
 0x311   :  { %v555_v42 = vld [vmem:[#allocation2 + $0x9] sm:$0xff]  ;;  %548 = vmatmul.f32.vlgmr.msrb.gmra.mxu2 %v472_v41  ;;  %528 = vmatmul.f32.gmra.mxu0 %v469_v31  ;;  %v473_v32 = vld [vmem:[#allocation2 + $0x1f] sm:$0xff] }
 0x312   :  { %590 = vmatmul.f32.vlgmr.msrb.gmra.mxu1 %v555_v42  ;;  %905 = vmatpush.msrb.mxu2 %v4008_v35  ;;  %v556_v33 = vld [vmem:[#allocation2 + $0x21] sm:$0xff] }
 0x313   :  { %v761_v41 = vld [vmem:[%s5863_s5 + $0x50] sm:$0xff] }
 0x314   :  { %906 = vmatpush.msrb.mxu2 %v4014_v36  ;;  %772 = vmatpush.msra.mxu1 %v761_v41  ;;  %v3510_v41 = vld [vmem:[%s5864_s6 + $0x170] sm:$0xff] }
 0x319   :  { %551 = vmatmul.f32.gmra.mxu2 %v473_v32  ;;  %v760_v32 = vld [vmem:[%s5863_s5 + $0x48] sm:$0xff] }
 0x31a   :  { %593 = vmatmul.f32.gmra.mxu1 %v556_v33  ;;  %v759_v33 = vld [vmem:[%s5863_s5 + $0x40] sm:$0xff] }
 0x31b   :  { %773 = vmatpush.msra.mxu1 %v760_v32  ;;  %v3493_v32 = vld [vmem:[%s5864_s6 + $0xe8] sm:$0xff] }
 0x31d   :  { %774 = vmatpush.msra.mxu1 %v759_v33  ;;  %v3509_v33 = vld [vmem:[%s5864_s6 + $0x168] sm:$0xff] }
 0x386   :  { %v526_v34 = vpop.f32.mrf.mxu0 }
 0x38e   :  { %v529_v40 = vpop.f32.mrf.mxu0 }
 0x38f   :  { %v591_v37 = vpop.f32.mrf.mxu1 }
 0x394   :  { %v549_v38 = vpop.f32.mrf.mxu2 }
 0x395   :  { %v550_v39 = vadd.f32 %v549_v38, %v526_v34  ;;  %v758_v34 = vld [vmem:[%s5863_s5 + $0x38] sm:$0xff] }
 0x396   :  { %775 = vmatpush.msra.mxu1 %v758_v34 }
 0x397   :  { %v594_v45 = vpop.f32.mrf.mxu1  ;;  %v597_v46 = vadd.f32 %v591_v37, %v550_v39  ;;  %v757_v37 = vld [vmem:[%s5863_s5 + $0x30] sm:$0xff]  ;;  %v756_v39 = vld [vmem:[%s5863_s5 + $0x28] sm:$0xff] }
 0x398   :  { %776 = vmatpush.msra.mxu1 %v757_v37 }
 0x39a   :  { %777 = vmatpush.msra.mxu1 %v756_v39 }
 0x39c   :  { %v552_v43 = vpop.f32.mrf.mxu2 }
 0x39d   :  { %v553_v44 = vadd.f32 %v552_v43, %v529_v40 }
 0x39f   :  { %v598_v47 = vadd.f32 %v594_v45, %v553_v44 }
 0x3a1   :  { %v601_v48 = vadd.f32 %v598_v47, %v597_v46 }
 0x3a3   :  { %v602_v49 = vrot.slane %v601_v48, 4 }
 0x3a5   :  { %v603_v50 = vadd.f32 %v602_v49, %v601_v48 }
 0x3a7   :  { %v604_v51 = vrot.slane %v603_v50, 2 }
 0x3a9   :  { %v605_v52 = vadd.f32 %v604_v51, %v603_v50  ;;  %v755_v50 = vld [vmem:[%s5863_s5 + $0x20] sm:$0xff]  ;;  %v754_v51 = vld [vmem:[%s5863_s5 + $0x18] sm:$0xff] }
 0x3aa   :  { %778 = vmatpush.msra.mxu1 %v755_v50  ;;  %v791_v50 = vld [vmem:[#allocation10 + $0x2] sm:$0x1] }
 0x3ab   :  { %v606_v53 = vrot.slane %v605_v52, 1 }
 0x3ac   :  { %779 = vmatpush.msra.mxu1 %v754_v51  ;;  %v3492_v51 = vld [vmem:[%s5864_s6 + $0xe0] sm:$0xff] }
 0x3ad   :  { %v607_v54 = vadd.f32 %v606_v53, %v605_v52  ;;  %v753_v52 = vld [vmem:[%s5863_s5 + $0x10] sm:$0xff]  ;;  %v752_v53 = vld [vmem:[%s5863_s5 + $0x8] sm:$0xff] }
 0x3ae   :  { %780 = vmatpush.msra.mxu1 %v753_v52  ;;  %v3491_v52 = vld [vmem:[%s5864_s6 + $0xd8] sm:$0xff] }
 0x3af   :  { %624 = vmatmul.f32.vlgmr.msrb.gmra.mxu3 %v607_v54  ;;  %v751_v54 = vld [vmem:[%s5863_s5] sm:$0xff] }
 0x3b0   :  { %837 = vmatpush.msrb.mxu3 %v4008_v35  ;;  %781 = vmatpush.msra.mxu1 %v752_v53  ;;  %v3490_v53 = vld [vmem:[%s5864_s6 + $0xd0] sm:$0xff] }
 0x3b2   :  { %838 = vmatpush.msrb.mxu3 %v4014_v36  ;;  %782 = vmatpush.msra.mxu1 %v751_v54  ;;  %v3489_v54 = vld [vmem:[%s5864_s6 + $0xc8] sm:$0xff] }
 0x3b7   :  { %3476 = vmatmul.msk.f32.vlgmr.msra.gmra.mxu3 %vm347_vm1, %v600_v10 }
 0x3b8   :  { %855 = vmatpush.msra.mxu3 %v3874_v3 }
 0x3ba   :  { %856 = vmatpush.msra.mxu3 %v3879_v4 }
 0x3bc   :  { %857 = vmatpush.msra.mxu3 %v3886_v6 }
 0x3be   :  { %858 = vmatpush.msra.mxu3 %v3893_v8 }
 0x3c0   :  { %859 = vmatpush.msra.mxu3 %v3908_v14 }
 0x3c2   :  { %860 = vmatpush.msra.mxu3 %v3914_v15 }
 0x3c4   :  { %861 = vmatpush.msra.mxu3 %v3920_v16 }
 0x3c6   :  { %862 = vmatpush.msra.mxu3 %v3927_v17 }
 0x3c8   :  { %863 = vmatpush.msra.mxu3 %v3936_v18 }
 0x3ca   :  { %864 = vmatpush.msra.mxu3 %v3943_v19 }
 0x3cc   :  { %865 = vmatpush.msra.mxu3 %v3950_v20 }
 0x3ce   :  { %866 = vmatpush.msra.mxu3 %v3955_v21 }
 0x3d0   :  { %867 = vmatpush.msra.mxu3 %v3962_v22 }
 0x3d2   :  { %868 = vmatpush.msra.mxu3 %v3969_v23 }
 0x3d4   :  { %869 = vmatpush.msra.mxu3 %v3976_v24 }
 0x3d6   :  { %870 = vmatpush.msra.mxu3 %v3983_v25 }
 0x432   :  { %v625_v55 = vpop.f32.mrf.mxu3 }
 0x433   :  { %v628_v56 = vmul.f32 0.0078125, %v625_v55 }
 0x435   :  { %3474 = vmatmul.msk.f32.vlgmr.msra.gmra.mxu0 %vm347_vm1, %v628_v56 }
 0x436   :  { %799 = vmatpush.msra.mxu0 %v3874_v3 }
 0x438   :  { %800 = vmatpush.msra.mxu0 %v3879_v4 }
 0x43a   :  { %801 = vmatpush.msra.mxu0 %v3886_v6  ;;  %v740_v55 = vpop.f32.mrf.mxu3 }
 0x43c   :  { %802 = vmatpush.msra.mxu0 %v3893_v8 }
 0x43e   :  { %803 = vmatpush.msra.mxu0 %v3908_v14 }
 0x440   :  { %804 = vmatpush.msra.mxu0 %v3914_v15 }
 0x442   :  { %805 = vmatpush.msra.mxu0 %v3920_v16 }
 0x444   :  { %806 = vmatpush.msra.mxu0 %v3927_v17 }
 0x446   :  { %807 = vmatpush.msra.mxu0 %v3936_v18 }
 0x448   :  { %808 = vmatpush.msra.mxu0 %v3943_v19 }
 0x44a   :  { %809 = vmatpush.msra.mxu0 %v3950_v20 }
 0x44c   :  { %810 = vmatpush.msra.mxu0 %v3955_v21 }
 0x44e   :  { %811 = vmatpush.msra.mxu0 %v3962_v22 }
 0x450   :  { %812 = vmatpush.msra.mxu0 %v3969_v23 }
 0x452   :  { %813 = vmatpush.msra.mxu0 %v3976_v24 }
 0x454   :  { %814 = vmatpush.msra.mxu0 %v3983_v25 }
 0x4b2   :  { %v649_v57 = vpop.f32.mrf.mxu0 }
 0x4b3   :  { %v652_v58 = vperm.slane %v649_v57, 0 }
 0x4b5   :  { %v4255_v59 = vsub.f32 %v597_v46, %v652_v58  ;;  %v4257_v60 = vsub.f32 %v598_v47, %v652_v58  ;;  %v599_v46 = vld [vmem:[#allocation8 + $0x1] sm:$0x1]  ;;  %v746_v58 = vperm.slane %v740_v55, 0  ;;  %v960_v55 = vld [vmem:[%s5864_s6 + $0x60] sm:$0xff] }
 0x4b7   :  { %v655_v61 = vmul.f32 %v4255_v59, %v4255_v59  ;;  %v656_v62 = vmul.f32 %v4257_v60, %v4257_v60 }
 0x4b9   :  { %v657_v63 = vadd.f32 %v656_v62, %v655_v61 }
 0x4bb   :  { %v658_v0 = vrot.slane %v657_v63, 4 }
 0x4bd   :  { %v659_v1 = vadd.f32 %v658_v0, %v657_v63 }
 0x4bf   :  { %v660_v2 = vrot.slane %v659_v1, 2 }
 0x4c1   :  { %v661_v5 = vadd.f32 %v660_v2, %v659_v1 }
 0x4c3   :  { %v662_v7 = vrot.slane %v661_v5, 1 }
 0x4c5   :  { %v663_v9 = vadd.f32 %v662_v7, %v661_v5 }
 0x4c7   :  { %680 = vmatmul.f32.vlgmr.msra.gmra.mxu2 %v663_v9 }
 0x4c8   :  { %928 = vmatpush.msra.mxu2 %v4008_v35 }
 0x4ca   :  { %929 = vmatpush.msra.mxu2 %v4014_v36 }
 0x54a   :  { %v681_v30 = vpop.f32.mrf.mxu2 }
 0x54b   :  { %v684_v31 = vmul.f32 0.0078125, %v681_v30 }
 0x54d   :  { %v685_v42 = vadd.f32 1e-05, %v684_v31  ;;  %v3494_v31 = vld [vmem:[%s5864_s6 + $0xf0] sm:$0xff] }
 0x54f   :  { %3546 = vrsqrt.f32 %v685_v42  ;;  %vm692_vm6 = vweird.f32 %v685_v42 }
 0x555   :  { %v3547_v38 = vpop.eup %3546 }
 0x556   :  { %v687_v40 = vmul.f32 %v3547_v38, %v685_v42  ;;  %vm693_vm5 = vweird.f32 %v3547_v38 }
 0x557   :  { %vm694_vm7 = vmor %vm692_vm6, %vm693_vm5  ;;  %vm3125_vm6 = vcmask 1046528  }
 0x558   :  { %v688_v43 = vmul.f32 %v3547_v38, %v687_v40 }
 0x55a   :  { %v689_v44 = vmul.f32 0.5, %v688_v43  ;;  %v790_v43 = vld [vmem:[#allocation8 + $0x2] sm:$0x1] }
 0x55c   :  { %v690_v45 = vsub.f32 1.5, %v689_v44 }
 0x55e   :  { %v691_v47 = vmul.f32 %v3547_v38, %v690_v45 }
 0x560   :  { %v695_v48 = vsel %vm694_vm7, %v3547_v38, %v691_v47  ;;  %v963_v47 = vld [vmem:[%s5864_s6 + $0x78] sm:$0xff]  ;;  %vm3357_vm7 = vcmask 778240  }
 0x561   :  { %v696_v49 = vmul.f32 %v695_v48, %v599_v46  ;;  %v962_v48 = vld [vmem:[%s5864_s6 + $0x70] sm:$0xff] }
 0x563   :  { %3475 = vmatmul.msk.f32.vlgmr.msrb.gmra.mxu0 %vm347_vm1, %v696_v49  ;;  %v961_v49 = vld [vmem:[%s5864_s6 + $0x68] sm:$0xff] }
 0x5e0   :  { %v717_v56 = vpop.f32.mrf.mxu0 }
 0x5e1   :  { %v743_v57 = vperm.slane %v717_v56, 0  ;;  %v3508_v56 = vld [vmem:[%s5864_s6 + $0x160] sm:$0xff] }
 0x5e3   :  { %v744_v61 = vmul.f32 %v743_v57, %v4255_v59  ;;  %v745_v63 = vmul.f32 %v743_v57, %v4257_v60  ;;  %v3511_v60 = vld [vmem:[%s5864_s6 + $0x178] sm:$0xff]  ;;  %v3488_v57 = vld [vmem:[%s5864_s6 + $0xc0] sm:$0xff] }
 0x5e4   :  { %1048 = vmatpush.msrb.mxu0 %v3511_v60  ;;  %v4509_v60 = vld [vmem:[%s5869_s11 + $0x78] sm:$0xff] }
 0x5e5   :  { %v747_v62 = vadd.f32 %v746_v58, %v744_v61  ;;  %v748_v1 = vadd.f32 %v746_v58, %v745_v63  ;;  %v959_v58 = vld [vmem:[%s5864_s6 + $0x58] sm:$0xff]  ;;  %v958_v63 = vld [vmem:[%s5864_s6 + $0x50] sm:$0xff] }
 0x5e6   :  { %1049 = vmatpush.msrb.mxu0 %v3510_v41  ;;  %v3507_v61 = vld [vmem:[%s5864_s6 + $0x158] sm:$0xff]  ;;  %v4523_v41 = vld [vmem:[%s5869_s11 + $0x68] sm:$0xff] }
 0x5e7   :  { %v749_v0 = vmax.f32 %v747_v62, 0.0  ;;  %v750_v2 = vmax.f32 %v748_v1, 0.0  ;;  %v3487_v62 = vld [vmem:[%s5864_s6 + $0xb8] sm:$0xff]  ;;  %v957_v1 = vld [vmem:[%s5864_s6 + $0x48] sm:$0xff] }
 0x5e8   :  { %1050 = vmatpush.msrb.mxu0 %v3509_v33 }
 0x5e9   :  { %783 = vmatmul.f32.vlgmr.msra.gmra.mxu1 %v749_v0  ;;  %v3506_v0 = vld [vmem:[%s5864_s6 + $0x150] sm:$0xff] }
 0x5ea   :  { %1051 = vmatpush.msrb.mxu0 %v3508_v56 }
 0x5ec   :  { %1052 = vmatpush.msrb.mxu0 %v3507_v61 }
 0x5ee   :  { %1053 = vmatpush.msrb.mxu0 %v3506_v0 }
 0x5f1   :  { %786 = vmatmul.f32.gmra.mxu1 %v750_v2  ;;  %v3505_v2 = vld [vmem:[%s5864_s6 + $0x148] sm:$0xff] }
 0x5f2   :  { %1054 = vmatpush.msrb.mxu0 %v3505_v2 }
 0x666   :  { %v784_v5 = vpop.f32.mrf.mxu1 }
 0x66e   :  { %v787_v7 = vpop.f32.mrf.mxu1 }
 0x66f   :  { %v792_v9 = vadd.f32 %v787_v7, %v784_v5 }
 0x671   :  { %v793_v10 = vrot.slane %v792_v9, 4 }
 0x673   :  { %v794_v11 = vadd.f32 %v793_v10, %v792_v9  ;;  %v956_v9 = vld [vmem:[%s5864_s6 + $0x40] sm:$0xff] }
 0x674   :  { %v3504_v10 = vld [vmem:[%s5864_s6 + $0x140] sm:$0xff] }
 0x675   :  { %v795_v12 = vrot.slane %v794_v11, 2  ;;  %1055 = vmatpush.msrb.mxu0 %v3504_v10 }
 0x677   :  { %v796_v13 = vadd.f32 %v795_v12, %v794_v11  ;;  %v3484_v11 = vld [vmem:[%s5864_s6 + $0xa0] sm:$0xff]  ;;  %v955_v12 = vld [vmem:[%s5864_s6 + $0x38] sm:$0xff] }
 0x679   :  { %v797_v26 = vrot.slane %v796_v13, 1 }
 0x67b   :  { %v798_v27 = vadd.f32 %v797_v26, %v796_v13  ;;  %v3503_v13 = vld [vmem:[%s5864_s6 + $0x138] sm:$0xff] }
 0x67c   :  { %v3483_v26 = vld [vmem:[%s5864_s6 + $0x98] sm:$0xff]  ;;  %1056 = vmatpush.msrb.mxu0 %v3503_v13 }
 0x67d   :  { %815 = vmatmul.f32.vlgmr.msra.gmra.mxu0 %v798_v27  ;;  %v954_v27 = vld [vmem:[%s5864_s6 + $0x30] sm:$0xff] }
 0x6fa   :  { %v816_v30 = vpop.f32.mrf.mxu0 }
 0x6fb   :  { %v819_v59 = vmul.f32 0.0078125, %v816_v30  ;;  %v3502_v30 = vld [vmem:[%s5864_s6 + $0x130] sm:$0xff] }
 0x6fc   :  { %1057 = vmatpush.msrb.mxu0 %v3502_v30 }
 0x6fd   :  { %3477 = vmatmul.msk.f32.vlgmr.msrb.gmra.mxu3 %vm347_vm1, %v819_v59  ;;  %v3482_v59 = vld [vmem:[%s5864_s6 + $0x90] sm:$0xff] }
 0x6fe   :  { %1082 = vmatpush.msrb.mxu3 %v3874_v3 }
 0x700   :  { %1083 = vmatpush.msrb.mxu3 %v3879_v4 }
 0x702   :  { %1084 = vmatpush.msrb.mxu3 %v3886_v6 }
 0x704   :  { %1085 = vmatpush.msrb.mxu3 %v3893_v8 }
 0x706   :  { %1086 = vmatpush.msrb.mxu3 %v3908_v14 }
 0x708   :  { %1087 = vmatpush.msrb.mxu3 %v3914_v15 }
 0x70a   :  { %1088 = vmatpush.msrb.mxu3 %v3920_v16 }
 0x70c   :  { %1089 = vmatpush.msrb.mxu3 %v3927_v17 }
 0x70e   :  { %1090 = vmatpush.msrb.mxu3 %v3936_v18 }
 0x710   :  { %1091 = vmatpush.msrb.mxu3 %v3943_v19 }
 0x712   :  { %1092 = vmatpush.msrb.mxu3 %v3950_v20 }
 0x714   :  { %1093 = vmatpush.msrb.mxu3 %v3955_v21 }
 0x716   :  { %1094 = vmatpush.msrb.mxu3 %v3962_v22 }
 0x718   :  { %1095 = vmatpush.msrb.mxu3 %v3969_v23 }
 0x71a   :  { %1096 = vmatpush.msrb.mxu3 %v3976_v24 }
 0x71c   :  { %1097 = vmatpush.msrb.mxu3 %v3983_v25  ;;  %v3495_v25 = vld [vmem:[%s5864_s6 + $0xf8] sm:$0xff] }
 0x71d   :  { %983 = vmatpush.msrb.mxu1 %v3495_v25  ;;  %v3496_v25 = vld [vmem:[%s5864_s6 + $0x100] sm:$0xff] }
 0x71f   :  { %984 = vmatpush.msrb.mxu1 %v3494_v31  ;;  %v4516_v31 = vld [vmem:[%s5869_s11 + $0x70] sm:$0xff] }
 0x721   :  { %985 = vmatpush.msrb.mxu1 %v3493_v32  ;;  %v4535_v32 = vld [vmem:[%s5869_s11 + $0x58] sm:$0xff] }
 0x723   :  { %986 = vmatpush.msrb.mxu1 %v3492_v51  ;;  %v4587_v51 = vld [vmem:[%s5869_s11 + $0x20] sm:$0xff] }
 0x725   :  { %987 = vmatpush.msrb.mxu1 %v3491_v52  ;;  %v4605_v52 = vld [vmem:[%s5869_s11 + $0x10] sm:$0xff] }
 0x727   :  { %988 = vmatpush.msrb.mxu1 %v3490_v53  ;;  %v4611_v53 = vld [vmem:[%s5870_s12] sm:$0xff] }
 0x729   :  { %989 = vmatpush.msrb.mxu1 %v3489_v54  ;;  %v4617_v54 = vld [vmem:[%s5869_s11 + $0x8] sm:$0xff] }
 0x72b   :  { %990 = vmatpush.msrb.mxu1 %v3488_v57  ;;  %v4623_v57 = vld [vmem:[%s5869_s11] sm:$0xff] }
 0x72d   :  { %991 = vmatpush.msrb.mxu1 %v3487_v62 }
 0x780   :  { %v840_v3 = vpop.f32.mrf.mxu3 }
 0x781   :  { %v843_v4 = vperm.slane %v840_v3, 0  ;;  %v953_v3 = vld [vmem:[%s5864_s6 + $0x28] sm:$0xff] }
 0x783   :  { %v4350_v6 = vsub.f32 %v784_v5, %v843_v4  ;;  %v4352_v8 = vsub.f32 %v787_v7, %v843_v4  ;;  %v3486_v5 = vld [vmem:[%s5864_s6 + $0xb0] sm:$0xff]  ;;  %v3485_v7 = vld [vmem:[%s5864_s6 + $0xa8] sm:$0xff] }
 0x784   :  { %992 = vmatpush.msrb.mxu1 %v3486_v5  ;;  %v3501_v4 = vld [vmem:[%s5864_s6 + $0x128] sm:$0xff] }
 0x785   :  { %v846_v14 = vmul.f32 %v4350_v6, %v4350_v6  ;;  %v847_v15 = vmul.f32 %v4352_v8, %v4352_v8  ;;  %1058 = vmatpush.msrb.mxu0 %v3501_v4 }
 0x786   :  { %993 = vmatpush.msrb.mxu1 %v3485_v7 }
 0x787   :  { %v848_v16 = vadd.f32 %v847_v15, %v846_v14  ;;  %v3481_v14 = vld [vmem:[%s5864_s6 + $0x88] sm:$0xff]  ;;  %v952_v15 = vld [vmem:[%s5864_s6 + $0x20] sm:$0xff] }
 0x788   :  { %994 = vmatpush.msrb.mxu1 %v3484_v11 }
 0x789   :  { %v849_v17 = vrot.slane %v848_v16, 4 }
 0x78a   :  { %995 = vmatpush.msrb.mxu1 %v3483_v26 }
 0x78b   :  { %v850_v18 = vadd.f32 %v849_v17, %v848_v16  ;;  %v3500_v16 = vld [vmem:[%s5864_s6 + $0x120] sm:$0xff] }
 0x78c   :  { %996 = vmatpush.msrb.mxu1 %v3482_v59  ;;  %v3480_v17 = vld [vmem:[%s5864_s6 + $0x80] sm:$0xff]  ;;  %1059 = vmatpush.msrb.mxu0 %v3500_v16 }
 0x78d   :  { %v851_v19 = vrot.slane %v850_v18, 2 }
 0x78e   :  { %997 = vmatpush.msrb.mxu1 %v3481_v14 }
 0x78f   :  { %v852_v20 = vadd.f32 %v851_v19, %v850_v18  ;;  %v951_v18 = vld [vmem:[%s5864_s6 + $0x18] sm:$0xff] }
 0x790   :  { %v3499_v19 = vld [vmem:[%s5864_s6 + $0x118] sm:$0xff]  ;;  %998 = vmatpush.msrb.mxu1 %v3480_v17 }
 0x791   :  { %v853_v21 = vrot.slane %v852_v20, 1  ;;  %1060 = vmatpush.msrb.mxu0 %v3499_v19 }
 0x792   :  { %1120 = vmatpush.msra.mxu1 %v4008_v35 }
 0x793   :  { %v854_v22 = vadd.f32 %v853_v21, %v852_v20  ;;  %v950_v20 = vld [vmem:[%s5864_s6 + $0x10] sm:$0xff] }
 0x794   :  { %v3498_v21 = vld [vmem:[%s5864_s6 + $0x110] sm:$0xff]  ;;  %1121 = vmatpush.msra.mxu1 %v4014_v36 }
 0x795   :  { %871 = vmatmul.f32.vlgmr.msra.gmra.mxu3 %v854_v22  ;;  %v949_v22 = vld [vmem:[%s5864_s6 + $0x8] sm:$0xff]  ;;  %1061 = vmatpush.msrb.mxu0 %v3498_v21 }
 0x818   :  { %v872_v23 = vpop.f32.mrf.mxu3 }
 0x819   :  { %v875_v24 = vmul.f32 0.0078125, %v872_v23  ;;  %v3497_v23 = vld [vmem:[%s5864_s6 + $0x108] sm:$0xff] }
 0x81a   :  { %1062 = vmatpush.msrb.mxu0 %v3497_v23 }
 0x81b   :  { %v876_v42 = vadd.f32 1e-05, %v875_v24  ;;  %v948_v24 = vld [vmem:[%s5864_s6] sm:$0xff] }
 0x81c   :  { %1063 = vmatpush.msrb.mxu0 %v3496_v25 }
 0x81d   :  { %3548 = vrsqrt.f32 %v876_v42  ;;  %vm883_vm9 = vweird.f32 %v876_v42 }
 0x81e   :  { %1188 = vmatpush.msra.mxu0 %v4008_v35  ;;  %v4529_v35 = vld [vmem:[%s5869_s11 + $0x60] sm:$0xff] }
 0x820   :  { %1189 = vmatpush.msra.mxu0 %v4014_v36  ;;  %v4541_v36 = vld [vmem:[%s5869_s11 + $0x50] sm:$0xff] }
 0x823   :  { %v3549_v34 = vpop.eup %3548 }
 0x824   :  { %v878_v37 = vmul.f32 %v3549_v34, %v876_v42  ;;  %vm884_vm8 = vweird.f32 %v3549_v34 }
 0x825   :  { %vm885_vm10 = vmor %vm883_vm9, %vm884_vm8  ;;  %vm3360_vm8 = vcmask 779265   ;;  %vm3363_vm9 = vcmask 780290  }
 0x826   :  { %v879_v38 = vmul.f32 %v3549_v34, %v878_v37 }
 0x828   :  { %v880_v39 = vmul.f32 0.5, %v879_v38  ;;  %v4553_v38 = vld [vmem:[%s5869_s11 + $0x40] sm:$0xff] }
 0x82a   :  { %v881_v40 = vsub.f32 1.5, %v880_v39 }
 0x82c   :  { %v882_v44 = vmul.f32 %v3549_v34, %v881_v40 }
 0x82e   :  { %v886_v45 = vsel %vm885_vm10, %v3549_v34, %v882_v44  ;;  %v4547_v34 = vld [vmem:[%s5869_s11 + $0x48] sm:$0xff]  ;;  %v4561_v44 = vld [vmem:[%s5869_s11 + $0x38] sm:$0xff]  ;;  %vm3366_vm10 = vcmask 781315  }
 0x82f   :  { %v887_v46 = vmul.f32 %v886_v45, %v790_v43 }
 0x831   :  { %3478 = vmatmul.msk.f32.vlgmr.msrb.gmra.mxu2 %vm347_vm1, %v887_v46 }
 0x832   :  { %1006 = vmatpush.msrb.mxu2 %v963_v47  ;;  %v4567_v47 = vld [vmem:[%s5869_s11 + $0x30] sm:$0xff] }
 0x834   :  { %1007 = vmatpush.msrb.mxu2 %v962_v48  ;;  %v4579_v48 = vld [vmem:[%s5869_s11 + $0x28] sm:$0xff] }
 0x836   :  { %1008 = vmatpush.msrb.mxu2 %v961_v49 }
 0x838   :  { %1009 = vmatpush.msrb.mxu2 %v960_v55 }
 0x839   :  { %3479 = vmatmul.msk.f32.vlgmr.msra.gmra.mxu2 %vm347_vm1, %v791_v50 }
 0x83a   :  { %1010 = vmatpush.msrb.mxu2 %v959_v58 }
 0x83c   :  { %1011 = vmatpush.msrb.mxu2 %v958_v63 }
 0x83e   :  { %1012 = vmatpush.msrb.mxu2 %v957_v1 }
 0x840   :  { %1013 = vmatpush.msrb.mxu2 %v956_v9 }
 0x842   :  { %1014 = vmatpush.msrb.mxu2 %v955_v12 }
 0x844   :  { %1015 = vmatpush.msrb.mxu2 %v954_v27 }
 0x846   :  { %1016 = vmatpush.msrb.mxu2 %v953_v3 }
 0x848   :  { %1017 = vmatpush.msrb.mxu2 %v952_v15 }
 0x84a   :  { %1018 = vmatpush.msrb.mxu2 %v951_v18 }
 0x84c   :  { %1019 = vmatpush.msrb.mxu2 %v950_v20 }
 0x84e   :  { %1020 = vmatpush.msrb.mxu2 %v949_v22 }
 0x850   :  { %1021 = vmatpush.msrb.mxu2 %v948_v24 }
 0x852   :  { %1138 = vmatpush.msra.mxu2 %v4509_v60 }
 0x854   :  { %1139 = vmatpush.msra.mxu2 %v4516_v31 }
 0x856   :  { %1140 = vmatpush.msra.mxu2 %v4523_v41 }
 0x858   :  { %1141 = vmatpush.msra.mxu2 %v4529_v35 }
 0x85a   :  { %1142 = vmatpush.msra.mxu2 %v4535_v32 }
 0x85c   :  { %1143 = vmatpush.msra.mxu2 %v4541_v36 }
 0x85e   :  { %1144 = vmatpush.msra.mxu2 %v4547_v34 }
 0x860   :  { %1145 = vmatpush.msra.mxu2 %v4553_v38 }
 0x862   :  { %1146 = vmatpush.msra.mxu2 %v4561_v44 }
 0x864   :  { %1147 = vmatpush.msra.mxu2 %v4567_v47 }
 0x866   :  { %1148 = vmatpush.msra.mxu2 %v4579_v48 }
 0x868   :  { %1149 = vmatpush.msra.mxu2 %v4587_v51 }
 0x8b4   :  { %v908_v42 = vpop.f32.mrf.mxu2 }
 0x8b5   :  { %v934_v33 = vperm.slane %v908_v42, 0 }
 0x8b7   :  { %v935_v39 = vmul.f32 %v934_v33, %v4350_v6  ;;  %v936_v40 = vmul.f32 %v934_v33, %v4352_v8 }
 0x8bc   :  { %v931_v37 = vpop.f32.mrf.mxu2 }
 0x8bd   :  { %v937_v43 = vperm.slane %v931_v37, 0  ;;  %v1074_v37 = vld [vmem:[#allocation10 + $0x3] sm:$0x1] }
 0x8bf   :  { %v938_v45 = vadd.f32 %v937_v43, %v935_v39  ;;  %v939_v46 = vadd.f32 %v937_v43, %v936_v40  ;;  %v1240_v39 = vld [vmem:[%s5865_s7 + $0x78] sm:$0xff]  ;;  %v1239_v40 = vld [vmem:[%s5865_s7 + $0x70] sm:$0xff]  ;;  %v1238_v43 = vld [vmem:[%s5865_s7 + $0x68] sm:$0xff] }
 0x8c0   :  { %1241 = vmatpush.msra.mxu3 %v1240_v39 }
 0x8c1   :  { %v4571_v6 = vadd.f32 %v938_v45, %v4220_v28  ;;  %v4574_v8 = vadd.f32 %v939_v46, %v4222_v29  ;;  %v4593_v28 = vld [vmem:[%s5869_s11 + $0x18] sm:$0xff]  ;;  %v4599_v29 = vld [vmem:[%s5870_s12 + $0x8] sm:$0xff]  ;;  %v1237_v45 = vld [vmem:[%s5865_s7 + $0x60] sm:$0xff] }
 0x8c2   :  { %1150 = vmatpush.msra.mxu2 %v4593_v28  ;;  %1242 = vmatpush.msra.mxu3 %v1239_v40  ;;  %v1236_v46 = vld [vmem:[%s5865_s7 + $0x58] sm:$0xff] }
 0x8c3   :  { %v942_v49 = vmax.f32 %v4571_v6, 0.0  ;;  %v943_v50 = vmax.f32 %v4574_v8, 0.0 }
 0x8c4   :  { %1151 = vmatpush.msra.mxu2 %v4605_v52  ;;  %1243 = vmatpush.msra.mxu3 %v1238_v43  ;;  %v1549_v43 = vld [vmem:[#allocation11 + $0x3e0] sm:$0xff] }
 0x8c5   :  { %944 = vst [vmem:[#allocation3 + $0x8] sm:$0xff] %v942_v49  ;;  %999 = vmatmul.f32.vlgmr.msrb.gmra.mxu1 %v942_v49 }
 0x8c6   :  { %945 = vst [vmem:[#allocation3 + $0x20] sm:$0xff] %v943_v50  ;;  %1211 = vmatpush.msrb.mxu1 %v4599_v29  ;;  %1152 = vmatpush.msra.mxu2 %v4617_v54 }
 0x8c7   :  { %1244 = vmatpush.msra.mxu3 %v1237_v45  ;;  %v1551_v45 = vld [vmem:[#allocation11 + $0x3f0] sm:$0xff] }
 0x8c8   :  { %1212 = vmatpush.msrb.mxu1 %v4611_v53  ;;  %1153 = vmatpush.msra.mxu2 %v4623_v57 }
 0x8c9   :  { %1245 = vmatpush.msra.mxu3 %v1236_v46  ;;  %v1552_v46 = vld [vmem:[#allocation11 + $0x3f8] sm:$0xff] }
 0x8cc   :  { %v946_v55 = vld [vmem:[#allocation3 + $0x7] sm:$0xff] }
 0x8cd   :  { %v1029_v56 = vld [vmem:[#allocation3 + $0x9] sm:$0xff]  ;;  %1022 = vmatmul.f32.vlgmr.msrb.gmra.mxu2 %v946_v55  ;;  %1002 = vmatmul.f32.gmra.mxu1 %v943_v50  ;;  %v947_v58 = vld [vmem:[#allocation3 + $0x1f] sm:$0xff] }
 0x8ce   :  { %1064 = vmatmul.f32.vlgmr.msrb.gmra.mxu0 %v1029_v56  ;;  %1379 = vmatpush.msrb.mxu2 %v4599_v29  ;;  %v1030_v61 = vld [vmem:[#allocation3 + $0x21] sm:$0xff] }
 0x8cf   :  { %1273 = vmatpush.msrb.mxu0 %v4509_v60 }
 0x8d0   :  { %1380 = vmatpush.msrb.mxu2 %v4611_v53 }
 0x8d1   :  { %1274 = vmatpush.msrb.mxu0 %v4516_v31 }
 0x8d3   :  { %1275 = vmatpush.msrb.mxu0 %v4523_v41 }
 0x8d5   :  { %1276 = vmatpush.msrb.mxu0 %v4529_v35  ;;  %1025 = vmatmul.f32.gmra.mxu2 %v947_v58  ;;  %v1073_v58 = vld [vmem:[#allocation8 + $0x3] sm:$0x1] }
 0x8d6   :  { %1067 = vmatmul.f32.gmra.mxu0 %v1030_v61 }
 0x8d7   :  { %1277 = vmatpush.msrb.mxu0 %v4535_v32 }
 0x8d9   :  { %1278 = vmatpush.msrb.mxu0 %v4541_v36 }
 0x8db   :  { %1279 = vmatpush.msrb.mxu0 %v4547_v34 }
 0x8dd   :  { %1280 = vmatpush.msrb.mxu0 %v4553_v38 }
 0x8df   :  { %1281 = vmatpush.msrb.mxu0 %v4561_v44 }
 0x8e1   :  { %1282 = vmatpush.msrb.mxu0 %v4567_v47 }
 0x8e3   :  { %1283 = vmatpush.msrb.mxu0 %v4579_v48 }
 0x8e5   :  { %1284 = vmatpush.msrb.mxu0 %v4587_v51 }
 0x8e7   :  { %1285 = vmatpush.msrb.mxu0 %v4593_v28 }
 0x8e9   :  { %1286 = vmatpush.msrb.mxu0 %v4605_v52 }
 0x8eb   :  { %1287 = vmatpush.msrb.mxu0 %v4617_v54 }
 0x8ed   :  { %1288 = vmatpush.msrb.mxu0 %v4623_v57 }
 0x942   :  { %v1000_v62 = vpop.f32.mrf.mxu1 }
 0x94a   :  { %v1003_v2 = vpop.f32.mrf.mxu1 }
 0x94b   :  { %v1065_v63 = vpop.f32.mrf.mxu0 }
 0x950   :  { %v1023_v0 = vpop.f32.mrf.mxu2 }
 0x951   :  { %v1024_v1 = vadd.f32 %v1023_v0, %v1000_v62 }
 0x953   :  { %v1068_v9 = vpop.f32.mrf.mxu0  ;;  %v1071_v10 = vadd.f32 %v1065_v63, %v1024_v1 }
 0x958   :  { %v1026_v5 = vpop.f32.mrf.mxu2 }
 0x959   :  { %v1027_v7 = vadd.f32 %v1026_v5, %v1003_v2 }
 0x95b   :  { %v1072_v11 = vadd.f32 %v1068_v9, %v1027_v7 }
 0x95d   :  { %v1075_v12 = vadd.f32 %v1072_v11, %v1071_v10 }
 0x95f   :  { %v1076_v13 = vrot.slane %v1075_v12, 4 }
 0x961   :  { %v1077_v26 = vadd.f32 %v1076_v13, %v1075_v12 }
 0x963   :  { %v1078_v27 = vrot.slane %v1077_v26, 2 }
 0x965   :  { %v1079_v30 = vadd.f32 %v1078_v27, %v1077_v26 }
 0x967   :  { %v1080_v59 = vrot.slane %v1079_v30, 1 }
 0x969   :  { %v1081_v3 = vadd.f32 %v1080_v59, %v1079_v30 }
 0x96b   :  { %1098 = vmatmul.f32.vlgmr.msrb.gmra.mxu3 %v1081_v3 }
 0x9ee   :  { %v1099_v4 = vpop.f32.mrf.mxu3 }
 0x9ef   :  { %v1102_v14 = vmul.f32 0.0078125, %v1099_v4 }
 0x9f1   :  { %3512 = vmatmul.msk.f32.vlgmr.msra.gmra.mxu1 %vm347_vm1, %v1102_v14 }
 0x9f2   :  { %1311 = vmatpush.msra.mxu1 %v4599_v29 }
 0x9f4   :  { %1312 = vmatpush.msra.mxu1 %v4611_v53 }
 0x9f9   :  { %3514 = vmatmul.msk.f32.vlgmr.msrb.gmra.mxu1 %vm347_vm1, %v1074_v37 }
 0x9fa   :  { %1329 = vmatpush.msrb.mxu1 %v4509_v60  ;;  %v1235_v60 = vld [vmem:[%s5865_s7 + $0x50] sm:$0xff] }
 0x9fb   :  { %1246 = vmatpush.msra.mxu3 %v1235_v60  ;;  %v1547_v60 = vld [vmem:[#allocation11 + $0x3d0] sm:$0xff] }
 0x9fc   :  { %1330 = vmatpush.msrb.mxu1 %v4516_v31  ;;  %v1234_v31 = vld [vmem:[%s5865_s7 + $0x48] sm:$0xff] }
 0x9fd   :  { %1247 = vmatpush.msra.mxu3 %v1234_v31  ;;  %v1541_v31 = vld [vmem:[#allocation11 + $0x3a0] sm:$0xff] }
 0x9fe   :  { %1331 = vmatpush.msrb.mxu1 %v4523_v41  ;;  %v1233_v41 = vld [vmem:[%s5865_s7 + $0x40] sm:$0xff] }
 0x9ff   :  { %1248 = vmatpush.msra.mxu3 %v1233_v41  ;;  %v1543_v41 = vld [vmem:[#allocation11 + $0x3b0] sm:$0xff] }
 0xa00   :  { %1332 = vmatpush.msrb.mxu1 %v4529_v35  ;;  %v1232_v35 = vld [vmem:[%s5865_s7 + $0x38] sm:$0xff] }
 0xa01   :  { %1249 = vmatpush.msra.mxu3 %v1232_v35  ;;  %v1544_v35 = vld [vmem:[#allocation11 + $0x3b8] sm:$0xff] }
 0xa02   :  { %1333 = vmatpush.msrb.mxu1 %v4535_v32  ;;  %v1231_v32 = vld [vmem:[%s5865_s7 + $0x30] sm:$0xff] }
 0xa03   :  { %1250 = vmatpush.msra.mxu3 %v1231_v32  ;;  %v1537_v32 = vld [vmem:[#allocation11 + $0x380] sm:$0xff] }
 0xa04   :  { %1334 = vmatpush.msrb.mxu1 %v4541_v36  ;;  %v1230_v36 = vld [vmem:[%s5865_s7 + $0x28] sm:$0xff] }
 0xa05   :  { %1251 = vmatpush.msra.mxu3 %v1230_v36  ;;  %v1540_v36 = vld [vmem:[#allocation11 + $0x398] sm:$0xff] }
 0xa06   :  { %1335 = vmatpush.msrb.mxu1 %v4547_v34 }
 0xa08   :  { %1336 = vmatpush.msrb.mxu1 %v4553_v38 }
 0xa0a   :  { %1337 = vmatpush.msrb.mxu1 %v4561_v44 }
 0xa0c   :  { %1338 = vmatpush.msrb.mxu1 %v4567_v47  ;;  %v1229_v47 = vld [vmem:[%s5865_s7 + $0x20] sm:$0xff] }
 0xa0d   :  { %1252 = vmatpush.msra.mxu3 %v1229_v47  ;;  %v1527_v47 = vld [vmem:[#allocation11 + $0x330] sm:$0xff] }
 0xa0e   :  { %1339 = vmatpush.msrb.mxu1 %v4579_v48  ;;  %v1228_v48 = vld [vmem:[%s5865_s7 + $0x18] sm:$0xff] }
 0xa0f   :  { %1253 = vmatpush.msra.mxu3 %v1228_v48 }
 0xa10   :  { %1340 = vmatpush.msrb.mxu1 %v4587_v51  ;;  %v1227_v51 = vld [vmem:[%s5865_s7 + $0x10] sm:$0xff] }
 0xa11   :  { %1254 = vmatpush.msra.mxu3 %v1227_v51  ;;  %v1528_v51 = vld [vmem:[#allocation11 + $0x338] sm:$0xff] }
 0xa12   :  { %1341 = vmatpush.msrb.mxu1 %v4593_v28  ;;  %v1226_v28 = vld [vmem:[%s5865_s7 + $0x8] sm:$0xff] }
 0xa13   :  { %1255 = vmatpush.msra.mxu3 %v1226_v28  ;;  %v1521_v28 = vld [vmem:[#allocation11 + $0x300] sm:$0xff] }
 0xa14   :  { %1342 = vmatpush.msrb.mxu1 %v4605_v52  ;;  %v1225_v52 = vld [vmem:[%s5865_s7] sm:$0xff] }
 0xa15   :  { %1256 = vmatpush.msra.mxu3 %v1225_v52  ;;  %v1523_v52 = vld [vmem:[#allocation11 + $0x310] sm:$0xff] }
 0xa16   :  { %1343 = vmatpush.msrb.mxu1 %v4617_v54 }
 0xa17   :  { %1553 = vmatpush.msrb.mxu3 %v1549_v43  ;;  %v1265_v43 = vld [vmem:[#allocation10 + $0x4] sm:$0x1] }
 0xa18   :  { %1344 = vmatpush.msrb.mxu1 %v4623_v57 }
 0xa6e   :  { %v1123_v15 = vpop.f32.mrf.mxu1 }
 0xa6f   :  { %v1126_v16 = vperm.slane %v1123_v15, 0 }
 0xa71   :  { %v4647_v17 = vsub.f32 %v1071_v10, %v1126_v16  ;;  %v4649_v18 = vsub.f32 %v1072_v11, %v1126_v16 }
 0xa73   :  { %v1129_v19 = vmul.f32 %v4647_v17, %v4647_v17  ;;  %v1130_v20 = vmul.f32 %v4649_v18, %v4649_v18 }
 0xa75   :  { %v1131_v21 = vadd.f32 %v1130_v20, %v1129_v19 }
 0xa76   :  { %v1214_v54 = vpop.f32.mrf.mxu1 }
 0xa77   :  { %v1132_v22 = vrot.slane %v1131_v21, 4  ;;  %v1220_v0 = vperm.slane %v1214_v54, 0 }
 0xa79   :  { %v1133_v23 = vadd.f32 %v1132_v22, %v1131_v21 }
 0xa7b   :  { %v1134_v24 = vrot.slane %v1133_v23, 2 }
 0xa7d   :  { %v1135_v25 = vadd.f32 %v1134_v24, %v1133_v23 }
 0xa7f   :  { %v1136_v42 = vrot.slane %v1135_v25, 1 }
 0xa81   :  { %v1137_v33 = vadd.f32 %v1136_v42, %v1135_v25 }
 0xa83   :  { %1154 = vmatmul.f32.vlgmr.msra.gmra.mxu2 %v1137_v33 }
 0xa84   :  { %1402 = vmatpush.msra.mxu2 %v4599_v29 }
 0xa86   :  { %1403 = vmatpush.msra.mxu2 %v4611_v53 }
 0xb06   :  { %v1155_v49 = vpop.f32.mrf.mxu2 }
 0xb07   :  { %v1158_v50 = vmul.f32 0.0078125, %v1155_v49  ;;  %v1545_v49 = vld [vmem:[#allocation11 + $0x3c0] sm:$0xff] }
 0xb08   :  { %1554 = vmatpush.msrb.mxu3 %v1545_v49  ;;  %v1492_v49 = vld [vmem:[#allocation11 + $0x218] sm:$0xff] }
 0xb09   :  { %v1159_v29 = vadd.f32 1e-05, %v1158_v50 }
 0xb0a   :  { %1555 = vmatpush.msrb.mxu3 %v1541_v31  ;;  %v1485_v31 = vld [vmem:[#allocation11 + $0x1f8] sm:$0xff] }
 0xb0b   :  { %3550 = vrsqrt.f32 %v1159_v29  ;;  %vm1166_vm12 = vweird.f32 %v1159_v29 }
 0xb0c   :  { %1556 = vmatpush.msrb.mxu3 %v1537_v32  ;;  %v1526_v32 = vld [vmem:[#allocation11 + $0x328] sm:$0xff] }
 0xb11   :  { %v3551_v53 = vpop.eup %3550 }
 0xb12   :  { %v1161_v55 = vmul.f32 %v3551_v53, %v1159_v29  ;;  %vm1167_vm11 = vweird.f32 %v3551_v53  ;;  %v1548_v29 = vld [vmem:[#allocation11 + $0x3d8] sm:$0xff] }
 0xb13   :  { %vm1168_vm13 = vmor %vm1166_vm12, %vm1167_vm11  ;;  %vm3369_vm11 = vcmask 782340   ;;  %vm3372_vm12 = vcmask 783365  }
 0xb14   :  { %v1162_v34 = vmul.f32 %v3551_v53, %v1161_v55  ;;  %v1533_v55 = vld [vmem:[#allocation11 + $0x360] sm:$0xff] }
 0xb15   :  { %1557 = vmatpush.msrb.mxu3 %v1533_v55  ;;  %v1476_v55 = vld [vmem:[#allocation11 + $0x1b0] sm:$0xff] }
 0xb16   :  { %v1163_v56 = vmul.f32 0.5, %v1162_v34  ;;  %v1535_v34 = vld [vmem:[#allocation11 + $0x370] sm:$0xff] }
 0xb18   :  { %v1164_v38 = vsub.f32 1.5, %v1163_v56  ;;  %v1536_v56 = vld [vmem:[#allocation11 + $0x378] sm:$0xff] }
 0xb1a   :  { %v1165_v61 = vmul.f32 %v3551_v53, %v1164_v38  ;;  %v1529_v38 = vld [vmem:[#allocation11 + $0x340] sm:$0xff] }
 0xb1b   :  { %1558 = vmatpush.msrb.mxu3 %v1529_v38  ;;  %v1518_v38 = vld [vmem:[#allocation11 + $0x2e8] sm:$0xff] }
 0xb1c   :  { %v1169_v44 = vsel %vm1168_vm13, %v3551_v53, %v1165_v61  ;;  %v1539_v53 = vld [vmem:[#allocation11 + $0x390] sm:$0xff]  ;;  %v1532_v61 = vld [vmem:[#allocation11 + $0x358] sm:$0xff]  ;;  %vm3375_vm13 = vcmask 784390  }
 0xb1d   :  { %v1170_v62 = vmul.f32 %v1169_v44, %v1073_v58  ;;  %v1531_v58 = vld [vmem:[#allocation11 + $0x350] sm:$0xff] }
 0xb1f   :  { %3513 = vmatmul.msk.f32.vlgmr.msra.gmra.mxu0 %vm347_vm1, %v1170_v62  ;;  %v1525_v62 = vld [vmem:[#allocation11 + $0x320] sm:$0xff] }
 0xb20   :  { %1599 = vmatpush.msra.mxu0 %v1551_v45  ;;  %1559 = vmatpush.msrb.mxu3 %v1525_v62  ;;  %v1491_v45 = vld [vmem:[#allocation11 + $0x210] sm:$0xff]  ;;  %v1502_v62 = vld [vmem:[#allocation11 + $0x268] sm:$0xff] }
 0xb22   :  { %1600 = vmatpush.msra.mxu0 %v1547_v60  ;;  %1560 = vmatpush.msrb.mxu3 %v1521_v28  ;;  %v1484_v60 = vld [vmem:[#allocation11 + $0x1f0] sm:$0xff]  ;;  %v1483_v28 = vld [vmem:[#allocation11 + $0x1e8] sm:$0xff] }
 0xb24   :  { %1601 = vmatpush.msra.mxu0 %v1543_v41  ;;  %v1478_v41 = vld [vmem:[#allocation11 + $0x1c0] sm:$0xff] }
 0xb26   :  { %1602 = vmatpush.msra.mxu0 %v1539_v53  ;;  %v1481_v53 = vld [vmem:[#allocation11 + $0x1d8] sm:$0xff] }
 0xb28   :  { %1603 = vmatpush.msra.mxu0 %v1535_v34  ;;  %v1522_v34 = vld [vmem:[#allocation11 + $0x308] sm:$0xff] }
 0xb2a   :  { %1604 = vmatpush.msra.mxu0 %v1531_v58  ;;  %v1514_v58 = vld [vmem:[#allocation11 + $0x2c8] sm:$0xff] }
 0xb2c   :  { %1605 = vmatpush.msra.mxu0 %v1527_v47  ;;  %v1498_v47 = vld [vmem:[#allocation11 + $0x248] sm:$0xff] }
 0xb2e   :  { %1606 = vmatpush.msra.mxu0 %v1523_v52  ;;  %v1479_v52 = vld [vmem:[#allocation11 + $0x1c8] sm:$0xff] }
 0xb9c   :  { %v1191_v57 = vpop.f32.mrf.mxu0 }
 0xb9d   :  { %v1217_v63 = vperm.slane %v1191_v57, 0  ;;  %v1524_v57 = vld [vmem:[#allocation11 + $0x318] sm:$0xff] }
 0xb9f   :  { %v1218_v1 = vmul.f32 %v1217_v63, %v4647_v17  ;;  %v1219_v5 = vmul.f32 %v1217_v63, %v4649_v18  ;;  %v1517_v63 = vld [vmem:[#allocation11 + $0x2e0] sm:$0xff] }
 0xba0   :  { %1561 = vmatpush.msrb.mxu3 %v1517_v63  ;;  %v1471_v63 = vld [vmem:[#allocation11 + $0x188] sm:$0xff] }
 0xba1   :  { %v1221_v2 = vadd.f32 %v1220_v0, %v1218_v1  ;;  %v1222_v9 = vadd.f32 %v1220_v0, %v1219_v5  ;;  %v1519_v0 = vld [vmem:[#allocation11 + $0x2f0] sm:$0xff]  ;;  %v1513_v5 = vld [vmem:[#allocation11 + $0x2c0] sm:$0xff] }
 0xba2   :  { %1607 = vmatpush.msra.mxu0 %v1519_v0  ;;  %1562 = vmatpush.msrb.mxu3 %v1513_v5  ;;  %v1472_v0 = vld [vmem:[#allocation11 + $0x190] sm:$0xff]  ;;  %v1467_v5 = vld [vmem:[#allocation11 + $0x168] sm:$0xff] }
 0xba3   :  { %v1223_v7 = vmax.f32 %v1221_v2, 0.0  ;;  %v1224_v10 = vmax.f32 %v1222_v9, 0.0  ;;  %v1520_v2 = vld [vmem:[#allocation11 + $0x2f8] sm:$0xff] }
 0xba5   :  { %1257 = vmatmul.f32.vlgmr.msra.gmra.mxu3 %v1223_v7  ;;  %v1515_v7 = vld [vmem:[#allocation11 + $0x2d0] sm:$0xff] }
 0xba6   :  { %1608 = vmatpush.msra.mxu0 %v1515_v7  ;;  %v1468_v7 = vld [vmem:[#allocation11 + $0x170] sm:$0xff] }
 0xbad   :  { %1260 = vmatmul.f32.gmra.mxu3 %v1224_v10  ;;  %v1516_v10 = vld [vmem:[#allocation11 + $0x2d8] sm:$0xff] }
 0xc28   :  { %v1258_v11 = vpop.f32.mrf.mxu3 }
 0xc30   :  { %v1261_v12 = vpop.f32.mrf.mxu3 }
 0xc31   :  { %v1266_v13 = vadd.f32 %v1261_v12, %v1258_v11 }
 0xc33   :  { %v1267_v26 = vrot.slane %v1266_v13, 4 }
 0xc35   :  { %v1268_v27 = vadd.f32 %v1267_v26, %v1266_v13  ;;  %v1264_v13 = vld [vmem:[#allocation8 + $0x4] sm:$0x1] }
 0xc37   :  { %v1269_v30 = vrot.slane %v1268_v27, 2 }
 0xc39   :  { %v1270_v59 = vadd.f32 %v1269_v30, %v1268_v27  ;;  %v1512_v27 = vld [vmem:[#allocation11 + $0x2b8] sm:$0xff]  ;;  %v1505_v30 = vld [vmem:[#allocation11 + $0x280] sm:$0xff] }
 0xc3b   :  { %v1271_v3 = vrot.slane %v1270_v59, 1 }
 0xc3d   :  { %v1272_v4 = vadd.f32 %v1271_v3, %v1270_v59  ;;  %v1507_v59 = vld [vmem:[#allocation11 + $0x290] sm:$0xff] }
 0xc3f   :  { %1289 = vmatmul.f32.vlgmr.msrb.gmra.mxu0 %v1272_v4  ;;  %v1508_v4 = vld [vmem:[#allocation11 + $0x298] sm:$0xff] }
 0xcbc   :  { %v1290_v14 = vpop.f32.mrf.mxu0 }
 0xcbd   :  { %v1293_v15 = vmul.f32 0.0078125, %v1290_v14 }
 0xcbf   :  { %3515 = vmatmul.msk.f32.vlgmr.msra.gmra.mxu1 %vm347_vm1, %v1293_v15  ;;  %v1550_v15 = vld [vmem:[#allocation11 + $0x3e8] sm:$0xff] }
 0xcc0   :  { %1622 = vmatpush.msra.mxu1 %v1552_v46  ;;  %v1534_v46 = vld [vmem:[#allocation11 + $0x368] sm:$0xff] }
 0xcc2   :  { %1623 = vmatpush.msra.mxu1 %v1548_v29  ;;  %v1530_v29 = vld [vmem:[#allocation11 + $0x348] sm:$0xff] }
 0xcc4   :  { %1624 = vmatpush.msra.mxu1 %v1544_v35  ;;  %v1480_v35 = vld [vmem:[#allocation11 + $0x1d0] sm:$0xff] }
 0xcc6   :  { %1625 = vmatpush.msra.mxu1 %v1540_v36  ;;  %v1474_v36 = vld [vmem:[#allocation11 + $0x1a0] sm:$0xff] }
 0xcc8   :  { %1626 = vmatpush.msra.mxu1 %v1536_v56  ;;  %v1477_v56 = vld [vmem:[#allocation11 + $0x1b8] sm:$0xff] }
 0xcca   :  { %1627 = vmatpush.msra.mxu1 %v1532_v61  ;;  %v1510_v61 = vld [vmem:[#allocation11 + $0x2a8] sm:$0xff] }
 0xccc   :  { %1628 = vmatpush.msra.mxu1 %v1528_v51  ;;  %v1490_v51 = vld [vmem:[#allocation11 + $0x208] sm:$0xff] }
 0xcce   :  { %1629 = vmatpush.msra.mxu1 %v1524_v57  ;;  %v1470_v57 = vld [vmem:[#allocation11 + $0x180] sm:$0xff] }
 0xcd0   :  { %1630 = vmatpush.msra.mxu1 %v1520_v2  ;;  %v1466_v2 = vld [vmem:[#allocation11 + $0x160] sm:$0xff] }
 0xcd2   :  { %1631 = vmatpush.msra.mxu1 %v1516_v10  ;;  %v1462_v10 = vld [vmem:[#allocation11 + $0x140] sm:$0xff] }
 0xcd4   :  { %1632 = vmatpush.msra.mxu1 %v1512_v27  ;;  %v1459_v27 = vld [vmem:[#allocation11 + $0x128] sm:$0xff] }
 0xcd6   :  { %1633 = vmatpush.msra.mxu1 %v1508_v4  ;;  %v1455_v4 = vld [vmem:[#allocation11 + $0x108] sm:$0xff] }
 0xd3c   :  { %v1314_v16 = vpop.f32.mrf.mxu1 }
 0xd3d   :  { %v1317_v17 = vperm.slane %v1314_v16, 0  ;;  %v1501_v16 = vld [vmem:[#allocation11 + $0x260] sm:$0xff] }
 0xd3f   :  { %v4726_v18 = vsub.f32 %v1258_v11, %v1317_v17  ;;  %v4728_v19 = vsub.f32 %v1261_v12, %v1317_v17  ;;  %v1509_v11 = vld [vmem:[#allocation11 + $0x2a0] sm:$0xff]  ;;  %v1511_v12 = vld [vmem:[#allocation11 + $0x2b0] sm:$0xff] }
 0xd40   :  { %1563 = vmatpush.msrb.mxu3 %v1509_v11  ;;  %1609 = vmatpush.msra.mxu0 %v1511_v12  ;;  %v1503_v17 = vld [vmem:[#allocation11 + $0x270] sm:$0xff]  ;;  %v1463_v11 = vld [vmem:[#allocation11 + $0x148] sm:$0xff] }
 0xd41   :  { %v1320_v20 = vmul.f32 %v4726_v18, %v4726_v18  ;;  %v1321_v21 = vmul.f32 %v4728_v19, %v4728_v19  ;;  %v1464_v12 = vld [vmem:[#allocation11 + $0x150] sm:$0xff] }
 0xd42   :  { %1564 = vmatpush.msrb.mxu3 %v1505_v30  ;;  %1610 = vmatpush.msra.mxu0 %v1507_v59  ;;  %v1460_v30 = vld [vmem:[#allocation11 + $0x130] sm:$0xff]  ;;  %v1461_v59 = vld [vmem:[#allocation11 + $0x138] sm:$0xff] }
 0xd43   :  { %v1322_v22 = vadd.f32 %v1321_v21, %v1320_v20  ;;  %v1504_v20 = vld [vmem:[#allocation11 + $0x278] sm:$0xff]  ;;  %v1546_v21 = vld [vmem:[#allocation11 + $0x3c8] sm:$0xff] }
 0xd44   :  { %1565 = vmatpush.msrb.mxu3 %v1501_v16  ;;  %1611 = vmatpush.msra.mxu0 %v1503_v17  ;;  %v1450_v16 = vld [vmem:[#allocation11 + $0xe0] sm:$0xff]  ;;  %v1451_v17 = vld [vmem:[#allocation11 + $0xe8] sm:$0xff] }
 0xd45   :  { %v1323_v23 = vrot.slane %v1322_v22, 4  ;;  %1634 = vmatpush.msra.mxu1 %v1504_v20  ;;  %v1452_v20 = vld [vmem:[#allocation11 + $0xf0] sm:$0xff] }
 0xd47   :  { %v1324_v24 = vadd.f32 %v1323_v23, %v1322_v22  ;;  %v1497_v22 = vld [vmem:[#allocation11 + $0x240] sm:$0xff]  ;;  %v1499_v23 = vld [vmem:[#allocation11 + $0x250] sm:$0xff] }
 0xd48   :  { %1566 = vmatpush.msrb.mxu3 %v1497_v22  ;;  %1612 = vmatpush.msra.mxu0 %v1499_v23  ;;  %v1446_v22 = vld [vmem:[#allocation11 + $0xc0] sm:$0xff]  ;;  %v1447_v23 = vld [vmem:[#allocation11 + $0xc8] sm:$0xff] }
 0xd49   :  { %v1325_v25 = vrot.slane %v1324_v24, 2 }
 0xd4b   :  { %v1326_v42 = vadd.f32 %v1325_v25, %v1324_v24  ;;  %v1500_v24 = vld [vmem:[#allocation11 + $0x258] sm:$0xff]  ;;  %v1542_v25 = vld [vmem:[#allocation11 + $0x3a8] sm:$0xff] }
 0xd4c   :  { %1635 = vmatpush.msra.mxu1 %v1500_v24  ;;  %v1448_v24 = vld [vmem:[#allocation11 + $0xd0] sm:$0xff] }
 0xd4d   :  { %v1327_v33 = vrot.slane %v1326_v42, 1 }
 0xd4f   :  { %v1328_v37 = vadd.f32 %v1327_v33, %v1326_v42  ;;  %v1493_v42 = vld [vmem:[#allocation11 + $0x220] sm:$0xff]  ;;  %v1495_v33 = vld [vmem:[#allocation11 + $0x230] sm:$0xff] }
 0xd50   :  { %1567 = vmatpush.msrb.mxu3 %v1493_v42  ;;  %1613 = vmatpush.msra.mxu0 %v1495_v33  ;;  %v1442_v42 = vld [vmem:[#allocation11 + $0xa0] sm:$0xff]  ;;  %v1443_v33 = vld [vmem:[#allocation11 + $0xa8] sm:$0xff] }
 0xd51   :  { %1345 = vmatmul.f32.vlgmr.msrb.gmra.mxu1 %v1328_v37  ;;  %v1496_v37 = vld [vmem:[#allocation11 + $0x238] sm:$0xff] }
 0xd52   :  { %1636 = vmatpush.msra.mxu1 %v1496_v37  ;;  %1614 = vmatpush.msra.mxu0 %v1491_v45  ;;  %v1444_v37 = vld [vmem:[#allocation11 + $0xb0] sm:$0xff] }
 0xd53   :  { %v1440_v45 = vld [vmem:[#allocation11 + $0x90] sm:$0xff] }
 0xd54   :  { %1637 = vmatpush.msra.mxu1 %v1492_v49  ;;  %1691 = vmatpush.msrb.mxu0 %v1484_v60  ;;  %v1434_v49 = vld [vmem:[#allocation11 + $0x60] sm:$0xff]  ;;  %v1436_v60 = vld [vmem:[#allocation11 + $0x70] sm:$0xff] }
 0xd56   :  { %1714 = vmatpush.msrb.mxu1 %v1485_v31  ;;  %1692 = vmatpush.msrb.mxu0 %v1480_v35  ;;  %v1430_v31 = vld [vmem:[#allocation11 + $0x40] sm:$0xff]  ;;  %v1432_v35 = vld [vmem:[#allocation11 + $0x50] sm:$0xff] }
 0xd58   :  { %1715 = vmatpush.msrb.mxu1 %v1481_v53  ;;  %1693 = vmatpush.msrb.mxu0 %v1476_v55  ;;  %v1426_v53 = vld [vmem:[#allocation11 + $0x20] sm:$0xff]  ;;  %v1428_v55 = vld [vmem:[#allocation11 + $0x30] sm:$0xff] }
 0xd5a   :  { %1716 = vmatpush.msrb.mxu1 %v1477_v56  ;;  %1694 = vmatpush.msrb.mxu0 %v1472_v0  ;;  %v1422_v56 = vld [vmem:[#allocation11] sm:$0xff] }
 0xd5c   :  { %1695 = vmatpush.msrb.mxu0 %v1468_v7  ;;  %v1802_v7 = vld [vmem:[#allocation11 + $0x5f0] sm:$0xff] }
 0xd5e   :  { %1696 = vmatpush.msrb.mxu0 %v1464_v12  ;;  %v1794_v12 = vld [vmem:[#allocation11 + $0x5b0] sm:$0xff] }
 0xd60   :  { %1697 = vmatpush.msrb.mxu0 %v1460_v30  ;;  %v1790_v30 = vld [vmem:[#allocation11 + $0x590] sm:$0xff] }
 0xdce   :  { %v1346_v39 = vpop.f32.mrf.mxu1 }
 0xdcf   :  { %v1349_v40 = vmul.f32 0.0078125, %v1346_v39  ;;  %v1538_v39 = vld [vmem:[#allocation11 + $0x388] sm:$0xff] }
 0xdd1   :  { %v4734_v50 = vadd.f32 1e-05, %v1349_v40  ;;  %v1489_v40 = vld [vmem:[#allocation11 + $0x200] sm:$0xff] }
 0xdd2   :  { %1568 = vmatpush.msrb.mxu3 %v1489_v40  ;;  %v1438_v40 = vld [vmem:[#allocation11 + $0x80] sm:$0xff] }
 0xdd3   :  { %3552 = vrsqrt.f32 %v4734_v50  ;;  %vm1357_vm15 = vweird.f32 %v4734_v50 }
 0xdd9   :  { %v3553_v44 = vpop.eup %3552 }
 0xdda   :  { %v1352_v48 = vmul.f32 %v3553_v44, %v4734_v50  ;;  %vm1358_vm14 = vweird.f32 %v3553_v44  ;;  %v1482_v50 = vld [vmem:[#allocation11 + $0x1e0] sm:$0xff] }
 0xddb   :  { %vm1359_vm0 = vmor %vm1357_vm15, %vm1358_vm14  ;;  %1645 = vmatpush.msra.mxu3 %v1482_v50  ;;  %v1435_v50 = vld [vmem:[#allocation11 + $0x68] sm:$0xff]  ;;  %vm3378_vm14 = vcmask 785415  }
 0xddc   :  { %v1353_v54 = vmul.f32 %v3553_v44, %v1352_v48  ;;  %v1494_v48 = vld [vmem:[#allocation11 + $0x228] sm:$0xff] }
 0xddd   :  { %1646 = vmatpush.msra.mxu3 %v1478_v41  ;;  %v1431_v41 = vld [vmem:[#allocation11 + $0x48] sm:$0xff] }
 0xdde   :  { %v1354_v1 = vmul.f32 0.5, %v1353_v54  ;;  %v1475_v54 = vld [vmem:[#allocation11 + $0x1a8] sm:$0xff] }
 0xddf   :  { %1647 = vmatpush.msra.mxu3 %v1474_v36  ;;  %v1427_v36 = vld [vmem:[#allocation11 + $0x28] sm:$0xff] }
 0xde0   :  { %v1355_v9 = vsub.f32 1.5, %v1354_v1  ;;  %v1473_v1 = vld [vmem:[#allocation11 + $0x198] sm:$0xff] }
 0xde1   :  { %1648 = vmatpush.msra.mxu3 %v1470_v57  ;;  %1717 = vmatpush.msrb.mxu1 %v1473_v1 }
 0xde2   :  { %v1356_v26 = vmul.f32 %v3553_v44, %v1355_v9  ;;  %v1469_v9 = vld [vmem:[#allocation11 + $0x178] sm:$0xff] }
 0xde3   :  { %1649 = vmatpush.msra.mxu3 %v1466_v2  ;;  %1718 = vmatpush.msrb.mxu1 %v1469_v9  ;;  %v1800_v2 = vld [vmem:[#allocation11 + $0x5e0] sm:$0xff]  ;;  %v1803_v9 = vld [vmem:[#allocation11 + $0x5f8] sm:$0xff] }
 0xde4   :  { %v1360_v3 = vsel %vm1359_vm0, %v3553_v44, %v1356_v26  ;;  %v1506_v44 = vld [vmem:[#allocation11 + $0x288] sm:$0xff]  ;;  %v1458_v26 = vld [vmem:[#allocation11 + $0x120] sm:$0xff] }
 0xde5   :  { %v1361_v14 = vmul.f32 %v1360_v3, %v1264_v13  ;;  %1650 = vmatpush.msra.mxu3 %v1462_v10  ;;  %v1465_v13 = vld [vmem:[#allocation11 + $0x158] sm:$0xff]  ;;  %v1454_v3 = vld [vmem:[#allocation11 + $0x100] sm:$0xff]  ;;  %v1798_v10 = vld [vmem:[#allocation11 + $0x5d0] sm:$0xff] }
 0xde6   :  { %1719 = vmatpush.msrb.mxu1 %v1465_v13  ;;  %v1795_v13 = vld [vmem:[#allocation11 + $0x5b8] sm:$0xff] }
 0xde7   :  { %3516 = vmatmul.msk.f32.vlgmr.msrb.gmra.mxu2 %vm347_vm1, %v1361_v14  ;;  %1651 = vmatpush.msra.mxu3 %v1458_v26  ;;  %v1456_v14 = vld [vmem:[#allocation11 + $0x110] sm:$0xff]  ;;  %v1788_v26 = vld [vmem:[#allocation11 + $0x580] sm:$0xff] }
 0xde8   :  { %1576 = vmatpush.msrb.mxu2 %v1550_v15  ;;  %1720 = vmatpush.msrb.mxu1 %v1461_v59  ;;  %v1457_v15 = vld [vmem:[#allocation11 + $0x118] sm:$0xff] }
 0xde9   :  { %1652 = vmatpush.msra.mxu3 %v1454_v3  ;;  %1698 = vmatpush.msrb.mxu0 %v1456_v14  ;;  %v1791_v59 = vld [vmem:[#allocation11 + $0x598] sm:$0xff]  ;;  %v1784_v3 = vld [vmem:[#allocation11 + $0x560] sm:$0xff]  ;;  %v1786_v14 = vld [vmem:[#allocation11 + $0x570] sm:$0xff] }
 0xdea   :  { %1577 = vmatpush.msrb.mxu2 %v1546_v21  ;;  %1721 = vmatpush.msrb.mxu1 %v1457_v15  ;;  %v1453_v21 = vld [vmem:[#allocation11 + $0xf8] sm:$0xff] }
 0xdeb   :  { %1653 = vmatpush.msra.mxu3 %v1450_v16  ;;  %1699 = vmatpush.msrb.mxu0 %v1452_v20  ;;  %v1787_v15 = vld [vmem:[#allocation11 + $0x578] sm:$0xff]  ;;  %v1780_v16 = vld [vmem:[#allocation11 + $0x540] sm:$0xff]  ;;  %v1782_v20 = vld [vmem:[#allocation11 + $0x550] sm:$0xff] }
 0xdec   :  { %1578 = vmatpush.msrb.mxu2 %v1542_v25  ;;  %1722 = vmatpush.msrb.mxu1 %v1453_v21  ;;  %v1449_v25 = vld [vmem:[#allocation11 + $0xd8] sm:$0xff] }
 0xded   :  { %1654 = vmatpush.msra.mxu3 %v1446_v22  ;;  %1700 = vmatpush.msrb.mxu0 %v1448_v24  ;;  %v1783_v21 = vld [vmem:[#allocation11 + $0x558] sm:$0xff]  ;;  %v1776_v22 = vld [vmem:[#allocation11 + $0x520] sm:$0xff]  ;;  %v1778_v24 = vld [vmem:[#allocation11 + $0x530] sm:$0xff] }
 0xdee   :  { %1579 = vmatpush.msrb.mxu2 %v1538_v39  ;;  %1723 = vmatpush.msrb.mxu1 %v1449_v25  ;;  %v1445_v39 = vld [vmem:[#allocation11 + $0xb8] sm:$0xff] }
 0xdef   :  { %3517 = vmatmul.msk.f32.vlgmr.msra.gmra.mxu2 %vm347_vm1, %v1265_v43  ;;  %1655 = vmatpush.msra.mxu3 %v1442_v42  ;;  %v1439_v43 = vld [vmem:[#allocation11 + $0x88] sm:$0xff]  ;;  %v1779_v25 = vld [vmem:[#allocation11 + $0x538] sm:$0xff]  ;;  %v1772_v42 = vld [vmem:[#allocation11 + $0x500] sm:$0xff] }
 0xdf0   :  { %1580 = vmatpush.msrb.mxu2 %v1534_v46  ;;  %1701 = vmatpush.msrb.mxu0 %v1444_v37  ;;  %v1441_v46 = vld [vmem:[#allocation11 + $0x98] sm:$0xff]  ;;  %v1774_v37 = vld [vmem:[#allocation11 + $0x510] sm:$0xff] }
 0xdf1   :  { %1724 = vmatpush.msrb.mxu1 %v1445_v39  ;;  %1656 = vmatpush.msra.mxu3 %v1438_v40  ;;  %v1775_v39 = vld [vmem:[#allocation11 + $0x518] sm:$0xff] }
 0xdf2   :  { %1581 = vmatpush.msrb.mxu2 %v1530_v29  ;;  %1702 = vmatpush.msrb.mxu0 %v1440_v45  ;;  %v1437_v29 = vld [vmem:[#allocation11 + $0x78] sm:$0xff]  ;;  %v1769_v45 = vld [vmem:[#allocation11 + $0x4e8] sm:$0xff] }
 0xdf3   :  { %1725 = vmatpush.msrb.mxu1 %v1441_v46  ;;  %1657 = vmatpush.msra.mxu3 %v1434_v49  ;;  %v1770_v46 = vld [vmem:[#allocation11 + $0x4f0] sm:$0xff]  ;;  %v1771_v49 = vld [vmem:[#allocation11 + $0x4f8] sm:$0xff] }
 0xdf4   :  { %1582 = vmatpush.msrb.mxu2 %v1526_v32  ;;  %1703 = vmatpush.msrb.mxu0 %v1436_v60  ;;  %v1433_v32 = vld [vmem:[#allocation11 + $0x58] sm:$0xff]  ;;  %v1765_v60 = vld [vmem:[#allocation11 + $0x4c8] sm:$0xff] }
 0xdf5   :  { %1726 = vmatpush.msrb.mxu1 %v1437_v29  ;;  %1658 = vmatpush.msra.mxu3 %v1430_v31  ;;  %v1766_v29 = vld [vmem:[#allocation11 + $0x4d0] sm:$0xff]  ;;  %v1767_v31 = vld [vmem:[#allocation11 + $0x4d8] sm:$0xff] }
 0xdf6   :  { %1583 = vmatpush.msrb.mxu2 %v1522_v34  ;;  %1704 = vmatpush.msrb.mxu0 %v1432_v35  ;;  %v1429_v34 = vld [vmem:[#allocation11 + $0x38] sm:$0xff]  ;;  %v1761_v35 = vld [vmem:[#allocation11 + $0x4a8] sm:$0xff] }
 0xdf7   :  { %1727 = vmatpush.msrb.mxu1 %v1433_v32  ;;  %1659 = vmatpush.msra.mxu3 %v1426_v53  ;;  %v1762_v32 = vld [vmem:[#allocation11 + $0x4b0] sm:$0xff]  ;;  %v1763_v53 = vld [vmem:[#allocation11 + $0x4b8] sm:$0xff] }
 0xdf8   :  { %1584 = vmatpush.msrb.mxu2 %v1518_v38  ;;  %1705 = vmatpush.msrb.mxu0 %v1428_v55  ;;  %v1423_v38 = vld [vmem:[#allocation11 + $0x8] sm:$0xff] }
 0xdf9   :  { %1728 = vmatpush.msrb.mxu1 %v1429_v34  ;;  %1660 = vmatpush.msra.mxu3 %v1422_v56  ;;  %v1757_v55 = vld [vmem:[#allocation11 + $0x488] sm:$0xff]  ;;  %v1758_v34 = vld [vmem:[#allocation11 + $0x490] sm:$0xff]  ;;  %v1759_v56 = vld [vmem:[#allocation11 + $0x498] sm:$0xff] }
 0xdfa   :  { %1585 = vmatpush.msrb.mxu2 %v1514_v58  ;;  %v1424_v58 = vld [vmem:[#allocation11 + $0x10] sm:$0xff] }
 0xdfb   :  { %1706 = vmatpush.msrb.mxu0 %v1424_v58  ;;  %v1752_v58 = vld [vmem:[#allocation11 + $0x460] sm:$0xff] }
 0xdfc   :  { %1586 = vmatpush.msrb.mxu2 %v1510_v61  ;;  %v1425_v61 = vld [vmem:[#allocation11 + $0x18] sm:$0xff] }
 0xdfd   :  { %1729 = vmatpush.msrb.mxu1 %v1425_v61  ;;  %v1753_v61 = vld [vmem:[#allocation11 + $0x468] sm:$0xff] }
 0xdfe   :  { %1587 = vmatpush.msrb.mxu2 %v1506_v44 }
 0xe00   :  { %1588 = vmatpush.msrb.mxu2 %v1502_v62 }
 0xe02   :  { %1589 = vmatpush.msrb.mxu2 %v1498_v47 }
 0xe04   :  { %1590 = vmatpush.msrb.mxu2 %v1494_v48 }
 0xe06   :  { %1591 = vmatpush.msrb.mxu2 %v1490_v51 }
 0xe08   :  { %1668 = vmatpush.msra.mxu2 %v1483_v28 }
 0xe0a   :  { %1669 = vmatpush.msra.mxu2 %v1479_v52 }
 0xe0c   :  { %1670 = vmatpush.msra.mxu2 %v1475_v54 }
 0xe0e   :  { %1671 = vmatpush.msra.mxu2 %v1471_v63 }
 0xe10   :  { %1672 = vmatpush.msra.mxu2 %v1467_v5  ;;  %v1801_v5 = vld [vmem:[#allocation11 + $0x5e8] sm:$0xff] }
 0xe12   :  { %1673 = vmatpush.msra.mxu2 %v1463_v11  ;;  %v1793_v11 = vld [vmem:[#allocation11 + $0x5a8] sm:$0xff] }
 0xe14   :  { %1674 = vmatpush.msra.mxu2 %v1459_v27  ;;  %v1789_v27 = vld [vmem:[#allocation11 + $0x588] sm:$0xff] }
 0xe16   :  { %1675 = vmatpush.msra.mxu2 %v1455_v4  ;;  %v1785_v4 = vld [vmem:[#allocation11 + $0x568] sm:$0xff] }
 0xe18   :  { %1676 = vmatpush.msra.mxu2 %v1451_v17  ;;  %v1781_v17 = vld [vmem:[#allocation11 + $0x548] sm:$0xff] }
 0xe1a   :  { %1677 = vmatpush.msra.mxu2 %v1447_v23  ;;  %v1777_v23 = vld [vmem:[#allocation11 + $0x528] sm:$0xff] }
 0xe1c   :  { %1678 = vmatpush.msra.mxu2 %v1443_v33  ;;  %v1773_v33 = vld [vmem:[#allocation11 + $0x508] sm:$0xff] }
 0xe1e   :  { %1679 = vmatpush.msra.mxu2 %v1439_v43  ;;  %v1768_v43 = vld [vmem:[#allocation11 + $0x4e0] sm:$0xff] }
 0xe20   :  { %1680 = vmatpush.msra.mxu2 %v1435_v50  ;;  %v1764_v50 = vld [vmem:[#allocation11 + $0x4c0] sm:$0xff] }
 0xe22   :  { %1681 = vmatpush.msra.mxu2 %v1431_v41  ;;  %v1760_v41 = vld [vmem:[#allocation11 + $0x4a0] sm:$0xff] }
 0xe24   :  { %1682 = vmatpush.msra.mxu2 %v1427_v36  ;;  %v1756_v36 = vld [vmem:[#allocation11 + $0x480] sm:$0xff] }
 0xe26   :  { %1683 = vmatpush.msra.mxu2 %v1423_v38 }
 0xe6a   :  { %v1382_v44 = vpop.f32.mrf.mxu2 }
 0xe6b   :  { %v1408_v62 = vperm.slane %v1382_v44, 0  ;;  %v1754_v44 = vld [vmem:[#allocation11 + $0x470] sm:$0xff] }
 0xe6d   :  { %v1409_v48 = vmul.f32 %v1408_v62, %v4726_v18  ;;  %v1410_v51 = vmul.f32 %v1408_v62, %v4728_v19  ;;  %v1796_v18 = vld [vmem:[#allocation11 + $0x5c0] sm:$0xff]  ;;  %v1797_v19 = vld [vmem:[#allocation11 + $0x5c8] sm:$0xff]  ;;  %v1755_v62 = vld [vmem:[#allocation11 + $0x478] sm:$0xff] }
 0xe72   :  { %v1405_v47 = vpop.f32.mrf.mxu2 }
 0xe73   :  { %v1411_v28 = vperm.slane %v1405_v47, 0  ;;  %v1748_v47 = vld [vmem:[#allocation11 + $0x440] sm:$0xff] }
 0xe75   :  { %v1412_v52 = vadd.f32 %v1411_v28, %v1409_v48  ;;  %v1413_v54 = vadd.f32 %v1411_v28, %v1410_v51  ;;  %v1749_v48 = vld [vmem:[#allocation11 + $0x448] sm:$0xff]  ;;  %v1750_v51 = vld [vmem:[#allocation11 + $0x450] sm:$0xff]  ;;  %v1751_v28 = vld [vmem:[#allocation11 + $0x458] sm:$0xff] }
 0xe77   :  { %v1414_v57 = vadd.f32 %v1412_v52, %v4571_v6  ;;  %v1415_v63 = vadd.f32 %v1413_v54, %v4574_v8  ;;  %v1799_v6 = vld [vmem:[#allocation11 + $0x5d8] sm:$0xff]  ;;  %v1792_v8 = vld [vmem:[#allocation11 + $0x5a0] sm:$0xff]  ;;  %v1745_v54 = vld [vmem:[#allocation11 + $0x428] sm:$0xff] }
 0xe78   :  { %v1744_v52 = vld [vmem:[#allocation11 + $0x420] sm:$0xff] }
 0xe79   :  { %v1416_v0 = vmax.f32 %v1414_v57, 0.0  ;;  %v1417_v1 = vmax.f32 %v1415_v63, 0.0  ;;  %v1746_v57 = vld [vmem:[#allocation11 + $0x430] sm:$0xff]  ;;  %v1747_v63 = vld [vmem:[#allocation11 + $0x438] sm:$0xff] }
 0xe7b   :  { %1418 = vst [vmem:[#allocation4 + $0x8] sm:$0xff] %v1416_v0  ;;  %1569 = vmatmul.f32.vlgmr.msrb.gmra.mxu3 %v1416_v0  ;;  %1592 = vmatmul.f32.vlgmr.msrb.gmra.mxu2 %v1416_v0 }
 0xe7c   :  { %1419 = vst [vmem:[#allocation4 + $0x20] sm:$0xff] %v1417_v1  ;;  %1615 = vmatmul.f32.vlgmr.msra.gmra.mxu0 %v1416_v0  ;;  %1638 = vmatmul.f32.vlgmr.msra.gmra.mxu1 %v1416_v0  ;;  %v1740_v0 = vld [vmem:[#allocation11 + $0x400] sm:$0xff] }
 0xe7d   :  { %1804 = vmatpush.msrb.mxu3 %v1800_v2  ;;  %1827 = vmatpush.msrb.mxu2 %v1801_v5  ;;  %v1742_v2 = vld [vmem:[#allocation11 + $0x410] sm:$0xff]  ;;  %v1743_v5 = vld [vmem:[#allocation11 + $0x418] sm:$0xff] }
 0xe7e   :  { %1850 = vmatpush.msra.mxu0 %v1802_v7  ;;  %1873 = vmatpush.msra.mxu1 %v1803_v9 }
 0xe7f   :  { %1805 = vmatpush.msrb.mxu3 %v1796_v18  ;;  %1828 = vmatpush.msrb.mxu2 %v1797_v19  ;;  %v4748_v18 = vld [vmem:[%s5871_s13 + $0x178] sm:$0xff] }
 0xe80   :  { %1851 = vmatpush.msra.mxu0 %v1798_v10  ;;  %1874 = vmatpush.msra.mxu1 %v1799_v6  ;;  %v4753_v19 = vld [vmem:[%s5871_s13 + $0x1f8] sm:$0xff]  ;;  %v4758_v10 = vld [vmem:[%s5871_s13 + $0x170] sm:$0xff] }
 0xe81   :  { %1806 = vmatpush.msrb.mxu3 %v1792_v8  ;;  %1829 = vmatpush.msrb.mxu2 %v1793_v11  ;;  %5898 = vst [vmem:[#allocation21_spill] sm:$0xff] %v4753_v19  ;;  %v4769_v11 = vld [vmem:[%s5871_s13 + $0x1f0] sm:$0xff] }
 0xe82   :  { %1852 = vmatpush.msra.mxu0 %v1794_v12  ;;  %1875 = vmatpush.msra.mxu1 %v1795_v13  ;;  %v1420_v40 = vld [vmem:[#allocation4 + $0x7] sm:$0xff]  ;;  %5899 = vst [vmem:[#allocation22_spill] sm:$0xff] %v4769_v11 }
 0xe83   :  { %1807 = vmatpush.msrb.mxu3 %v1788_v26  ;;  %1830 = vmatpush.msrb.mxu2 %v1789_v27  ;;  %v1421_v38 = vld [vmem:[#allocation4 + $0x1f] sm:$0xff]  ;;  %v1737_v7 = vld [vmem:[#allocation4 + $0x9] sm:$0xff] }
 0xe84   :  { %1853 = vmatpush.msra.mxu0 %v1790_v30  ;;  %1876 = vmatpush.msra.mxu1 %v1791_v59  ;;  %v1738_v9 = vld [vmem:[#allocation4 + $0x21] sm:$0xff]  ;;  %v4792_v30 = vld [vmem:[%s5871_s13 + $0x78] sm:$0xff] }
 0xe85   :  { %1572 = vmatmul.f32.gmra.mxu3 %v1417_v1  ;;  %1595 = vmatmul.f32.gmra.mxu2 %v1417_v1  ;;  %v4776_v12 = vld [vmem:[%s5871_s13 + $0x168] sm:$0xff]  ;;  %v4797_v59 = vld [vmem:[%s5871_s13 + $0xf8] sm:$0xff] }
 0xe86   :  { %1618 = vmatmul.f32.gmra.mxu0 %v1417_v1  ;;  %1641 = vmatmul.f32.gmra.mxu1 %v1417_v1  ;;  %v1741_v1 = vld [vmem:[#allocation11 + $0x408] sm:$0xff]  ;;  %v4781_v13 = vld [vmem:[%s5871_s13 + $0x1e8] sm:$0xff] }
 0xe87   :  { %1808 = vmatpush.msrb.mxu3 %v1784_v3  ;;  %1831 = vmatpush.msrb.mxu2 %v1785_v4  ;;  %5900 = vst [vmem:[#allocation23_spill] sm:$0xff] %v4781_v13  ;;  %v4802_v3 = vld [vmem:[%s5871_s13 + $0x160] sm:$0xff] }
 0xe88   :  { %1854 = vmatpush.msra.mxu0 %v1786_v14  ;;  %1877 = vmatpush.msra.mxu1 %v1787_v15  ;;  %v4809_v4 = vld [vmem:[%s5871_s13 + $0x1e0] sm:$0xff]  ;;  %v4816_v14 = vld [vmem:[%s5871_s13 + $0x70] sm:$0xff] }
 0xe89   :  { %1809 = vmatpush.msrb.mxu3 %v1780_v16  ;;  %1832 = vmatpush.msrb.mxu2 %v1781_v17  ;;  %5901 = vst [vmem:[#allocation24_spill] sm:$0xff] %v4809_v4  ;;  %v4821_v15 = vld [vmem:[%s5871_s13 + $0xf0] sm:$0xff]  ;;  %v4826_v16 = vld [vmem:[%s5871_s13 + $0x158] sm:$0xff] }
 0xe8a   :  { %1855 = vmatpush.msra.mxu0 %v1782_v20  ;;  %1878 = vmatpush.msra.mxu1 %v1783_v21  ;;  %v4837_v21 = vld [vmem:[%s5871_s13 + $0x1d8] sm:$0xff] }
 0xe8b   :  { %1810 = vmatpush.msrb.mxu3 %v1776_v22  ;;  %1833 = vmatpush.msrb.mxu2 %v1777_v23  ;;  %5902 = vst [vmem:[#allocation25_spill] sm:$0xff] %v4837_v21  ;;  %v4842_v22 = vld [vmem:[%s5871_s13 + $0x68] sm:$0xff] }
 0xe8c   :  { %1856 = vmatpush.msra.mxu0 %v1778_v24  ;;  %1879 = vmatpush.msra.mxu1 %v1779_v25  ;;  %v4847_v23 = vld [vmem:[%s5871_s13 + $0xe8] sm:$0xff]  ;;  %v4854_v24 = vld [vmem:[%s5871_s13 + $0x150] sm:$0xff] }
 0xe8d   :  { %1811 = vmatpush.msrb.mxu3 %v1772_v42  ;;  %1834 = vmatpush.msrb.mxu2 %v1773_v33  ;;  %v4859_v25 = vld [vmem:[%s5871_s13 + $0x1d0] sm:$0xff]  ;;  %v4868_v42 = vld [vmem:[%s5871_s13 + $0x60] sm:$0xff] }
 0xe8e   :  { %1857 = vmatpush.msra.mxu0 %v1774_v37  ;;  %1880 = vmatpush.msra.mxu1 %v1775_v39  ;;  %5903 = vst [vmem:[#allocation26_spill] sm:$0xff] %v4859_v25  ;;  %v4873_v33 = vld [vmem:[%s5871_s13 + $0xe0] sm:$0xff]  ;;  %v4878_v37 = vld [vmem:[%s5871_s13 + $0x148] sm:$0xff] }
 0xe8f   :  { %1661 = vmatmul.f32.vlgmr.msra.gmra.mxu3 %v1420_v40  ;;  %1684 = vmatmul.f32.vlgmr.msra.gmra.mxu2 %v1420_v40  ;;  %v4885_v39 = vld [vmem:[%s5871_s13 + $0x1c8] sm:$0xff] }
 0xe90   :  { %1707 = vmatmul.f32.vlgmr.msrb.gmra.mxu0 %v1420_v40  ;;  %1730 = vmatmul.f32.vlgmr.msrb.gmra.mxu1 %v1420_v40  ;;  %5904 = vst [vmem:[#allocation27_spill] sm:$0xff] %v4885_v39 }
 0xe91   :  { %1812 = vmatpush.msrb.mxu3 %v1768_v43  ;;  %1835 = vmatpush.msrb.mxu2 %v1769_v45  ;;  %v4896_v45 = vld [vmem:[%s5871_s13 + $0x58] sm:$0xff] }
 0xe92   :  { %1858 = vmatpush.msra.mxu0 %v1770_v46  ;;  %1881 = vmatpush.msra.mxu1 %v1771_v49  ;;  %v4901_v46 = vld [vmem:[%s5871_s13 + $0xd8] sm:$0xff]  ;;  %v4906_v49 = vld [vmem:[%s5871_s13 + $0x140] sm:$0xff] }
 0xe93   :  { %1813 = vmatpush.msrb.mxu3 %v1764_v50  ;;  %1836 = vmatpush.msrb.mxu2 %v1765_v60  ;;  %v4913_v50 = vld [vmem:[%s5871_s13 + $0x1c0] sm:$0xff]  ;;  %v4920_v60 = vld [vmem:[%s5871_s13 + $0x50] sm:$0xff] }
 0xe94   :  { %1859 = vmatpush.msra.mxu0 %v1766_v29  ;;  %1882 = vmatpush.msra.mxu1 %v1767_v31  ;;  %5905 = vst [vmem:[#allocation28_spill] sm:$0xff] %v4913_v50  ;;  %v4925_v29 = vld [vmem:[%s5871_s13 + $0xd0] sm:$0xff]  ;;  %v4930_v31 = vld [vmem:[%s5871_s13 + $0x138] sm:$0xff] }
 0xe95   :  { %1814 = vmatpush.msrb.mxu3 %v1760_v41  ;;  %1837 = vmatpush.msrb.mxu2 %v1761_v35  ;;  %v4937_v41 = vld [vmem:[%s5871_s13 + $0x1b8] sm:$0xff]  ;;  %v4944_v35 = vld [vmem:[%s5871_s13 + $0x48] sm:$0xff] }
 0xe96   :  { %1860 = vmatpush.msra.mxu0 %v1762_v32  ;;  %1883 = vmatpush.msra.mxu1 %v1763_v53  ;;  %5906 = vst [vmem:[#allocation29_spill] sm:$0xff] %v4937_v41  ;;  %v4949_v32 = vld [vmem:[%s5871_s13 + $0xc8] sm:$0xff]  ;;  %v4954_v53 = vld [vmem:[%s5871_s13 + $0x130] sm:$0xff] }
 0xe97   :  { %1815 = vmatpush.msrb.mxu3 %v1756_v36  ;;  %1838 = vmatpush.msrb.mxu2 %v1757_v55 }
 0xe98   :  { %1861 = vmatpush.msra.mxu0 %v1758_v34  ;;  %1884 = vmatpush.msra.mxu1 %v1759_v56  ;;  %v4965_v34 = vld [vmem:[%s5871_s13 + $0x1b0] sm:$0xff]  ;;  %v4972_v56 = vld [vmem:[%s5871_s13 + $0x40] sm:$0xff] }
 0xe99   :  { %1664 = vmatmul.f32.gmra.mxu3 %v1421_v38  ;;  %1687 = vmatmul.f32.gmra.mxu2 %v1421_v38  ;;  %5907 = vst [vmem:[#allocation30_spill] sm:$0xff] %v4965_v34 }
 0xe9a   :  { %1710 = vmatmul.f32.gmra.mxu0 %v1421_v38  ;;  %1733 = vmatmul.f32.gmra.mxu1 %v1421_v38  ;;  %v4977_v38 = vld [vmem:[%s5871_s13 + $0xc0] sm:$0xff] }
 0xe9b   :  { %1816 = vmatpush.msrb.mxu3 %v1752_v58  ;;  %1839 = vmatpush.msrb.mxu2 %v1753_v61  ;;  %v4982_v58 = vld [vmem:[%s5871_s13 + $0x128] sm:$0xff] }
 0xe9c   :  { %1862 = vmatpush.msra.mxu0 %v1754_v44  ;;  %1885 = vmatpush.msra.mxu1 %v1755_v62  ;;  %v4989_v61 = vld [vmem:[%s5871_s13 + $0x1a8] sm:$0xff]  ;;  %v4996_v44 = vld [vmem:[%s5871_s13 + $0x38] sm:$0xff] }
 0xe9d   :  { %1817 = vmatpush.msrb.mxu3 %v1748_v47  ;;  %1840 = vmatpush.msrb.mxu2 %v1749_v48  ;;  %5908 = vst [vmem:[#allocation31_spill] sm:$0xff] %v4989_v61  ;;  %v5001_v62 = vld [vmem:[%s5871_s13 + $0xb8] sm:$0xff]  ;;  %v5006_v47 = vld [vmem:[%s5871_s13 + $0x120] sm:$0xff] }
 0xe9e   :  { %1863 = vmatpush.msra.mxu0 %v1750_v51  ;;  %1886 = vmatpush.msra.mxu1 %v1751_v28  ;;  %v5013_v48 = vld [vmem:[%s5871_s13 + $0x1a0] sm:$0xff] }
 0xe9f   :  { %1818 = vmatpush.msrb.mxu3 %v1744_v52  ;;  %1841 = vmatpush.msrb.mxu2 %v1745_v54  ;;  %5909 = vst [vmem:[#allocation32_spill] sm:$0xff] %v5013_v48  ;;  %v5024_v52 = vld [vmem:[%s5871_s13 + $0x30] sm:$0xff] }
 0xea0   :  { %1864 = vmatpush.msra.mxu0 %v1746_v57  ;;  %1887 = vmatpush.msra.mxu1 %v1747_v63  ;;  %v5029_v54 = vld [vmem:[%s5871_s13 + $0xb0] sm:$0xff]  ;;  %v5034_v57 = vld [vmem:[%s5871_s13 + $0x118] sm:$0xff] }
 0xea1   :  { %1819 = vmatpush.msrb.mxu3 %v1740_v0  ;;  %1842 = vmatpush.msrb.mxu2 %v1741_v1  ;;  %v5041_v63 = vld [vmem:[%s5871_s13 + $0x198] sm:$0xff]  ;;  %v5048_v0 = vld [vmem:[%s5871_s13 + $0x28] sm:$0xff] }
 0xea2   :  { %1865 = vmatpush.msra.mxu0 %v1742_v2  ;;  %1888 = vmatpush.msra.mxu1 %v1743_v5  ;;  %5910 = vst [vmem:[#allocation33_spill] sm:$0xff] %v5041_v63  ;;  %v5053_v1 = vld [vmem:[%s5871_s13 + $0xa8] sm:$0xff]  ;;  %v5058_v2 = vld [vmem:[%s5871_s13 + $0x110] sm:$0xff] }
 0xea3   :  { %1820 = vmatmul.f32.vlgmr.msrb.gmra.mxu3 %v1737_v7  ;;  %1843 = vmatmul.f32.vlgmr.msrb.gmra.mxu2 %v1737_v7  ;;  %v5065_v5 = vld [vmem:[%s5871_s13 + $0x190] sm:$0xff] }
 0xea4   :  { %1866 = vmatmul.f32.vlgmr.msra.gmra.mxu0 %v1737_v7  ;;  %1889 = vmatmul.f32.vlgmr.msra.gmra.mxu1 %v1737_v7  ;;  %5911 = vst [vmem:[#allocation34_spill] sm:$0xff] %v5065_v5  ;;  %v5072_v7 = vld [vmem:[%s5871_s13 + $0x20] sm:$0xff] }
 0xea5   :  { %1974 = vmatpush.msrb.mxu0 %v4748_v18  ;;  %1994 = vmatpush.msrb.mxu1 %v4753_v19  ;;  %v5147_v19 = vld [vmem:[%s5871_s13 + $0x80] sm:$0xff] }
 0xea6   :  { %1934 = vmatpush.msra.mxu3 %v4792_v30  ;;  %1954 = vmatpush.msra.mxu2 %v4797_v59  ;;  %5921 = vst [vmem:[#allocation44_spill] sm:$0xff] %v5147_v19 }
 0xea7   :  { %1975 = vmatpush.msrb.mxu0 %v4758_v10  ;;  %1995 = vmatpush.msrb.mxu1 %v4769_v11  ;;  %v5142_v11 = vld [vmem:[%s5871_s13] sm:$0xff] }
 0xea8   :  { %1935 = vmatpush.msra.mxu3 %v4816_v14  ;;  %1955 = vmatpush.msra.mxu2 %v4821_v15  ;;  %5920 = vst [vmem:[#allocation43_spill] sm:$0xff] %v5142_v11 }
 0xea9   :  { %1976 = vmatpush.msrb.mxu0 %v4776_v12  ;;  %1996 = vmatpush.msrb.mxu1 %v4781_v13 }
 0xeaa   :  { %1936 = vmatpush.msra.mxu3 %v4842_v22  ;;  %1956 = vmatpush.msra.mxu2 %v4847_v23 }
 0xeab   :  { %1823 = vmatmul.f32.gmra.mxu3 %v1738_v9  ;;  %1846 = vmatmul.f32.gmra.mxu2 %v1738_v9 }
 0xeac   :  { %1869 = vmatmul.f32.gmra.mxu0 %v1738_v9  ;;  %1892 = vmatmul.f32.gmra.mxu1 %v1738_v9  ;;  %v5077_v9 = vld [vmem:[%s5871_s13 + $0xa0] sm:$0xff] }
 0xead   :  { %1977 = vmatpush.msrb.mxu0 %v4802_v3  ;;  %1997 = vmatpush.msrb.mxu1 %v4809_v4 }
 0xeae   :  { %1937 = vmatpush.msra.mxu3 %v4868_v42  ;;  %1957 = vmatpush.msra.mxu2 %v4873_v33 }
 0xeaf   :  { %1978 = vmatpush.msrb.mxu0 %v4826_v16  ;;  %1998 = vmatpush.msrb.mxu1 %v4837_v21  ;;  %v5132_v21 = vld [vmem:[%s5871_s13 + $0x8] sm:$0xff] }
 0xeb0   :  { %1938 = vmatpush.msra.mxu3 %v4896_v45  ;;  %1958 = vmatpush.msra.mxu2 %v4901_v46  ;;  %5918 = vst [vmem:[#allocation41_spill] sm:$0xff] %v5132_v21 }
 0xeb1   :  { %1979 = vmatpush.msrb.mxu0 %v4854_v24  ;;  %1999 = vmatpush.msrb.mxu1 %v4859_v25  ;;  %v5125_v25 = vld [vmem:[%s5871_s13 + $0x90] sm:$0xff] }
 0xeb2   :  { %1939 = vmatpush.msra.mxu3 %v4920_v60  ;;  %1959 = vmatpush.msra.mxu2 %v4925_v29  ;;  %5917 = vst [vmem:[#allocation40_spill] sm:$0xff] %v5125_v25 }
 0xeb3   :  { %1980 = vmatpush.msrb.mxu0 %v4878_v37  ;;  %2000 = vmatpush.msrb.mxu1 %v4885_v39  ;;  %v5120_v39 = vld [vmem:[%s5871_s13 + $0x10] sm:$0xff] }
 0xeb4   :  { %1940 = vmatpush.msra.mxu3 %v4944_v35  ;;  %1960 = vmatpush.msra.mxu2 %v4949_v32  ;;  %5916 = vst [vmem:[#allocation39_spill] sm:$0xff] %v5120_v39 }
 0xeb5   :  { %1981 = vmatpush.msrb.mxu0 %v4906_v49  ;;  %2001 = vmatpush.msrb.mxu1 %v4913_v50  ;;  %v5106_v50 = vld [vmem:[%s5871_s13 + $0x100] sm:$0xff] }
 0xeb6   :  { %1941 = vmatpush.msra.mxu3 %v4972_v56  ;;  %1961 = vmatpush.msra.mxu2 %v4977_v38 }
 0xeb7   :  { %1982 = vmatpush.msrb.mxu0 %v4930_v31  ;;  %2002 = vmatpush.msrb.mxu1 %v4937_v41  ;;  %v5101_v41 = vld [vmem:[%s5871_s13 + $0x98] sm:$0xff] }
 0xeb8   :  { %1942 = vmatpush.msra.mxu3 %v4996_v44  ;;  %1962 = vmatpush.msra.mxu2 %v5001_v62  ;;  %5914 = vst [vmem:[#allocation37_spill] sm:$0xff] %v5101_v41 }
 0xeb9   :  { %1983 = vmatpush.msrb.mxu0 %v4954_v53  ;;  %2003 = vmatpush.msrb.mxu1 %v4965_v34  ;;  %v5096_v34 = vld [vmem:[%s5871_s13 + $0x18] sm:$0xff] }
 0xeba   :  { %1943 = vmatpush.msra.mxu3 %v5024_v52  ;;  %1963 = vmatpush.msra.mxu2 %v5029_v54  ;;  %5913 = vst [vmem:[#allocation36_spill] sm:$0xff] %v5096_v34 }
 0xebb   :  { %1984 = vmatpush.msrb.mxu0 %v4982_v58  ;;  %2004 = vmatpush.msrb.mxu1 %v4989_v61 }
 0xebc   :  { %1944 = vmatpush.msra.mxu3 %v5048_v0  ;;  %1964 = vmatpush.msra.mxu2 %v5053_v1 }
 0xebd   :  { %1985 = vmatpush.msrb.mxu0 %v5006_v47  ;;  %2005 = vmatpush.msrb.mxu1 %v5013_v48 }
 0xebe   :  { %1945 = vmatpush.msra.mxu3 %v5072_v7  ;;  %1965 = vmatpush.msra.mxu2 %v5077_v9 }
 0xebf   :  { %1986 = vmatpush.msrb.mxu0 %v5034_v57  ;;  %2006 = vmatpush.msrb.mxu1 %v5041_v63  ;;  %v5082_v63 = vld [vmem:[%s5871_s13 + $0x108] sm:$0xff] }
 0xec0   :  { %1946 = vmatpush.msra.mxu3 %v5096_v34  ;;  %1966 = vmatpush.msra.mxu2 %v5101_v41 }
 0xec1   :  { %1987 = vmatpush.msrb.mxu0 %v5058_v2  ;;  %2007 = vmatpush.msrb.mxu1 %v5065_v5  ;;  %v5089_v5 = vld [vmem:[%s5871_s13 + $0x188] sm:$0xff] }
 0xec2   :  { %5912 = vst [vmem:[#allocation35_spill] sm:$0xff] %v5089_v5  ;;  %1947 = vmatpush.msra.mxu3 %v5120_v39  ;;  %1967 = vmatpush.msra.mxu2 %v5125_v25 }
 0xec3   :  { %1988 = vmatpush.msrb.mxu0 %v5082_v63  ;;  %2008 = vmatpush.msrb.mxu1 %v5089_v5  ;;  %v5113_v5 = vld [vmem:[%s5871_s13 + $0x180] sm:$0xff] }
 0xec4   :  { %5915 = vst [vmem:[#allocation38_spill] sm:$0xff] %v5113_v5  ;;  %1948 = vmatpush.msra.mxu3 %v5132_v21 }
 0xec5   :  { %1989 = vmatpush.msrb.mxu0 %v5106_v50  ;;  %2009 = vmatpush.msrb.mxu1 %v5113_v5  ;;  %v5137_v5 = vld [vmem:[%s5871_s13 + $0x88] sm:$0xff] }
 0xec6   :  { %5919 = vst [vmem:[#allocation42_spill] sm:$0xff] %v5137_v5  ;;  %1968 = vmatpush.msra.mxu2 %v5137_v5  ;;  %1949 = vmatpush.msra.mxu3 %v5142_v11 }
 0xec7   :  { %2186 = vmatpush.msra.mxu1 %v4748_v18 }
 0xec8   :  { %1969 = vmatpush.msra.mxu2 %v5147_v19 }
 0xec9   :  { %2187 = vmatpush.msra.mxu1 %v4758_v10 }
 0xecb   :  { %2188 = vmatpush.msra.mxu1 %v4776_v12 }
 0xecd   :  { %2189 = vmatpush.msra.mxu1 %v4802_v3 }
 0xecf   :  { %2190 = vmatpush.msra.mxu1 %v4826_v16 }
 0xed1   :  { %2191 = vmatpush.msra.mxu1 %v4854_v24 }
 0xed3   :  { %2192 = vmatpush.msra.mxu1 %v4878_v37 }
 0xed5   :  { %2193 = vmatpush.msra.mxu1 %v4906_v49 }
 0xed7   :  { %2194 = vmatpush.msra.mxu1 %v4930_v31 }
 0xed9   :  { %2195 = vmatpush.msra.mxu1 %v4954_v53 }
 0xedb   :  { %2196 = vmatpush.msra.mxu1 %v4982_v58 }
 0xedd   :  { %2197 = vmatpush.msra.mxu1 %v5006_v47 }
 0xedf   :  { %2198 = vmatpush.msra.mxu1 %v5034_v57 }
 0xee1   :  { %2199 = vmatpush.msra.mxu1 %v5058_v2  ;;  %v5207_v2 = vld [vmem:[#allocation16 + $0x28] sm:$0xff] }
 0xee2   :  { %2052 = vmatpush.msrb.mxu2 %v5207_v2 }
 0xee3   :  { %2200 = vmatpush.msra.mxu1 %v5082_v63  ;;  %v5212_v63 = vld [vmem:[#allocation16] sm:$0xff] }
 0xee5   :  { %2201 = vmatpush.msra.mxu1 %v5106_v50  ;;  %v5224_v50 = vld [vmem:[#allocation16 + $0x38] sm:$0xff] }
 0xef9   :  { %v4760_v6 = vpop.f32.mrf.mxu0  ;;  %v4762_v8 = vpop.f32.mrf.mxu1 }
 0xefe   :  { %v4783_v26 = vpop.f32.mrf.mxu3  ;;  %v4785_v27 = vpop.f32.mrf.mxu2 }
 0xf03   :  { %v4828_v17 = vpop.f32.mrf.mxu0  ;;  %v4830_v20 = vpop.f32.mrf.mxu1 }
 0xf08   :  { %v4887_v40 = vpop.f32.mrf.mxu3  ;;  %v4889_v43 = vpop.f32.mrf.mxu2 }
 0xf0d   :  { %v4956_v36 = vpop.f32.mrf.mxu0  ;;  %v4958_v55 = vpop.f32.mrf.mxu1 }
 0xf0e   :  { %v1709_v5 = vadd.f32 %v4956_v36, %v4760_v6  ;;  %v1732_v10 = vadd.f32 %v4958_v55, %v4762_v8 }
 0xf12   :  { %v5015_v51 = vpop.f32.mrf.mxu3  ;;  %v5017_v28 = vpop.f32.mrf.mxu2 }
 0xf17   :  { %v1711_v48 = vpop.f32.mrf.mxu0  ;;  %v1734_v61 = vpop.f32.mrf.mxu1 }
 0xf18   :  { %v1712_v19 = vadd.f32 %v1711_v48, %v4828_v17  ;;  %v1735_v12 = vadd.f32 %v1734_v61, %v4830_v20  ;;  %v1663_v17 = vadd.f32 %v5015_v51, %v4783_v26  ;;  %v1686_v20 = vadd.f32 %v5017_v28, %v4785_v27 }
 0xf1c   :  { %v1665_v4 = vpop.f32.mrf.mxu3  ;;  %v1688_v13 = vpop.f32.mrf.mxu2 }
 0xf21   :  { %v1867_v25 = vpop.f32.mrf.mxu0  ;;  %v1890_v39 = vpop.f32.mrf.mxu1 }
 0xf22   :  { %v5166_v21 = vadd.f32 %v1867_v25, %v1709_v5  ;;  %v5168_v16 = vadd.f32 %v1890_v39, %v1732_v10 }
 0xf26   :  { %v1821_v41 = vpop.f32.mrf.mxu3  ;;  %v1844_v18 = vpop.f32.mrf.mxu2 }
 0xf27   :  { %v5187_v36 = vadd.f32 %v1821_v41, %v1663_v17  ;;  %v5189_v55 = vadd.f32 %v1844_v18, %v1686_v20 }
 0xf29   :  { %v1870_v11 = vpop.f32.mrf.mxu0  ;;  %v1893_v3 = vpop.f32.mrf.mxu1 }
 0xf2a   :  { %v5170_v34 = vadd.f32 %v1870_v11, %v1712_v19  ;;  %v5172_v24 = vadd.f32 %v1893_v3, %v1735_v12  ;;  %v1666_v19 = vadd.f32 %v1665_v4, %v4887_v40  ;;  %v1689_v11 = vadd.f32 %v1688_v13, %v4889_v43 }
 0xf2c   :  { %v1920_v6 = vadd.f32 %v5170_v34, %v5166_v21  ;;  %v1927_v8 = vadd.f32 %v5172_v24, %v5168_v16 }
 0xf2e   :  { %v1921_v25 = vrot.slane %v1920_v6, 4  ;;  %v1928_v37 = vrot.slane %v1927_v8, 4  ;;  %v1824_v39 = vpop.f32.mrf.mxu3  ;;  %v1847_v49 = vpop.f32.mrf.mxu2 }
 0xf2f   :  { %v5191_v31 = vadd.f32 %v1824_v39, %v1666_v19  ;;  %v5193_v26 = vadd.f32 %v1847_v49, %v1689_v11  ;;  %v5205_v11 = vld [vmem:[#allocation16 + $0x20] sm:$0xff]  ;;  %v5217_v39 = vld [vmem:[#allocation16 + $0x10] sm:$0xff]  ;;  %v5226_v49 = vld [vmem:[#allocation16 + $0x18] sm:$0xff] }
 0xf30   :  { %v1922_v61 = vadd.f32 %v1921_v25, %v1920_v6  ;;  %v1929_v27 = vadd.f32 %v1928_v37, %v1927_v8  ;;  %v5209_v25 = vld [vmem:[#allocation16 + $0x30] sm:$0xff]  ;;  %2032 = vmatpush.msrb.mxu3 %v5205_v11  ;;  %v5215_v37 = vld [vmem:[#allocation16 + $0x8] sm:$0xff] }
 0xf31   :  { %v1906_v13 = vadd.f32 %v5191_v31, %v5187_v36  ;;  %v1913_v4 = vadd.f32 %v5193_v26, %v5189_v55  ;;  %2072 = vmatpush.msra.mxu0 %v5209_v25  ;;  %2053 = vmatpush.msrb.mxu2 %v5215_v37 }
 0xf32   :  { %v1923_v40 = vrot.slane %v1922_v61, 2  ;;  %v1930_v43 = vrot.slane %v1929_v27, 2  ;;  %2033 = vmatpush.msrb.mxu3 %v5212_v63 }
 0xf33   :  { %v1907_v41 = vrot.slane %v1906_v13, 4  ;;  %v1914_v53 = vrot.slane %v1913_v4, 4  ;;  %2073 = vmatpush.msra.mxu0 %v5217_v39 }
 0xf34   :  { %v1924_v48 = vadd.f32 %v1923_v40, %v1922_v61  ;;  %v1931_v51 = vadd.f32 %v1930_v43, %v1929_v27  ;;  %v5938_v61 = vld [vmem:[#allocation29_spill] sm:$0xff]  ;;  %v5939_v27 = vld [vmem:[#allocation30_spill] sm:$0xff] }
 0xf35   :  { %v1908_v28 = vadd.f32 %v1907_v41, %v1906_v13  ;;  %v1915_v5 = vadd.f32 %v1914_v53, %v1913_v4  ;;  %v5940_v13 = vld [vmem:[#allocation31_spill] sm:$0xff]  ;;  %v5941_v4 = vld [vmem:[#allocation32_spill] sm:$0xff]  ;;  %v5942_v40 = vld [vmem:[#allocation33_spill] sm:$0xff] }
 0xf36   :  { %v1925_v18 = vrot.slane %v1924_v48, 1  ;;  %v1932_v58 = vrot.slane %v1931_v51, 1  ;;  %v5943_v43 = vld [vmem:[#allocation34_spill] sm:$0xff]  ;;  %v5944_v41 = vld [vmem:[#allocation35_spill] sm:$0xff] }
 0xf37   :  { %v1909_v10 = vrot.slane %v1908_v28, 2  ;;  %v1916_v12 = vrot.slane %v1915_v5, 2  ;;  %v5945_v53 = vld [vmem:[#allocation38_spill] sm:$0xff] }
 0xf38   :  { %v1926_v3 = vadd.f32 %v1925_v18, %v1924_v48  ;;  %v1933_v6 = vadd.f32 %v1932_v58, %v1931_v51 }
 0xf39   :  { %v1910_v8 = vadd.f32 %v1909_v10, %v1908_v28  ;;  %v1917_v47 = vadd.f32 %v1916_v12, %v1915_v5 }
 0xf3a   :  { %1990 = vmatmul.f32.vlgmr.msrb.gmra.mxu0 %v1926_v3  ;;  %2010 = vmatmul.f32.vlgmr.msrb.gmra.mxu1 %v1933_v6 }
 0xf3b   :  { %v1911_v17 = vrot.slane %v1910_v8, 1  ;;  %v1918_v20 = vrot.slane %v1917_v47, 1  ;;  %2296 = vmatpush.msrb.mxu1 %v5209_v25  ;;  %2166 = vmatpush.msrb.mxu0 %v4797_v59 }
 0xf3d   :  { %v1912_v57 = vadd.f32 %v1911_v17, %v1910_v8  ;;  %v1919_v19 = vadd.f32 %v1918_v20, %v1917_v47  ;;  %2297 = vmatpush.msrb.mxu1 %v5217_v39  ;;  %2167 = vmatpush.msrb.mxu0 %v4821_v15 }
 0xf3f   :  { %1950 = vmatmul.f32.vlgmr.msra.gmra.mxu3 %v1912_v57  ;;  %1970 = vmatmul.f32.vlgmr.msra.gmra.mxu2 %v1919_v19 }
 0xf40   :  { %2146 = vmatpush.msra.mxu2 %v4792_v30  ;;  %2092 = vmatpush.msra.mxu3 %v5224_v50 }
 0xf41   :  { %2168 = vmatpush.msrb.mxu0 %v4847_v23 }
 0xf42   :  { %2147 = vmatpush.msra.mxu2 %v4816_v14  ;;  %2093 = vmatpush.msra.mxu3 %v5226_v49 }
 0xf43   :  { %2169 = vmatpush.msrb.mxu0 %v4873_v33 }
 0xf44   :  { %2148 = vmatpush.msra.mxu2 %v4842_v22  ;;  %v5922_v22 = vld [vmem:[#allocation36_spill] sm:$0xff] }
 0xf45   :  { %2170 = vmatpush.msrb.mxu0 %v4901_v46 }
 0xf46   :  { %2149 = vmatpush.msra.mxu2 %v4868_v42  ;;  %v5923_v42 = vld [vmem:[#allocation37_spill] sm:$0xff] }
 0xf47   :  { %2171 = vmatpush.msrb.mxu0 %v4925_v29  ;;  %v5926_v29 = vld [vmem:[#allocation41_spill] sm:$0xff] }
 0xf48   :  { %2150 = vmatpush.msra.mxu2 %v4896_v45  ;;  %v5924_v45 = vld [vmem:[#allocation39_spill] sm:$0xff] }
 0xf49   :  { %2172 = vmatpush.msrb.mxu0 %v4949_v32  ;;  %v5927_v32 = vld [vmem:[#allocation42_spill] sm:$0xff] }
 0xf4a   :  { %2151 = vmatpush.msra.mxu2 %v4920_v60  ;;  %v5925_v60 = vld [vmem:[#allocation40_spill] sm:$0xff] }
 0xf4b   :  { %2173 = vmatpush.msrb.mxu0 %v4977_v38  ;;  %v5929_v38 = vld [vmem:[#allocation21_spill] sm:$0xff] }
 0xf4c   :  { %2152 = vmatpush.msra.mxu2 %v4944_v35 }
 0xf4d   :  { %2174 = vmatpush.msrb.mxu0 %v5001_v62  ;;  %v5931_v62 = vld [vmem:[#allocation22_spill] sm:$0xff] }
 0xf4e   :  { %2153 = vmatpush.msra.mxu2 %v4972_v56  ;;  %v5928_v56 = vld [vmem:[#allocation43_spill] sm:$0xff] }
 0xf4f   :  { %2175 = vmatpush.msrb.mxu0 %v5029_v54  ;;  %v5933_v54 = vld [vmem:[#allocation24_spill] sm:$0xff] }
 0xf50   :  { %2154 = vmatpush.msra.mxu2 %v4996_v44  ;;  %v5930_v44 = vld [vmem:[#allocation44_spill] sm:$0xff] }
 0xf51   :  { %2176 = vmatpush.msrb.mxu0 %v5053_v1  ;;  %v5935_v1 = vld [vmem:[#allocation26_spill] sm:$0xff] }
 0xf52   :  { %2155 = vmatpush.msra.mxu2 %v5024_v52  ;;  %v5932_v52 = vld [vmem:[#allocation23_spill] sm:$0xff] }
 0xf53   :  { %2177 = vmatpush.msrb.mxu0 %v5077_v9  ;;  %v5937_v9 = vld [vmem:[#allocation28_spill] sm:$0xff] }
 0xf54   :  { %2156 = vmatpush.msra.mxu2 %v5048_v0  ;;  %v5934_v0 = vld [vmem:[#allocation25_spill] sm:$0xff] }
 0xf55   :  { %2178 = vmatpush.msrb.mxu0 %v5923_v42 }
 0xf56   :  { %2157 = vmatpush.msra.mxu2 %v5072_v7  ;;  %v5936_v7 = vld [vmem:[#allocation27_spill] sm:$0xff] }
 0xf57   :  { %2179 = vmatpush.msrb.mxu0 %v5925_v60 }
 0xf58   :  { %2158 = vmatpush.msra.mxu2 %v5922_v22 }
 0xf59   :  { %2180 = vmatpush.msrb.mxu0 %v5927_v32 }
 0xf5a   :  { %2159 = vmatpush.msra.mxu2 %v5924_v45 }
 0xf5b   :  { %2181 = vmatpush.msrb.mxu0 %v5930_v44 }
 0xf5c   :  { %2160 = vmatpush.msra.mxu2 %v5926_v29 }
 0xf5e   :  { %2161 = vmatpush.msra.mxu2 %v5928_v56 }
 0xfb7   :  { %v1991_v15 = vpop.f32.mrf.mxu0  ;;  %v2011_v33 = vpop.f32.mrf.mxu1 }
 0xfc2   :  { %v1951_v30 = vpop.f32.mrf.mxu3  ;;  %v1971_v59 = vpop.f32.mrf.mxu2 }
 0xfc3   :  { %v1972_v14 = vadd.f32 %v1971_v59, %v1951_v30 }
 0xfc5   :  { %v1992_v23 = vadd.f32 %v1991_v15, %v1972_v14 }
 0xfc7   :  { %v2012_v46 = vadd.f32 %v2011_v33, %v1992_v23 }
 0xfc9   :  { %v2014_v35 = vmul.f32 0.001953125, %v2012_v46 }
 0xfcb   :  { %3518 = vmatmul.msk.f32.vlgmr.msrb.gmra.mxu3 %vm347_vm1, %v2014_v35  ;;  %3519 = vmatmul.msk.f32.vlgmr.msrb.gmra.mxu2 %vm347_vm1, %v2014_v35 }
 0xfcc   :  { %3520 = vmatmul.msk.f32.vlgmr.msra.gmra.mxu0 %vm347_vm1, %v2014_v35  ;;  %2206 = vmatpush.msrb.mxu3 %v5929_v38 }
 0xfcd   :  { %2256 = vmatpush.msrb.mxu2 %v5205_v11  ;;  %2276 = vmatpush.msra.mxu0 %v5207_v2 }
 0xfce   :  { %2207 = vmatpush.msrb.mxu3 %v5931_v62 }
 0xfcf   :  { %2257 = vmatpush.msrb.mxu2 %v5212_v63  ;;  %2277 = vmatpush.msra.mxu0 %v5215_v37 }
 0xfd0   :  { %2208 = vmatpush.msrb.mxu3 %v5932_v52 }
 0xfd2   :  { %2209 = vmatpush.msrb.mxu3 %v5933_v54 }
 0xfd3   :  { %3521 = vmatmul.msk.f32.vlgmr.msra.gmra.mxu3 %vm347_vm1, %v2014_v35 }
 0xfd4   :  { %2210 = vmatpush.msrb.mxu3 %v5934_v0 }
 0xfd6   :  { %2211 = vmatpush.msrb.mxu3 %v5935_v1 }
 0xfd8   :  { %2212 = vmatpush.msrb.mxu3 %v5936_v7 }
 0xfda   :  { %2213 = vmatpush.msrb.mxu3 %v5937_v9 }
 0xfdc   :  { %2214 = vmatpush.msrb.mxu3 %v5938_v61 }
 0xfde   :  { %2215 = vmatpush.msrb.mxu3 %v5939_v27 }
 0xfe0   :  { %2216 = vmatpush.msrb.mxu3 %v5940_v13 }
 0xfe2   :  { %2217 = vmatpush.msrb.mxu3 %v5941_v4 }
 0xfe4   :  { %2218 = vmatpush.msrb.mxu3 %v5942_v40 }
 0xfe6   :  { %2219 = vmatpush.msrb.mxu3 %v5943_v43 }
 0xfe8   :  { %2220 = vmatpush.msrb.mxu3 %v5944_v41 }
 0xfea   :  { %2221 = vmatpush.msrb.mxu3 %v5945_v53 }
 0xfec   :  { %2316 = vmatpush.msra.mxu3 %v5224_v50 }
 0xfee   :  { %2317 = vmatpush.msra.mxu3 %v5226_v49 }
0x1049   :  { %v2075_v48 = vpop.f32.mrf.mxu0 }
0x104a   :  { %v2100_v51 = vperm.slane %v2075_v48, 0 }
0x104c   :  { %v5290_v28 = vsub.f32 %v5166_v21, %v2100_v51  ;;  %v5293_v5 = vsub.f32 %v5170_v34, %v2100_v51 }
0x104e   :  { %v2112_v18 = vmul.f32 %v5290_v28, %v5290_v28  ;;  %v2116_v58 = vmul.f32 %v5293_v5, %v5293_v5  ;;  %v2035_v10 = vpop.f32.mrf.mxu3  ;;  %v2055_v12 = vpop.f32.mrf.mxu2 }
0x104f   :  { %v2098_v3 = vperm.slane %v2035_v10, 0  ;;  %v2099_v6 = vperm.slane %v2055_v12, 0  ;;  %v1904_v10 = vld [vmem:[#allocation8 + $0x5] sm:$0x1] }
0x1050   :  { %v2132_v8 = vadd.f32 %v2116_v58, %v2112_v18 }
0x1051   :  { %v5300_v47 = vsub.f32 %v5187_v36, %v2098_v3  ;;  %v5303_v21 = vsub.f32 %v5191_v31, %v2098_v3  ;;  %v5306_v34 = vsub.f32 %v5189_v55, %v2099_v6  ;;  %v5309_v17 = vsub.f32 %v5193_v26, %v2099_v6  ;;  %v1905_v3 = vld [vmem:[#allocation10 + $0x5] sm:$0x1] }
0x1052   :  { %v2133_v20 = vrot.slane %v2132_v8, 4 }
0x1053   :  { %v2110_v57 = vmul.f32 %v5300_v47, %v5300_v47  ;;  %v2114_v19 = vmul.f32 %v5303_v21, %v5303_v21  ;;  %v2111_v36 = vmul.f32 %v5306_v34, %v5306_v34  ;;  %v2115_v31 = vmul.f32 %v5309_v17, %v5309_v17 }
0x1054   :  { %v2134_v30 = vadd.f32 %v2133_v20, %v2132_v8 }
0x1055   :  { %v2118_v59 = vadd.f32 %v2114_v19, %v2110_v57  ;;  %v2125_v55 = vadd.f32 %v2115_v31, %v2111_v36 }
0x1056   :  { %v2135_v14 = vrot.slane %v2134_v30, 2  ;;  %v2095_v15 = vpop.f32.mrf.mxu3 }
0x1057   :  { %v2119_v26 = vrot.slane %v2118_v59, 4  ;;  %v2126_v22 = vrot.slane %v2125_v55, 4  ;;  %v2101_v23 = vperm.slane %v2095_v15, 0 }
0x1058   :  { %v2136_v42 = vadd.f32 %v2135_v14, %v2134_v30 }
0x1059   :  { %v2120_v33 = vadd.f32 %v2119_v26, %v2118_v59  ;;  %v2127_v45 = vadd.f32 %v2126_v22, %v2125_v55  ;;  %v5320_v46 = vsub.f32 %v5168_v16, %v2101_v23  ;;  %v5323_v60 = vsub.f32 %v5172_v24, %v2101_v23 }
0x105a   :  { %v2137_v29 = vrot.slane %v2136_v42, 1 }
0x105b   :  { %v2121_v35 = vrot.slane %v2120_v33, 2  ;;  %v2128_v32 = vrot.slane %v2127_v45, 2  ;;  %v2113_v56 = vmul.f32 %v5320_v46, %v5320_v46  ;;  %v2117_v38 = vmul.f32 %v5323_v60, %v5323_v60 }
0x105c   :  { %v2138_v44 = vadd.f32 %v2137_v29, %v2136_v42 }
0x105d   :  { %v2139_v62 = vadd.f32 %v2117_v38, %v2113_v56  ;;  %v2122_v52 = vadd.f32 %v2121_v35, %v2120_v33  ;;  %v2129_v54 = vadd.f32 %v2128_v32, %v2127_v45  ;;  %v2448_v35 = vlaneseq }
0x105e   :  { %2202 = vmatmul.f32.vlgmr.msra.gmra.mxu1 %v2138_v44 }
0x105f   :  { %v2140_v0 = vrot.slane %v2139_v62, 4  ;;  %v2123_v16 = vrot.slane %v2122_v52, 1  ;;  %v2130_v1 = vrot.slane %v2129_v54, 1  ;;  %2379 = vmatpush.msra.mxu1 %v5209_v25  ;;  %vm5358_vm5 = vcmp.lt.s32.totalorder %v2448_v35, 256  ;;  %v2825_v35 = vld [vmem:[#allocation13 + $0x2a0] sm:$0xff] }
0x1061   :  { %v2141_v24 = vadd.f32 %v2140_v0, %v2139_v62  ;;  %v2124_v7 = vadd.f32 %v2123_v16, %v2122_v52  ;;  %v2131_v9 = vadd.f32 %v2130_v1, %v2129_v54  ;;  %2380 = vmatpush.msra.mxu1 %v5217_v39 }
0x1063   :  { %v2142_v61 = vrot.slane %v2141_v24, 2  ;;  %2162 = vmatmul.f32.vlgmr.msra.gmra.mxu2 %v2124_v7  ;;  %2182 = vmatmul.f32.vlgmr.msrb.gmra.mxu0 %v2131_v9 }
0x1064   :  { %2339 = vmatpush.msra.mxu2 %v5205_v11  ;;  %2359 = vmatpush.msrb.mxu0 %v5207_v2 }
0x1065   :  { %v2143_v27 = vadd.f32 %v2142_v61, %v2141_v24 }
0x1066   :  { %2340 = vmatpush.msra.mxu2 %v5212_v63  ;;  %2360 = vmatpush.msrb.mxu0 %v5215_v37 }
0x1067   :  { %v2144_v13 = vrot.slane %v2143_v27, 1 }
0x1069   :  { %v2145_v4 = vadd.f32 %v2144_v13, %v2143_v27 }
0x106b   :  { %2222 = vmatmul.f32.vlgmr.msrb.gmra.mxu3 %v2145_v4 }
0x106c   :  { %2399 = vmatpush.msrb.mxu3 %v5224_v50 }
0x106e   :  { %2400 = vmatpush.msrb.mxu3 %v5226_v49 }
0x10db   :  { %v2203_v43 = vpop.f32.mrf.mxu1 }
0x10e0   :  { %v2183_v39 = vpop.f32.mrf.mxu0 }
0x10e6   :  { %v2163_v25 = vpop.f32.mrf.mxu2 }
0x10e7   :  { %v2184_v40 = vadd.f32 %v2183_v39, %v2163_v25 }
0x10e9   :  { %v2204_v41 = vadd.f32 %v2203_v43, %v2184_v40 }
0x10ee   :  { %v2223_v11 = vpop.f32.mrf.mxu3 }
0x10ef   :  { %v2224_v53 = vadd.f32 %v2223_v11, %v2204_v41 }
0x10f1   :  { %v2226_v2 = vmul.f32 0.001953125, %v2224_v53 }
0x10f3   :  { %v2227_v48 = vadd.f32 1e-05, %v2226_v2 }
0x10f5   :  { %3554 = vrsqrt.f32 %v2227_v48  ;;  %vm2234_vm3 = vweird.f32 %v2227_v48 }
0x10fb   :  { %v3555_v63 = vpop.eup %3554 }
0x10fc   :  { %v2229_v51 = vmul.f32 %v3555_v63, %v2227_v48  ;;  %vm2235_vm2 = vweird.f32 %v3555_v63 }
0x10fd   :  { %vm2236_vm4 = vmor %vm2234_vm3, %vm2235_vm2 }
0x10fe   :  { %v2230_v37 = vmul.f32 %v3555_v63, %v2229_v51 }
0x1100   :  { %v2231_v18 = vmul.f32 0.5, %v2230_v37 }
0x1102   :  { %v2232_v58 = vsub.f32 1.5, %v2231_v18 }
0x1104   :  { %v2233_v50 = vmul.f32 %v3555_v63, %v2232_v58 }
0x1106   :  { %v2237_v49 = vsel %vm2236_vm4, %v3555_v63, %v2233_v50 }
0x1107   :  { %v2238_v12 = vmul.f32 %v2237_v49, %v1904_v10 }
0x1109   :  { %3522 = vmatmul.msk.f32.vlgmr.msrb.gmra.mxu2 %vm347_vm1, %v2238_v12  ;;  %3523 = vmatmul.msk.f32.vlgmr.msra.gmra.mxu0 %vm347_vm1, %v2238_v12 }
0x110a   :  { %3524 = vmatmul.msk.f32.vlgmr.msrb.gmra.mxu1 %vm347_vm1, %v2238_v12  ;;  %3525 = vmatmul.msk.f32.vlgmr.msra.gmra.mxu3 %vm347_vm1, %v2238_v12  ;;  %v2835_v12 = vld [vmem:[#allocation13 + $0x2f0] sm:$0xff] }
0x110b   :  { %2869 = vmatpush.msrb.mxu2 %v2835_v12  ;;  %v2807_v12 = vld [vmem:[#allocation13 + $0x210] sm:$0xff] }
0x1111   :  { %3526 = vmatmul.msk.f32.vlgmr.msra.gmra.mxu2 %vm347_vm1, %v1905_v3  ;;  %3527 = vmatmul.msk.f32.vlgmr.msrb.gmra.mxu0 %vm347_vm1, %v1905_v3 }
0x1112   :  { %3528 = vmatmul.msk.f32.vlgmr.msra.gmra.mxu1 %vm347_vm1, %v1905_v3  ;;  %3529 = vmatmul.msk.f32.vlgmr.msrb.gmra.mxu3 %vm347_vm1, %v1905_v3  ;;  %vm2443_vm1 = vcmask 1040384   ;;  %v2867_v3 = vld [vmem:[#allocation13 + $0x3f0] sm:$0xff] }
0x1113   :  { %2898 = vmatpush.msra.mxu0 %v2867_v3  ;;  %v2839_v3 = vld [vmem:[#allocation13 + $0x310] sm:$0xff] }
0x1186   :  { %v2279_v6 = vpop.f32.mrf.mxu0 }
0x1187   :  { %v2299_v8 = vpop.f32.mrf.mxu1  ;;  %v2406_v20 = vperm.slane %v2279_v6, 0  ;;  %v2836_v6 = vld [vmem:[#allocation13 + $0x2f8] sm:$0xff] }
0x1188   :  { %v2407_v55 = vperm.slane %v2299_v8, 0  ;;  %v2868_v8 = vld [vmem:[#allocation13 + $0x3f8] sm:$0xff]  ;;  %2927 = vmatpush.msrb.mxu1 %v2836_v6 }
0x1189   :  { %v2410_v31 = vmul.f32 %v2406_v20, %v5306_v34  ;;  %v2414_v30 = vmul.f32 %v2406_v20, %v5309_v17  ;;  %v2833_v20 = vld [vmem:[#allocation13 + $0x2e0] sm:$0xff]  ;;  %2956 = vmatpush.msra.mxu3 %v2868_v8  ;;  %v2808_v6 = vld [vmem:[#allocation13 + $0x218] sm:$0xff] }
0x118a   :  { %v2411_v45 = vmul.f32 %v2407_v55, %v5290_v28  ;;  %v2415_v44 = vmul.f32 %v2407_v55, %v5293_v5  ;;  %2870 = vmatpush.msrb.mxu2 %v2833_v20  ;;  %v2832_v55 = vld [vmem:[#allocation13 + $0x2d8] sm:$0xff]  ;;  %v2805_v20 = vld [vmem:[#allocation13 + $0x200] sm:$0xff] }
0x118b   :  { %v2840_v8 = vld [vmem:[#allocation13 + $0x318] sm:$0xff] }
0x118c   :  { %v2259_v57 = vpop.f32.mrf.mxu2 }
0x118d   :  { %v2319_v19 = vpop.f32.mrf.mxu3  ;;  %v2405_v15 = vperm.slane %v2259_v57, 0  ;;  %v2865_v57 = vld [vmem:[#allocation13 + $0x3e0] sm:$0xff] }
0x118e   :  { %v2362_v36 = vpop.f32.mrf.mxu0  ;;  %v2408_v23 = vperm.slane %v2319_v19, 0  ;;  %v2834_v19 = vld [vmem:[#allocation13 + $0x2e8] sm:$0xff]  ;;  %2899 = vmatpush.msra.mxu0 %v2865_v57  ;;  %v2837_v57 = vld [vmem:[#allocation13 + $0x300] sm:$0xff] }
0x118f   :  { %v2418_v59 = vperm.slane %v2362_v36, 0  ;;  %v2382_v14 = vpop.f32.mrf.mxu1  ;;  %v2409_v32 = vmul.f32 %v2405_v15, %v5300_v47  ;;  %v2413_v34 = vmul.f32 %v2405_v15, %v5303_v21  ;;  %v2866_v36 = vld [vmem:[#allocation13 + $0x3e8] sm:$0xff]  ;;  %2928 = vmatpush.msrb.mxu1 %v2834_v19  ;;  %v2829_v15 = vld [vmem:[#allocation13 + $0x2c0] sm:$0xff] }
0x1190   :  { %v2419_v33 = vperm.slane %v2382_v14, 0  ;;  %v2412_v62 = vmul.f32 %v2408_v23, %v5320_v46  ;;  %v2416_v52 = vmul.f32 %v2408_v23, %v5323_v60  ;;  %2957 = vmatpush.msra.mxu3 %v2866_v36  ;;  %v2864_v14 = vld [vmem:[#allocation13 + $0x3d8] sm:$0xff]  ;;  %v2862_v23 = vld [vmem:[#allocation13 + $0x3c8] sm:$0xff] }
0x1191   :  { %v2422_v26 = vadd.f32 %v2418_v59, %v2410_v31  ;;  %v2426_v22 = vadd.f32 %v2418_v59, %v2414_v30  ;;  %v2831_v31 = vld [vmem:[#allocation13 + $0x2d0] sm:$0xff]  ;;  %2929 = vmatpush.msrb.mxu1 %v2832_v55  ;;  %v2806_v19 = vld [vmem:[#allocation13 + $0x208] sm:$0xff] }
0x1192   :  { %v2423_v28 = vadd.f32 %v2419_v33, %v2411_v45  ;;  %v2427_v47 = vadd.f32 %v2419_v33, %v2415_v44  ;;  %v2863_v59 = vld [vmem:[#allocation13 + $0x3d0] sm:$0xff]  ;;  %2871 = vmatpush.msrb.mxu2 %v2831_v31  ;;  %2958 = vmatpush.msra.mxu3 %v2864_v14  ;;  %v2828_v45 = vld [vmem:[#allocation13 + $0x2b8] sm:$0xff]  ;;  %v2838_v36 = vld [vmem:[#allocation13 + $0x308] sm:$0xff] }
0x1193   :  { %v5347_v42 = vmax.f32 %v2422_v26, 0.0  ;;  %v5352_v56 = vmax.f32 %v2426_v22, 0.0  ;;  %v2861_v26 = vld [vmem:[#allocation13 + $0x3c0] sm:$0xff]  ;;  %2900 = vmatpush.msra.mxu0 %v2863_v59  ;;  %v2830_v22 = vld [vmem:[#allocation13 + $0x2c8] sm:$0xff]  ;;  %v2859_v33 = vld [vmem:[#allocation13 + $0x3b0] sm:$0xff] }
0x1194   :  { %v2342_v29 = vpop.f32.mrf.mxu2  ;;  %v5370_v27 = vmax.f32 %v2423_v28, 0.0  ;;  %v5375_v25 = vmax.f32 %v2427_v47, 0.0  ;;  %2872 = vmatpush.msrb.mxu2 %v2829_v15  ;;  %2930 = vmatpush.msrb.mxu1 %v2830_v22  ;;  %v2824_v44 = vld [vmem:[#allocation13 + $0x298] sm:$0xff]  ;;  %v2853_v28 = vld [vmem:[#allocation13 + $0x380] sm:$0xff]  ;;  %v2819_v47 = vld [vmem:[#allocation13 + $0x270] sm:$0xff] }
0x1195   :  { %2459 = vst [vmem:[#allocation1 + $0x9] sm:$0xff] %v5347_v42  ;;  %v2417_v17 = vperm.slane %v2342_v29, 0  ;;  %v2402_v38 = vpop.f32.mrf.mxu3  ;;  %v2441_v7 = vrot.slane %v5347_v42, 7  ;;  %v2442_v5 = vrot.slane %v5352_v56, 7  ;;  %2901 = vmatpush.msra.mxu0 %v2861_v26  ;;  %v2860_v29 = vld [vmem:[#allocation13 + $0x3b8] sm:$0xff]  ;;  %2959 = vmatpush.msra.mxu3 %v2862_v23  ;;  %v2798_v55 = vld [vmem:[#allocation13 + $0x1f0] sm:$0xff] }
0x1196   :  { %v2420_v54 = vperm.slane %v2402_v38, 0  ;;  %2931 = vmatpush.msrb.mxu1 %v2828_v45  ;;  %v2855_v38 = vld [vmem:[#allocation13 + $0x390] sm:$0xff]  ;;  %v2799_v59 = vld [vmem:[#allocation13 + $0x1f8] sm:$0xff]  ;;  %v2764_v15 = vld [vmem:[#allocation13 + $0xe0] sm:$0xff] }
0x1197   :  { %v2421_v0 = vadd.f32 %v2417_v17, %v2409_v32  ;;  %v2425_v16 = vadd.f32 %v2417_v17, %v2413_v34  ;;  %v2857_v32 = vld [vmem:[#allocation13 + $0x3a0] sm:$0xff]  ;;  %2902 = vmatpush.msra.mxu0 %v2859_v33  ;;  %v2826_v34 = vld [vmem:[#allocation13 + $0x2a8] sm:$0xff]  ;;  %2960 = vmatpush.msra.mxu3 %v2860_v29  ;;  %v2823_v17 = vld [vmem:[#allocation13 + $0x290] sm:$0xff] }
0x1198   :  { %v2424_v1 = vadd.f32 %v2420_v54, %v2412_v62  ;;  %v2428_v21 = vadd.f32 %v2420_v54, %v2416_v52  ;;  %v2856_v62 = vld [vmem:[#allocation13 + $0x398] sm:$0xff]  ;;  %2932 = vmatpush.msrb.mxu1 %v2826_v34  ;;  %v2821_v54 = vld [vmem:[#allocation13 + $0x280] sm:$0xff]  ;;  %v2797_v26 = vld [vmem:[#allocation13 + $0x1e8] sm:$0xff] }
0x1199   :  { %v2429_v9 = vmax.f32 %v2421_v0, 0.0  ;;  %v5364_v46 = vmax.f32 %v2425_v16, 0.0  ;;  %2903 = vmatpush.msra.mxu0 %v2857_v32  ;;  %v2822_v0 = vld [vmem:[#allocation13 + $0x288] sm:$0xff]  ;;  %v2767_v14 = vld [vmem:[#allocation13 + $0xf8] sm:$0xff]  ;;  %v2796_v23 = vld [vmem:[#allocation13 + $0x1e0] sm:$0xff] }
0x119a   :  { %v5366_v60 = vmax.f32 %v2424_v1, 0.0  ;;  %v5368_v61 = vmax.f32 %v2428_v21, 0.0  ;;  %v2854_v16 = vld [vmem:[#allocation13 + $0x388] sm:$0xff]  ;;  %2933 = vmatpush.msrb.mxu1 %v2824_v44  ;;  %v2851_v1 = vld [vmem:[#allocation13 + $0x370] sm:$0xff]  ;;  %v2820_v21 = vld [vmem:[#allocation13 + $0x278] sm:$0xff] }
0x119b   :  { %v2444_v13 = vsel %vm2443_vm1, %v2429_v9, %v2441_v7  ;;  %v2445_v4 = vsel %vm2443_vm1, %v5364_v46, %v2442_v5  ;;  %2458 = vst [vmem:[#allocation1] sm:$0xff] %v2429_v9  ;;  %2904 = vmatpush.msra.mxu0 %v2855_v38  ;;  %v2852_v7 = vld [vmem:[#allocation13 + $0x378] sm:$0xff]  ;;  %v2817_v5 = vld [vmem:[#allocation13 + $0x260] sm:$0xff]  ;;  %v2762_v33 = vld [vmem:[#allocation13 + $0xd0] sm:$0xff] }
0x119c   :  { %v2567_v39 = vrot.slane %v5366_v60, 7  ;;  %v2568_v40 = vrot.slane %v5368_v61, 7  ;;  %2453 = vst.msk [vmem:[#allocation5 + $0x10] ss:$8 sm:$0x3] %vm5358_vm5, %v2444_v13  ;;  %2934 = vmatpush.msrb.mxu1 %v2822_v0  ;;  %v2850_v13 = vld [vmem:[#allocation13 + $0x368] sm:$0xff] }
0x119d   :  { %2456 = vst.msk [vmem:[#allocation5 + $0x50] ss:$8 sm:$0x3] %vm5358_vm5, %v2445_v4  ;;  %2905 = vmatpush.msra.mxu0 %v2853_v28  ;;  %v2815_v4 = vld [vmem:[#allocation13 + $0x250] sm:$0xff]  ;;  %v2795_v45 = vld [vmem:[#allocation13 + $0x1d8] sm:$0xff]  ;;  %v2760_v32 = vld [vmem:[#allocation13 + $0xc0] sm:$0xff] }
0x119e   :  { %v2569_v43 = vsel %vm2443_vm1, %v5370_v27, %v2567_v39  ;;  %v2570_v41 = vsel %vm2443_vm1, %v5375_v25, %v2568_v40  ;;  %2935 = vmatpush.msrb.mxu1 %v2820_v21  ;;  %v2847_v39 = vld [vmem:[#allocation13 + $0x350] sm:$0xff]  ;;  %v2816_v40 = vld [vmem:[#allocation13 + $0x258] sm:$0xff]  ;;  %v2793_v34 = vld [vmem:[#allocation13 + $0x1c8] sm:$0xff] }
0x119f   :  { %2574 = vst.msk [vmem:[#allocation5 + $0x11] ss:$8 sm:$0x3] %vm5358_vm5, %v2569_v43  ;;  %2906 = vmatpush.msra.mxu0 %v2851_v1  ;;  %v2848_v43 = vld [vmem:[#allocation13 + $0x358] sm:$0xff]  ;;  %v2794_v29 = vld [vmem:[#allocation13 + $0x1d0] sm:$0xff] }
0x11a0   :  { %2577 = vst.msk [vmem:[#allocation5 + $0x51] ss:$8 sm:$0x3] %vm5358_vm5, %v2570_v41  ;;  %v2813_v41 = vld [vmem:[#allocation13 + $0x240] sm:$0xff]  ;;  %v2758_v1 = vld [vmem:[#allocation13 + $0xb0] sm:$0xff]  ;;  %v2791_v21 = vld [vmem:[#allocation13 + $0x1b8] sm:$0xff] }
0x11a2   :  { %v2461_v11 = vld [vmem:[#allocation1 + $0x1] ss:$9 sm:$0xff] }
0x11a3   :  { %2462 = vst [vmem:[#allocation1] sm:$0xff] %v5364_v46 }
0x11a4   :  { %2463 = vst [vmem:[#allocation1 + $0x9] sm:$0xff] %v5352_v56 }
0x11a5   :  { %2468 = vst.msk [vmem:[#allocation5 + $0x12] ss:$8 sm:$0x3] %vm5358_vm5, %v2461_v11  ;;  %v2845_v11 = vld [vmem:[#allocation13 + $0x340] sm:$0xff] }
0x11ab   :  { %v2464_v53 = vld [vmem:[#allocation1 + $0x1] ss:$9 sm:$0xff] }
0x11ac   :  { %2473 = vst [vmem:[#allocation1] sm:$0xff] %v2429_v9 }
0x11ad   :  { %2474 = vst [vmem:[#allocation1 + $0x9] sm:$0xff] %v5347_v42 }
0x11ae   :  { %2471 = vst.msk [vmem:[#allocation5 + $0x52] ss:$8 sm:$0x3] %vm5358_vm5, %v2464_v53 }
0x11b4   :  { %v2476_v2 = vld [vmem:[#allocation1 + $0x2] ss:$9 sm:$0xff] }
0x11b5   :  { %2477 = vst [vmem:[#allocation1] sm:$0xff] %v5364_v46 }
0x11b6   :  { %2478 = vst [vmem:[#allocation1 + $0x9] sm:$0xff] %v5352_v56 }
0x11b7   :  { %2483 = vst.msk [vmem:[#allocation5 + $0x14] ss:$8 sm:$0x3] %vm5358_vm5, %v2476_v2  ;;  %v2814_v2 = vld [vmem:[#allocation13 + $0x248] sm:$0xff] }
0x11bd   :  { %v2479_v48 = vld [vmem:[#allocation1 + $0x2] ss:$9 sm:$0xff] }
0x11be   :  { %2488 = vst [vmem:[#allocation1] sm:$0xff] %v2429_v9 }
0x11bf   :  { %2489 = vst [vmem:[#allocation1 + $0x9] sm:$0xff] %v5347_v42 }
0x11c0   :  { %2486 = vst.msk [vmem:[#allocation5 + $0x54] ss:$8 sm:$0x3] %vm5358_vm5, %v2479_v48  ;;  %v2846_v48 = vld [vmem:[#allocation13 + $0x348] sm:$0xff] }
0x11c6   :  { %v2491_v63 = vld [vmem:[#allocation1 + $0x3] ss:$9 sm:$0xff] }
0x11c7   :  { %2492 = vst [vmem:[#allocation1] sm:$0xff] %v5364_v46 }
0x11c8   :  { %2493 = vst [vmem:[#allocation1 + $0x9] sm:$0xff] %v5352_v56 }
0x11c9   :  { %2498 = vst.msk [vmem:[#allocation5 + $0x16] ss:$8 sm:$0x3] %vm5358_vm5, %v2491_v63  ;;  %v2811_v63 = vld [vmem:[#allocation13 + $0x230] sm:$0xff] }
0x11cf   :  { %v2494_v51 = vld [vmem:[#allocation1 + $0x3] ss:$9 sm:$0xff] }
0x11d0   :  { %2503 = vst [vmem:[#allocation1] sm:$0xff] %v2429_v9 }
0x11d1   :  { %2504 = vst [vmem:[#allocation1 + $0x9] sm:$0xff] %v5347_v42 }
0x11d2   :  { %2501 = vst.msk [vmem:[#allocation5 + $0x56] ss:$8 sm:$0x3] %vm5358_vm5, %v2494_v51  ;;  %v2843_v51 = vld [vmem:[#allocation13 + $0x330] sm:$0xff] }
0x11d8   :  { %v2506_v37 = vld [vmem:[#allocation1 + $0x4] ss:$9 sm:$0xff] }
0x11d9   :  { %2507 = vst [vmem:[#allocation1] sm:$0xff] %v5364_v46 }
0x11da   :  { %2508 = vst [vmem:[#allocation1 + $0x9] sm:$0xff] %v5352_v56 }
0x11db   :  { %2513 = vst.msk [vmem:[#allocation5 + $0x20] ss:$8 sm:$0x3] %vm5358_vm5, %v2506_v37  ;;  %v2812_v37 = vld [vmem:[#allocation13 + $0x238] sm:$0xff] }
0x11e1   :  { %v2509_v18 = vld [vmem:[#allocation1 + $0x4] ss:$9 sm:$0xff] }
0x11e2   :  { %2518 = vst [vmem:[#allocation1] sm:$0xff] %v2429_v9 }
0x11e3   :  { %2519 = vst [vmem:[#allocation1 + $0x9] sm:$0xff] %v5347_v42 }
0x11e4   :  { %2516 = vst.msk [vmem:[#allocation5 + $0x60] ss:$8 sm:$0x3] %vm5358_vm5, %v2509_v18  ;;  %v2844_v18 = vld [vmem:[#allocation13 + $0x338] sm:$0xff] }
0x11ea   :  { %v2521_v58 = vld [vmem:[#allocation1 + $0x5] ss:$9 sm:$0xff] }
0x11eb   :  { %2522 = vst [vmem:[#allocation1] sm:$0xff] %v5364_v46 }
0x11ec   :  { %2523 = vst [vmem:[#allocation1 + $0x9] sm:$0xff] %v5352_v56 }
0x11ed   :  { %2528 = vst.msk [vmem:[#allocation5 + $0x22] ss:$8 sm:$0x3] %vm5358_vm5, %v2521_v58  ;;  %v2809_v58 = vld [vmem:[#allocation13 + $0x220] sm:$0xff] }
0x11f3   :  { %v2524_v10 = vld [vmem:[#allocation1 + $0x5] ss:$9 sm:$0xff] }
0x11f4   :  { %2533 = vst [vmem:[#allocation1] sm:$0xff] %v2429_v9 }
0x11f5   :  { %2534 = vst [vmem:[#allocation1 + $0x9] sm:$0xff] %v5347_v42 }
0x11f6   :  { %2531 = vst.msk [vmem:[#allocation5 + $0x62] ss:$8 sm:$0x3] %vm5358_vm5, %v2524_v10  ;;  %v2841_v10 = vld [vmem:[#allocation13 + $0x320] sm:$0xff] }
0x11fc   :  { %v2536_v50 = vld [vmem:[#allocation1 + $0x6] ss:$9 sm:$0xff] }
0x11fd   :  { %2537 = vst [vmem:[#allocation1] sm:$0xff] %v5364_v46 }
0x11fe   :  { %2538 = vst [vmem:[#allocation1 + $0x9] sm:$0xff] %v5352_v56 }
0x11ff   :  { %2543 = vst.msk [vmem:[#allocation5 + $0x24] ss:$8 sm:$0x3] %vm5358_vm5, %v2536_v50  ;;  %v2810_v50 = vld [vmem:[#allocation13 + $0x228] sm:$0xff] }
0x1205   :  { %v2539_v49 = vld [vmem:[#allocation1 + $0x6] ss:$9 sm:$0xff] }
0x1206   :  { %2548 = vst [vmem:[#allocation1] sm:$0xff] %v2429_v9  ;;  %v2849_v9 = vld [vmem:[#allocation13 + $0x360] sm:$0xff] }
0x1207   :  { %2549 = vst [vmem:[#allocation1 + $0x9] sm:$0xff] %v5347_v42  ;;  %v2827_v42 = vld [vmem:[#allocation13 + $0x2b0] sm:$0xff]  ;;  %2907 = vmatpush.msra.mxu0 %v2849_v9  ;;  %v2756_v9 = vld [vmem:[#allocation13 + $0xa0] sm:$0xff] }
0x1208   :  { %2546 = vst.msk [vmem:[#allocation5 + $0x64] ss:$8 sm:$0x3] %vm5358_vm5, %v2539_v49  ;;  %2873 = vmatpush.msrb.mxu2 %v2827_v42  ;;  %v2842_v49 = vld [vmem:[#allocation13 + $0x328] sm:$0xff] }
0x1209   :  { %2908 = vmatpush.msra.mxu0 %v2847_v39  ;;  %v2765_v42 = vld [vmem:[#allocation13 + $0xe8] sm:$0xff]  ;;  %v2754_v39 = vld [vmem:[#allocation13 + $0x90] sm:$0xff] }
0x120a   :  { %2874 = vmatpush.msrb.mxu2 %v2825_v35  ;;  %v2763_v35 = vld [vmem:[#allocation13 + $0xd8] sm:$0xff] }
0x120b   :  { %2909 = vmatpush.msra.mxu0 %v2845_v11 }
0x120c   :  { %2875 = vmatpush.msrb.mxu2 %v2823_v17  ;;  %v2761_v17 = vld [vmem:[#allocation13 + $0xc8] sm:$0xff] }
0x120d   :  { %2910 = vmatpush.msra.mxu0 %v2843_v51  ;;  %v2750_v51 = vld [vmem:[#allocation13 + $0x70] sm:$0xff] }
0x120e   :  { %v2551_v30 = vld [vmem:[#allocation1 + $0x7] ss:$9 sm:$0xff]  ;;  %2876 = vmatpush.msrb.mxu2 %v2821_v54 }
0x120f   :  { %2552 = vst [vmem:[#allocation1] sm:$0xff] %v5364_v46  ;;  %v2818_v46 = vld [vmem:[#allocation13 + $0x268] sm:$0xff]  ;;  %2911 = vmatpush.msra.mxu0 %v2841_v10  ;;  %v2748_v10 = vld [vmem:[#allocation13 + $0x60] sm:$0xff] }
0x1210   :  { %2553 = vst [vmem:[#allocation1 + $0x9] sm:$0xff] %v5352_v56  ;;  %v2858_v56 = vld [vmem:[#allocation13 + $0x3a8] sm:$0xff]  ;;  %2877 = vmatpush.msrb.mxu2 %v2819_v47  ;;  %2936 = vmatpush.msrb.mxu1 %v2818_v46 }
0x1211   :  { %2558 = vst.msk [vmem:[#allocation5 + $0x26] ss:$8 sm:$0x3] %vm5358_vm5, %v2551_v30  ;;  %2961 = vmatpush.msra.mxu3 %v2858_v56  ;;  %2912 = vmatpush.msra.mxu0 %v2839_v3  ;;  %v2766_v30 = vld [vmem:[#allocation13 + $0xf0] sm:$0xff]  ;;  %v2792_v56 = vld [vmem:[#allocation13 + $0x1c0] sm:$0xff]  ;;  %v2789_v46 = vld [vmem:[#allocation13 + $0x1a8] sm:$0xff] }
0x1212   :  { %2878 = vmatpush.msrb.mxu2 %v2817_v5  ;;  %2937 = vmatpush.msrb.mxu1 %v2816_v40  ;;  %v2759_v5 = vld [vmem:[#allocation13 + $0xb8] sm:$0xff]  ;;  %v2746_v3 = vld [vmem:[#allocation13 + $0x50] sm:$0xff] }
0x1213   :  { %2962 = vmatpush.msra.mxu3 %v2856_v62  ;;  %2913 = vmatpush.msra.mxu0 %v2837_v57  ;;  %v2787_v40 = vld [vmem:[#allocation13 + $0x198] sm:$0xff]  ;;  %v2744_v57 = vld [vmem:[#allocation13 + $0x40] sm:$0xff] }
0x1214   :  { %2879 = vmatpush.msrb.mxu2 %v2815_v4  ;;  %2938 = vmatpush.msrb.mxu1 %v2814_v2  ;;  %v2757_v4 = vld [vmem:[#allocation13 + $0xa8] sm:$0xff] }
0x1215   :  { %2963 = vmatpush.msra.mxu3 %v2854_v16  ;;  %3014 = vmatpush.msrb.mxu0 %v2798_v55  ;;  %v2785_v2 = vld [vmem:[#allocation13 + $0x188] sm:$0xff]  ;;  %v2775_v55 = vld [vmem:[#allocation13 + $0x138] sm:$0xff] }
0x1216   :  { %2880 = vmatpush.msrb.mxu2 %v2813_v41  ;;  %2939 = vmatpush.msrb.mxu1 %v2812_v37  ;;  %v2755_v41 = vld [vmem:[#allocation13 + $0x98] sm:$0xff] }
0x1217   :  { %v2554_v52 = vld [vmem:[#allocation1 + $0x7] ss:$9 sm:$0xff]  ;;  %2964 = vmatpush.msra.mxu3 %v2852_v7  ;;  %3015 = vmatpush.msrb.mxu0 %v2796_v23 }
0x1218   :  { %2579 = vst [vmem:[#allocation1] sm:$0xff] %v5370_v27  ;;  %2881 = vmatpush.msrb.mxu2 %v2811_v63  ;;  %2940 = vmatpush.msrb.mxu1 %v2810_v50  ;;  %v2790_v7 = vld [vmem:[#allocation13 + $0x1b0] sm:$0xff]  ;;  %v2753_v63 = vld [vmem:[#allocation13 + $0x88] sm:$0xff]  ;;  %v2783_v37 = vld [vmem:[#allocation13 + $0x178] sm:$0xff] }
0x1219   :  { %2580 = vst [vmem:[#allocation1 + $0x9] sm:$0xff] %v5366_v60  ;;  %2965 = vmatpush.msra.mxu3 %v2850_v13  ;;  %3016 = vmatpush.msrb.mxu0 %v2794_v29  ;;  %v2788_v13 = vld [vmem:[#allocation13 + $0x1a0] sm:$0xff]  ;;  %v2781_v50 = vld [vmem:[#allocation13 + $0x168] sm:$0xff] }
0x121a   :  { %2561 = vst.msk [vmem:[#allocation5 + $0x66] ss:$8 sm:$0x3] %vm5358_vm5, %v2554_v52  ;;  %2882 = vmatpush.msrb.mxu2 %v2809_v58  ;;  %2941 = vmatpush.msrb.mxu1 %v2808_v6  ;;  %v2751_v58 = vld [vmem:[#allocation13 + $0x78] sm:$0xff]  ;;  %v2741_v23 = vld [vmem:[#allocation13 + $0x28] sm:$0xff]  ;;  %v2736_v29 = vld [vmem:[#allocation13] sm:$0xff] }
0x121b   :  { %2966 = vmatpush.msra.mxu3 %v2848_v43  ;;  %3017 = vmatpush.msrb.mxu0 %v2792_v56  ;;  %v2786_v43 = vld [vmem:[#allocation13 + $0x190] sm:$0xff]  ;;  %v2779_v6 = vld [vmem:[#allocation13 + $0x158] sm:$0xff] }
0x121c   :  { %2883 = vmatpush.msrb.mxu2 %v2807_v12  ;;  %2942 = vmatpush.msrb.mxu1 %v2806_v19  ;;  %v2749_v12 = vld [vmem:[#allocation13 + $0x68] sm:$0xff] }
0x121d   :  { %2967 = vmatpush.msra.mxu3 %v2846_v48  ;;  %3018 = vmatpush.msrb.mxu0 %v2790_v7  ;;  %v2784_v48 = vld [vmem:[#allocation13 + $0x180] sm:$0xff]  ;;  %v2777_v19 = vld [vmem:[#allocation13 + $0x148] sm:$0xff]  ;;  %v3182_v7 = vld [vmem:[#allocation13 + $0x4d8] sm:$0xff] }
0x121e   :  { %2884 = vmatpush.msrb.mxu2 %v2805_v20  ;;  %3043 = vmatpush.msra.mxu1 %v2767_v14  ;;  %v2747_v20 = vld [vmem:[#allocation13 + $0x58] sm:$0xff]  ;;  %v2774_v14 = vld [vmem:[#allocation13 + $0x130] sm:$0xff] }
0x121f   :  { %2968 = vmatpush.msra.mxu3 %v2844_v18  ;;  %3019 = vmatpush.msrb.mxu0 %v2788_v13  ;;  %v2782_v18 = vld [vmem:[#allocation13 + $0x170] sm:$0xff]  ;;  %v3211_v13 = vld [vmem:[#allocation13 + $0x5c0] sm:$0xff] }
0x1220   :  { %v2582_v53 = vld [vmem:[#allocation1 + $0x1] ss:$9 sm:$0xff]  ;;  %2985 = vmatpush.msra.mxu2 %v2766_v30  ;;  %3044 = vmatpush.msra.mxu1 %v2765_v42 }
0x1221   :  { %2583 = vst [vmem:[#allocation1] sm:$0xff] %v5375_v25  ;;  %2969 = vmatpush.msra.mxu3 %v2842_v49  ;;  %3020 = vmatpush.msrb.mxu0 %v2786_v43  ;;  %v2780_v49 = vld [vmem:[#allocation13 + $0x160] sm:$0xff]  ;;  %v2745_v30 = vld [vmem:[#allocation13 + $0x48] sm:$0xff]  ;;  %v2771_v42 = vld [vmem:[#allocation13 + $0x118] sm:$0xff] }
0x1222   :  { %2584 = vst [vmem:[#allocation1 + $0x9] sm:$0xff] %v5368_v61  ;;  %2986 = vmatpush.msra.mxu2 %v2764_v15  ;;  %3045 = vmatpush.msra.mxu1 %v2763_v35  ;;  %v2743_v15 = vld [vmem:[#allocation13 + $0x38] sm:$0xff]  ;;  %v2769_v35 = vld [vmem:[#allocation13 + $0x108] sm:$0xff] }
0x1223   :  { %2589 = vst.msk [vmem:[#allocation5 + $0x13] ss:$8 sm:$0x3] %vm5358_vm5, %v2582_v53  ;;  %2970 = vmatpush.msra.mxu3 %v2840_v8  ;;  %v2752_v53 = vld [vmem:[#allocation13 + $0x80] sm:$0xff]  ;;  %3021 = vmatpush.msrb.mxu0 %v2784_v48  ;;  %v2778_v8 = vld [vmem:[#allocation13 + $0x150] sm:$0xff]  ;;  %v3210_v43 = vld [vmem:[#allocation13 + $0x5b8] sm:$0xff] }
0x1224   :  { %2987 = vmatpush.msra.mxu2 %v2762_v33  ;;  %3046 = vmatpush.msra.mxu1 %v2761_v17  ;;  %v2770_v33 = vld [vmem:[#allocation13 + $0x110] sm:$0xff]  ;;  %v3207_v48 = vld [vmem:[#allocation13 + $0x5a0] sm:$0xff] }
0x1225   :  { %2971 = vmatpush.msra.mxu3 %v2838_v36  ;;  %3022 = vmatpush.msrb.mxu0 %v2782_v18  ;;  %v3185_v17 = vld [vmem:[#allocation13 + $0x4f0] sm:$0xff]  ;;  %v3206_v18 = vld [vmem:[#allocation13 + $0x598] sm:$0xff] }
0x1226   :  { %2988 = vmatpush.msra.mxu2 %v2760_v32  ;;  %3047 = vmatpush.msra.mxu1 %v2759_v5  ;;  %v2768_v32 = vld [vmem:[#allocation13 + $0x100] sm:$0xff] }
0x1227   :  { %3072 = vmatpush.msrb.mxu3 %v2799_v59  ;;  %3023 = vmatpush.msrb.mxu0 %v2780_v49  ;;  %v2742_v59 = vld [vmem:[#allocation13 + $0x30] sm:$0xff]  ;;  %v3204_v49 = vld [vmem:[#allocation13 + $0x588] sm:$0xff] }
0x1228   :  { %2989 = vmatpush.msra.mxu2 %v2758_v1  ;;  %3048 = vmatpush.msra.mxu1 %v2757_v4  ;;  %v3181_v1 = vld [vmem:[#allocation13 + $0x4d0] sm:$0xff]  ;;  %v3180_v4 = vld [vmem:[#allocation13 + $0x4c8] sm:$0xff] }
0x1229   :  { %v2585_v31 = vld [vmem:[#allocation1 + $0x1] ss:$9 sm:$0xff]  ;;  %3073 = vmatpush.msrb.mxu3 %v2797_v26  ;;  %3024 = vmatpush.msrb.mxu0 %v2778_v8 }
0x122a   :  { %2595 = vst [vmem:[#allocation1 + $0x9] sm:$0xff] %v5366_v60  ;;  %2990 = vmatpush.msra.mxu2 %v2756_v9  ;;  %3049 = vmatpush.msra.mxu1 %v2755_v41  ;;  %v2740_v26 = vld [vmem:[#allocation13 + $0x20] sm:$0xff]  ;;  %v3209_v41 = vld [vmem:[#allocation13 + $0x5b0] sm:$0xff]  ;;  %v3202_v8 = vld [vmem:[#allocation13 + $0x578] sm:$0xff] }
0x122b   :  { %2594 = vst [vmem:[#allocation1] sm:$0xff] %v5370_v27  ;;  %3074 = vmatpush.msrb.mxu3 %v2795_v45  ;;  %v2739_v45 = vld [vmem:[#allocation13 + $0x18] sm:$0xff] }
0x122c   :  { %2592 = vst.msk [vmem:[#allocation5 + $0x53] ss:$8 sm:$0x3] %vm5358_vm5, %v2585_v31  ;;  %2991 = vmatpush.msra.mxu2 %v2754_v39  ;;  %3050 = vmatpush.msra.mxu1 %v2753_v63  ;;  %v2776_v31 = vld [vmem:[#allocation13 + $0x140] sm:$0xff]  ;;  %v3176_v63 = vld [vmem:[#allocation13 + $0x4a8] sm:$0xff] }
0x122d   :  { %3075 = vmatpush.msrb.mxu3 %v2793_v34  ;;  %3025 = vmatpush.msrb.mxu0 %v2776_v31  ;;  %v2737_v34 = vld [vmem:[#allocation13 + $0x8] sm:$0xff] }
0x122e   :  { %2992 = vmatpush.msra.mxu2 %v2752_v53  ;;  %3051 = vmatpush.msra.mxu1 %v2751_v58  ;;  %v3175_v53 = vld [vmem:[#allocation13 + $0x4a0] sm:$0xff]  ;;  %v3205_v58 = vld [vmem:[#allocation13 + $0x590] sm:$0xff] }
0x122f   :  { %3076 = vmatpush.msrb.mxu3 %v2791_v21  ;;  %3026 = vmatpush.msrb.mxu0 %v2774_v14  ;;  %v3213_v21 = vld [vmem:[#allocation13 + $0x5d0] sm:$0xff]  ;;  %v3199_v14 = vld [vmem:[#allocation13 + $0x560] sm:$0xff] }
0x1230   :  { %2993 = vmatpush.msra.mxu2 %v2750_v51  ;;  %3052 = vmatpush.msra.mxu1 %v2749_v12  ;;  %v3203_v12 = vld [vmem:[#allocation13 + $0x580] sm:$0xff] }
0x1231   :  { %3077 = vmatpush.msrb.mxu3 %v2789_v46  ;;  %v3212_v46 = vld [vmem:[#allocation13 + $0x5c8] sm:$0xff] }
0x1232   :  { %v2597_v22 = vld [vmem:[#allocation1 + $0x2] ss:$9 sm:$0xff]  ;;  %2994 = vmatpush.msra.mxu2 %v2748_v10  ;;  %3053 = vmatpush.msra.mxu1 %v2747_v20 }
0x1233   :  { %2598 = vst [vmem:[#allocation1] sm:$0xff] %v5375_v25  ;;  %3078 = vmatpush.msrb.mxu3 %v2787_v40  ;;  %v3177_v40 = vld [vmem:[#allocation13 + $0x4b0] sm:$0xff]  ;;  %v3174_v10 = vld [vmem:[#allocation13 + $0x498] sm:$0xff] }
0x1234   :  { %2599 = vst [vmem:[#allocation1 + $0x9] sm:$0xff] %v5368_v61  ;;  %2995 = vmatpush.msra.mxu2 %v2746_v3  ;;  %3054 = vmatpush.msra.mxu1 %v2745_v30  ;;  %v3172_v3 = vld [vmem:[#allocation13 + $0x488] sm:$0xff]  ;;  %v3201_v20 = vld [vmem:[#allocation13 + $0x570] sm:$0xff]  ;;  %v3167_v30 = vld [vmem:[#allocation13 + $0x460] sm:$0xff] }
0x1235   :  { %2604 = vst.msk [vmem:[#allocation5 + $0x15] ss:$8 sm:$0x3] %vm5358_vm5, %v2597_v22  ;;  %3079 = vmatpush.msrb.mxu3 %v2785_v2  ;;  %v2773_v22 = vld [vmem:[#allocation13 + $0x128] sm:$0xff] }
0x1236   :  { %2996 = vmatpush.msra.mxu2 %v2744_v57  ;;  %3055 = vmatpush.msra.mxu1 %v2743_v15  ;;  %v3208_v2 = vld [vmem:[#allocation13 + $0x5a8] sm:$0xff]  ;;  %v3170_v57 = vld [vmem:[#allocation13 + $0x478] sm:$0xff] }
0x1237   :  { %3080 = vmatpush.msrb.mxu3 %v2783_v37  ;;  %v3173_v37 = vld [vmem:[#allocation13 + $0x490] sm:$0xff]  ;;  %v3168_v15 = vld [vmem:[#allocation13 + $0x468] sm:$0xff] }
0x1238   :  { %2997 = vmatpush.msra.mxu2 %v2742_v59  ;;  %3056 = vmatpush.msra.mxu1 %v2741_v23  ;;  %v3200_v59 = vld [vmem:[#allocation13 + $0x568] sm:$0xff]  ;;  %v3166_v23 = vld [vmem:[#allocation13 + $0x458] sm:$0xff] }
0x1239   :  { %3081 = vmatpush.msrb.mxu3 %v2781_v50  ;;  %v3171_v50 = vld [vmem:[#allocation13 + $0x480] sm:$0xff] }
0x123a   :  { %2998 = vmatpush.msra.mxu2 %v2740_v26  ;;  %3057 = vmatpush.msra.mxu1 %v2739_v45  ;;  %v3165_v26 = vld [vmem:[#allocation13 + $0x450] sm:$0xff] }
0x123b   :  { %v2600_v38 = vld [vmem:[#allocation1 + $0x2] ss:$9 sm:$0xff]  ;;  %3082 = vmatpush.msrb.mxu3 %v2779_v6 }
0x123c   :  { %2609 = vst [vmem:[#allocation1] sm:$0xff] %v5370_v27  ;;  %3058 = vmatpush.msra.mxu1 %v2737_v34  ;;  %v3169_v6 = vld [vmem:[#allocation13 + $0x470] sm:$0xff]  ;;  %v3164_v34 = vld [vmem:[#allocation13 + $0x448] sm:$0xff] }
0x123d   :  { %2610 = vst [vmem:[#allocation1 + $0x9] sm:$0xff] %v5366_v60  ;;  %3083 = vmatpush.msrb.mxu3 %v2777_v19 }
0x123e   :  { %2607 = vst.msk [vmem:[#allocation5 + $0x55] ss:$8 sm:$0x3] %vm5358_vm5, %v2600_v38  ;;  %v3218_v38 = vld [vmem:[#allocation13 + $0x5f8] sm:$0xff] }
0x123f   :  { %3084 = vmatpush.msrb.mxu3 %v2775_v55  ;;  %v2685_v55 = vld [vmem:[#allocation5 + $0x8] sm:$0x80] }
0x1240   :  { %v2711_v45 = vrot.slane %v2685_v55, 7 }
0x1241   :  { %3085 = vmatpush.msrb.mxu3 %v2773_v22  ;;  %v3198_v22 = vld [vmem:[#allocation13 + $0x558] sm:$0xff] }
0x1243   :  { %3086 = vmatpush.msrb.mxu3 %v2771_v42 }
0x1244   :  { %v2612_v44 = vld [vmem:[#allocation1 + $0x3] ss:$9 sm:$0xff] }
0x1245   :  { %2613 = vst [vmem:[#allocation1] sm:$0xff] %v5375_v25  ;;  %3087 = vmatpush.msrb.mxu3 %v2769_v35  ;;  %v3196_v35 = vld [vmem:[#allocation13 + $0x548] sm:$0xff] }
0x1246   :  { %2614 = vst [vmem:[#allocation1 + $0x9] sm:$0xff] %v5368_v61 }
0x1247   :  { %2619 = vst.msk [vmem:[#allocation5 + $0x17] ss:$8 sm:$0x3] %vm5358_vm5, %v2612_v44  ;;  %v3217_v44 = vld [vmem:[#allocation13 + $0x5f0] sm:$0xff] }
0x124d   :  { %v2615_v62 = vld [vmem:[#allocation1 + $0x3] ss:$9 sm:$0xff] }
0x124e   :  { %v5461_v52 = vld [vmem:[#allocation5 + $0x10] sm:$0xff]  ;;  %v5463_v54 = vld [vmem:[#allocation5 + $0x18] sm:$0xff]  ;;  %2624 = vst [vmem:[#allocation1] sm:$0xff] %v5370_v27 }
0x124f   :  { %2885 = vmatmul.f32.vlgmr.msrb.gmra.mxu2 %v5461_v52  ;;  %2914 = vmatmul.f32.vlgmr.msra.gmra.mxu0 %v5463_v54  ;;  %2625 = vst [vmem:[#allocation1 + $0x9] sm:$0xff] %v5366_v60  ;;  %v2712_v42 = vrot.slane %v5463_v54, 7 }
0x1250   :  { %2943 = vmatmul.f32.vlgmr.msrb.gmra.mxu1 %v5461_v52  ;;  %2972 = vmatmul.f32.vlgmr.msra.gmra.mxu3 %v5463_v54  ;;  %2622 = vst.msk [vmem:[#allocation5 + $0x57] ss:$8 sm:$0x3] %vm5358_vm5, %v2615_v62  ;;  %v3186_v62 = vld [vmem:[#allocation13 + $0x4f8] sm:$0xff]  ;;  %v3161_v54 = vld [vmem:[#allocation13 + $0x430] sm:$0xff] }
0x1251   :  { %3306 = vmatpush.msra.mxu3 %v3218_v38  ;;  %3277 = vmatpush.msrb.mxu1 %v3186_v62  ;;  %v3194_v38 = vld [vmem:[#allocation13 + $0x538] sm:$0xff]  ;;  %v3193_v62 = vld [vmem:[#allocation13 + $0x530] sm:$0xff] }
0x1256   :  { %v2627_v28 = vld [vmem:[#allocation1 + $0x4] ss:$9 sm:$0xff] }
0x1257   :  { %2628 = vst [vmem:[#allocation1] sm:$0xff] %v5375_v25  ;;  %v5511_v51 = vld [vmem:[#allocation5 + $0x50] sm:$0xff]  ;;  %v5513_v24 = vld [vmem:[#allocation5 + $0x58] sm:$0xff] }
0x1258   :  { %2629 = vst [vmem:[#allocation1 + $0x9] sm:$0xff] %v5368_v61 }
0x1259   :  { %2634 = vst.msk [vmem:[#allocation5 + $0x21] ss:$8 sm:$0x3] %vm5358_vm5, %v2627_v28  ;;  %v3183_v28 = vld [vmem:[#allocation13 + $0x4e0] sm:$0xff] }
0x125f   :  { %v2630_v0 = vld [vmem:[#allocation1 + $0x4] ss:$9 sm:$0xff] }
0x1260   :  { %2639 = vst [vmem:[#allocation1] sm:$0xff] %v5370_v27 }
0x1261   :  { %2640 = vst [vmem:[#allocation1 + $0x9] sm:$0xff] %v5366_v60 }
0x1262   :  { %2637 = vst.msk [vmem:[#allocation5 + $0x61] ss:$8 sm:$0x3] %vm5358_vm5, %v2630_v0  ;;  %v3216_v0 = vld [vmem:[#allocation13 + $0x5e8] sm:$0xff] }
0x1263   :  { %3307 = vmatpush.msra.mxu3 %v3216_v0  ;;  %v3159_v0 = vld [vmem:[#allocation13 + $0x420] sm:$0xff] }
0x1268   :  { %v2642_v16 = vld [vmem:[#allocation1 + $0x5] ss:$9 sm:$0xff] }
0x1269   :  { %2643 = vst [vmem:[#allocation1] sm:$0xff] %v5375_v25 }
0x126a   :  { %2644 = vst [vmem:[#allocation1 + $0x9] sm:$0xff] %v5368_v61 }
0x126b   :  { %2649 = vst.msk [vmem:[#allocation5 + $0x23] ss:$8 sm:$0x3] %vm5358_vm5, %v2642_v16  ;;  %v3215_v16 = vld [vmem:[#allocation13 + $0x5e0] sm:$0xff] }
0x1271   :  { %v2645_v47 = vld [vmem:[#allocation1 + $0x5] ss:$9 sm:$0xff] }
0x1272   :  { %2654 = vst [vmem:[#allocation1] sm:$0xff] %v5370_v27 }
0x1273   :  { %2655 = vst [vmem:[#allocation1 + $0x9] sm:$0xff] %v5366_v60 }
0x1274   :  { %2652 = vst.msk [vmem:[#allocation5 + $0x63] ss:$8 sm:$0x3] %vm5358_vm5, %v2645_v47  ;;  %v3184_v47 = vld [vmem:[#allocation13 + $0x4e8] sm:$0xff] }
0x1275   :  { %3278 = vmatpush.msrb.mxu1 %v3184_v47  ;;  %v3191_v47 = vld [vmem:[#allocation13 + $0x520] sm:$0xff] }
0x1277   :  { %3279 = vmatpush.msrb.mxu1 %v3182_v7  ;;  %v3157_v7 = vld [vmem:[#allocation13 + $0x410] sm:$0xff] }
0x1279   :  { %3280 = vmatpush.msrb.mxu1 %v3180_v4 }
0x127a   :  { %v2657_v11 = vld [vmem:[#allocation1 + $0x6] ss:$9 sm:$0xff] }
0x127b   :  { %2658 = vst [vmem:[#allocation1] sm:$0xff] %v5375_v25 }
0x127c   :  { %2659 = vst [vmem:[#allocation1 + $0x9] sm:$0xff] %v5368_v61 }
0x127d   :  { %2664 = vst.msk [vmem:[#allocation5 + $0x25] ss:$8 sm:$0x3] %vm5358_vm5, %v2657_v11  ;;  %v3178_v11 = vld [vmem:[#allocation13 + $0x4b8] sm:$0xff] }
0x127e   :  { %3281 = vmatpush.msrb.mxu1 %v3178_v11  ;;  %v2691_v11 = vld [vmem:[#allocation5 + $0x48] sm:$0x80] }
0x1280   :  { %3282 = vmatpush.msrb.mxu1 %v3176_v63  ;;  %v2722_v63 = vrot.slane %v5513_v24, 7 }
0x1282   :  { %3283 = vmatpush.msrb.mxu1 %v3174_v10 }
0x1283   :  { %v2660_v36 = vld [vmem:[#allocation1 + $0x6] ss:$9 sm:$0xff] }
0x1284   :  { %2669 = vst [vmem:[#allocation1] sm:$0xff] %v5370_v27  ;;  %v2772_v27 = vld [vmem:[#allocation13 + $0x120] sm:$0xff]  ;;  %3284 = vmatpush.msrb.mxu1 %v3172_v3 }
0x1285   :  { %2670 = vst [vmem:[#allocation1 + $0x9] sm:$0xff] %v5366_v60  ;;  %v2738_v60 = vld [vmem:[#allocation13 + $0x10] sm:$0xff]  ;;  %3027 = vmatpush.msrb.mxu0 %v2772_v27 }
0x1286   :  { %2667 = vst.msk [vmem:[#allocation5 + $0x65] ss:$8 sm:$0x3] %vm5358_vm5, %v2660_v36  ;;  %2999 = vmatpush.msra.mxu2 %v2738_v60  ;;  %v2684_v36 = vld [vmem:[#allocation5] sm:$0x80]  ;;  %3285 = vmatpush.msrb.mxu1 %v3170_v57  ;;  %v2709_v60 = vrot.slane %v5461_v52, 7  ;;  %v2713_v52 = vsel %vm2443_vm1, %v2711_v45, %v2712_v42 }
0x1287   :  { %3028 = vmatpush.msrb.mxu0 %v2770_v33  ;;  %v3197_v27 = vld [vmem:[#allocation13 + $0x550] sm:$0xff]  ;;  %v2708_v33 = vrot.slane %v2684_v36, 7 }
0x1288   :  { %3000 = vmatpush.msra.mxu2 %v2736_v29  ;;  %3286 = vmatpush.msrb.mxu1 %v3168_v15  ;;  %v3163_v29 = vld [vmem:[#allocation13 + $0x440] sm:$0xff]  ;;  %v3106_v15 = vld [vmem:[#allocation5 + $0x38] sm:$0x1] }
0x1289   :  { %3029 = vmatpush.msrb.mxu0 %v2768_v32  ;;  %v3195_v32 = vld [vmem:[#allocation13 + $0x540] sm:$0xff] }
0x128a   :  { %3219 = vmatpush.msrb.mxu2 %v3185_v17  ;;  %3287 = vmatpush.msrb.mxu1 %v3166_v23  ;;  %v2688_v17 = vld [vmem:[#allocation5 + $0x20] sm:$0x7f]  ;;  %v3108_v23 = vld [vmem:[#allocation5 + $0x58] sm:$0xfe] }
0x128b   :  { %3248 = vmatpush.msra.mxu0 %v3217_v44  ;;  %v2689_v44 = vld [vmem:[#allocation5 + $0x28] sm:$0x7f]  ;;  %v3139_v45 = vrot.slane %v3108_v23, 1 }
0x128c   :  { %v2672_v56 = vld [vmem:[#allocation1 + $0x7] ss:$9 sm:$0xff]  ;;  %3220 = vmatpush.msrb.mxu2 %v3183_v28  ;;  %3288 = vmatpush.msrb.mxu1 %v3164_v34 }
0x128d   :  { %2679 = vst.msk [vmem:[#allocation5 + $0x27] ss:$8 sm:$0x3] %vm5358_vm5, %v2672_v56  ;;  %3249 = vmatpush.msra.mxu0 %v3215_v16  ;;  %v2710_v56 = vsel %vm2443_vm1, %v2708_v33, %v2709_v60  ;;  %v3162_v28 = vld [vmem:[#allocation13 + $0x438] sm:$0xff]  ;;  %v3192_v16 = vld [vmem:[#allocation13 + $0x528] sm:$0xff] }
0x128e   :  { %2673 = vst [vmem:[#allocation1] sm:$0xff] %v5375_v25  ;;  %v3214_v25 = vld [vmem:[#allocation13 + $0x5d8] sm:$0xff]  ;;  %3221 = vmatpush.msrb.mxu2 %v3181_v1  ;;  %v3160_v1 = vld [vmem:[#allocation13 + $0x428] sm:$0xff]  ;;  %3289 = vmatpush.msrb.mxu1 %v3162_v28 }
0x128f   :  { %2674 = vst [vmem:[#allocation1 + $0x9] sm:$0xff] %v5368_v61  ;;  %3308 = vmatpush.msra.mxu3 %v3214_v25  ;;  %v3179_v61 = vld [vmem:[#allocation13 + $0x4c0] sm:$0xff]  ;;  %3250 = vmatpush.msra.mxu0 %v3213_v21  ;;  %v2714_v25 = vrot.slane %v2688_v17, 7  ;;  %v2716_v21 = vrot.slane %v2689_v44, 7  ;;  %v3112_v34 = vld [vmem:[#allocation5 + $0x78] sm:$0x1] }
0x1290   :  { %3222 = vmatpush.msrb.mxu2 %v3179_v61  ;;  %v3190_v61 = vld [vmem:[#allocation13 + $0x518] sm:$0xff]  ;;  %3290 = vmatpush.msrb.mxu1 %v3160_v1 }
0x1291   :  { %3309 = vmatpush.msra.mxu3 %v3212_v46  ;;  %3251 = vmatpush.msra.mxu0 %v3211_v13  ;;  %v3189_v46 = vld [vmem:[#allocation13 + $0x510] sm:$0xff]  ;;  %v3158_v13 = vld [vmem:[#allocation13 + $0x418] sm:$0xff]  ;;  %v2715_v4 = vsel %vm2443_vm1, %v2709_v60, %v2714_v25 }
0x1292   :  { %3223 = vmatpush.msrb.mxu2 %v3177_v40  ;;  %v2690_v40 = vld [vmem:[#allocation5 + $0x40] sm:$0x80]  ;;  %3291 = vmatpush.msrb.mxu1 %v3158_v13 }
0x1293   :  { %3310 = vmatpush.msra.mxu3 %v3210_v43  ;;  %3252 = vmatpush.msra.mxu0 %v3209_v41  ;;  %v3155_v43 = vld [vmem:[#allocation13 + $0x400] sm:$0xff]  ;;  %v3188_v41 = vld [vmem:[#allocation13 + $0x508] sm:$0xff] }
0x1294   :  { %v5501_v5 = vld [vmem:[#allocation5 + $0x20] sm:$0xff]  ;;  %v5503_v9 = vld [vmem:[#allocation5 + $0x28] sm:$0xff]  ;;  %3224 = vmatpush.msrb.mxu2 %v3175_v53  ;;  %v3187_v53 = vld [vmem:[#allocation13 + $0x500] sm:$0xff] }
0x1295   :  { %2888 = vmatmul.f32.gmra.mxu2 %v5501_v5  ;;  %2917 = vmatmul.f32.gmra.mxu0 %v5503_v9  ;;  %v3130_v57 = vrot.slane %v5503_v9, 1 }
0x1296   :  { %2946 = vmatmul.f32.gmra.mxu1 %v5501_v5  ;;  %2975 = vmatmul.f32.gmra.mxu3 %v5503_v9  ;;  %v2675_v39 = vld [vmem:[#allocation1 + $0x7] ss:$9 sm:$0xff] }
0x1297   :  { %2682 = vst.msk [vmem:[#allocation5 + $0x67] ss:$8 sm:$0x3] %vm5358_vm5, %v2675_v39  ;;  %3311 = vmatpush.msra.mxu3 %v3208_v2  ;;  %3253 = vmatpush.msra.mxu0 %v3207_v48  ;;  %v2717_v39 = vsel %vm2443_vm1, %v2712_v42, %v2716_v21  ;;  %v3156_v2 = vld [vmem:[#allocation13 + $0x408] sm:$0xff]  ;;  %v2719_v48 = vrot.slane %v5511_v51, 7 }
0x1298   :  { %3225 = vmatpush.msrb.mxu2 %v3173_v37  ;;  %v2718_v37 = vrot.slane %v2690_v40, 7  ;;  %3292 = vmatpush.msrb.mxu1 %v3156_v2  ;;  %v3107_v9 = vld [vmem:[#allocation5 + $0x50] sm:$0xfe] }
0x1299   :  { %3312 = vmatpush.msra.mxu3 %v3206_v18  ;;  %3254 = vmatpush.msra.mxu0 %v3205_v58  ;;  %v2721_v18 = vrot.slane %v2691_v11, 7  ;;  %v3136_v33 = vrot.slane %v3107_v9, 1 }
0x129a   :  { %3226 = vmatpush.msrb.mxu2 %v3171_v50  ;;  %v2720_v58 = vsel %vm2443_vm1, %v2718_v37, %v2719_v48  ;;  %v2694_v50 = vld [vmem:[#allocation5 + $0x60] sm:$0x7f] }
0x129b   :  { %3313 = vmatpush.msra.mxu3 %v3204_v49  ;;  %3255 = vmatpush.msra.mxu0 %v3203_v12  ;;  %v2723_v10 = vsel %vm2443_vm1, %v2721_v18, %v2722_v63  ;;  %v2695_v49 = vld [vmem:[#allocation5 + $0x68] sm:$0x7f]  ;;  %v2724_v12 = vrot.slane %v2694_v50, 7 }
0x129c   :  { %3227 = vmatpush.msrb.mxu2 %v3169_v6  ;;  %v2726_v3 = vrot.slane %v2695_v49, 7  ;;  %v3101_v6 = vld [vmem:[#allocation5 + $0x10] sm:$0xfe] }
0x129d   :  { %2891 = vmatmul.f32.gmra.mxu2 %v5511_v51  ;;  %2920 = vmatmul.f32.gmra.mxu0 %v5513_v24  ;;  %v3126_v36 = vrot.slane %v3101_v6, 1 }
0x129e   :  { %2949 = vmatmul.f32.gmra.mxu1 %v5511_v51  ;;  %2978 = vmatmul.f32.gmra.mxu3 %v5513_v24  ;;  %v5519_v19 = vld [vmem:[#allocation5 + $0x60] sm:$0xff]  ;;  %v5521_v31 = vld [vmem:[#allocation5 + $0x68] sm:$0xff]  ;;  %v2725_v51 = vsel %vm2443_vm1, %v2719_v48, %v2724_v12  ;;  %v2727_v24 = vsel %vm2443_vm1, %v2722_v63, %v2726_v3 }
0x129f   :  { %3314 = vmatpush.msra.mxu3 %v3202_v8  ;;  %3256 = vmatpush.msra.mxu0 %v3201_v20  ;;  %v3102_v8 = vld [vmem:[#allocation5 + $0x18] sm:$0xfe]  ;;  %v3127_v20 = vrot.slane %v5501_v5, 1  ;;  %v3137_v60 = vrot.slane %v5519_v19, 1  ;;  %v3140_v42 = vrot.slane %v5521_v31, 1 }
0x12a0   :  { %3228 = vmatpush.msrb.mxu2 %v3167_v30  ;;  %v3129_v30 = vrot.slane %v3102_v8, 1 }
0x12a1   :  { %3315 = vmatpush.msra.mxu3 %v3200_v59  ;;  %3257 = vmatpush.msra.mxu0 %v3199_v14  ;;  %v3128_v59 = vsel %vm3125_vm6, %v3126_v36, %v3127_v20  ;;  %v3105_v14 = vld [vmem:[#allocation5 + $0x30] sm:$0x1] }
0x12a2   :  { %3229 = vmatpush.msrb.mxu2 %v3165_v26  ;;  %v3131_v55 = vsel %vm3125_vm6, %v3129_v30, %v3130_v57  ;;  %v3132_v26 = vrot.slane %v3105_v14, 1  ;;  %v3343_v36 = vld [vmem:[#allocation14] sm:$0x3] }
0x12a3   :  { %3316 = vmatpush.msra.mxu3 %v3198_v22  ;;  %3258 = vmatpush.msra.mxu0 %v3197_v27  ;;  %v3134_v22 = vrot.slane %v3106_v15, 1 }
0x12a4   :  { %3230 = vmatpush.msrb.mxu2 %v3163_v29  ;;  %v3133_v27 = vsel %vm3125_vm6, %v3127_v20, %v3132_v26  ;;  %v3138_v29 = vsel %vm3125_vm6, %v3136_v33, %v3137_v60  ;;  %v5577_v26 = vperm.slane %v3343_v36, 0 }
0x12a5   :  { %2894 = vmatmul.f32.gmra.mxu2 %v5519_v19  ;;  %2923 = vmatmul.f32.gmra.mxu0 %v5521_v31  ;;  %v3135_v5 = vsel %vm3125_vm6, %v3130_v57, %v3134_v22 }
0x12a6   :  { %2952 = vmatmul.f32.gmra.mxu1 %v5519_v19  ;;  %2981 = vmatmul.f32.gmra.mxu3 %v5521_v31 }
0x12a7   :  { %3317 = vmatpush.msra.mxu3 %v3196_v35  ;;  %3259 = vmatpush.msra.mxu0 %v3195_v32  ;;  %v3141_v35 = vsel %vm3125_vm6, %v3139_v45, %v3140_v42  ;;  %v3111_v32 = vld [vmem:[#allocation5 + $0x70] sm:$0x1]  ;;  %v5584_v45 = vperm.slane %v3343_v36, 1 }
0x12a8   :  { %3231 = vmatpush.msrb.mxu2 %v3161_v54 }
0x12a9   :  { %3318 = vmatpush.msra.mxu3 %v3194_v38  ;;  %3260 = vmatpush.msra.mxu0 %v3193_v62 }
0x12aa   :  { %3232 = vmatpush.msrb.mxu2 %v3159_v0 }
0x12ab   :  { %3319 = vmatpush.msra.mxu3 %v3192_v16  ;;  %3261 = vmatpush.msra.mxu0 %v3191_v47 }
0x12ac   :  { %3233 = vmatpush.msrb.mxu2 %v3157_v7 }
0x12ad   :  { %3001 = vmatmul.f32.vlgmr.msra.gmra.mxu2 %v2710_v56  ;;  %3030 = vmatmul.f32.vlgmr.msrb.gmra.mxu0 %v2713_v52 }
0x12ae   :  { %3059 = vmatmul.f32.vlgmr.msra.gmra.mxu1 %v2710_v56  ;;  %3088 = vmatmul.f32.vlgmr.msrb.gmra.mxu3 %v2713_v52  ;;  %v3142_v56 = vrot.slane %v3111_v32, 1  ;;  %v3144_v52 = vrot.slane %v3112_v34, 1 }
0x12af   :  { %3320 = vmatpush.msra.mxu3 %v3190_v61  ;;  %3262 = vmatpush.msra.mxu0 %v3189_v46 }
0x12b0   :  { %3234 = vmatpush.msrb.mxu2 %v3155_v43  ;;  %v3143_v17 = vsel %vm3125_vm6, %v3137_v60, %v3142_v56  ;;  %v3145_v19 = vsel %vm3125_vm6, %v3140_v42, %v3144_v52 }
0x12b1   :  { %3321 = vmatpush.msra.mxu3 %v3188_v41  ;;  %3263 = vmatpush.msra.mxu0 %v3187_v53 }
0x12b5   :  { %3004 = vmatmul.f32.gmra.mxu2 %v2715_v4  ;;  %3033 = vmatmul.f32.gmra.mxu0 %v2717_v39 }
0x12b6   :  { %3062 = vmatmul.f32.gmra.mxu1 %v2715_v4  ;;  %3091 = vmatmul.f32.gmra.mxu3 %v2717_v39 }
0x12bd   :  { %3007 = vmatmul.f32.gmra.mxu2 %v2720_v58  ;;  %3036 = vmatmul.f32.gmra.mxu0 %v2723_v10 }
0x12be   :  { %3065 = vmatmul.f32.gmra.mxu1 %v2720_v58  ;;  %3094 = vmatmul.f32.gmra.mxu3 %v2723_v10 }
0x12c5   :  { %3010 = vmatmul.f32.gmra.mxu2 %v2725_v51  ;;  %3039 = vmatmul.f32.gmra.mxu0 %v2727_v24 }
0x12c6   :  { %3068 = vmatmul.f32.gmra.mxu1 %v2725_v51  ;;  %3097 = vmatmul.f32.gmra.mxu3 %v2727_v24 }
0x12cc   :  { %v2915_v31 = vpop.f32.mrf.mxu0 }
0x12cd   :  { %3235 = vmatmul.f32.vlgmr.msrb.gmra.mxu2 %v3128_v59  ;;  %3264 = vmatmul.f32.vlgmr.msra.gmra.mxu0 %v3131_v55  ;;  %v2944_v54 = vpop.f32.mrf.mxu1 }
0x12ce   :  { %3293 = vmatmul.f32.vlgmr.msrb.gmra.mxu1 %v3128_v59  ;;  %3322 = vmatmul.f32.vlgmr.msra.gmra.mxu3 %v3131_v55 }
0x12d2   :  { %v2886_v38 = vpop.f32.mrf.mxu2 }
0x12d3   :  { %v2973_v44 = vpop.f32.mrf.mxu3  ;;  %v2916_v20 = vadd.f32 %v2915_v31, %v2886_v38 }
0x12d4   :  { %v2974_v55 = vadd.f32 %v2973_v44, %v2944_v54 }
0x12d5   :  { %3238 = vmatmul.f32.gmra.mxu2 %v3133_v27  ;;  %3267 = vmatmul.f32.gmra.mxu0 %v3135_v5 }
0x12d6   :  { %3296 = vmatmul.f32.gmra.mxu1 %v3133_v27  ;;  %3325 = vmatmul.f32.gmra.mxu3 %v3135_v5 }
0x12dd   :  { %3241 = vmatmul.f32.gmra.mxu2 %v3138_v29  ;;  %3270 = vmatmul.f32.gmra.mxu0 %v3141_v35 }
0x12de   :  { %3299 = vmatmul.f32.gmra.mxu1 %v3138_v29  ;;  %3328 = vmatmul.f32.gmra.mxu3 %v3141_v35 }
0x12e5   :  { %3244 = vmatmul.f32.gmra.mxu2 %v3143_v17  ;;  %3273 = vmatmul.f32.gmra.mxu0 %v3145_v19 }
0x12e6   :  { %3302 = vmatmul.f32.gmra.mxu1 %v3143_v17  ;;  %3331 = vmatmul.f32.gmra.mxu3 %v3145_v19 }
0x1312   :  { %v2918_v62 = vpop.f32.mrf.mxu0 }
0x1313   :  { %v2947_v28 = vpop.f32.mrf.mxu1 }
0x1318   :  { %v2889_v0 = vpop.f32.mrf.mxu2 }
0x1319   :  { %v2919_v16 = vadd.f32 %v2918_v62, %v2889_v0  ;;  %v2976_v47 = vpop.f32.mrf.mxu3 }
0x131a   :  { %v5551_v1 = vadd.f32 %v2976_v47, %v2947_v28  ;;  %v2921_v25 = vpop.f32.mrf.mxu0 }
0x131b   :  { %v2950_v21 = vpop.f32.mrf.mxu1 }
0x1320   :  { %v2892_v7 = vpop.f32.mrf.mxu2 }
0x1321   :  { %v5553_v61 = vadd.f32 %v2921_v25, %v2892_v7  ;;  %v2979_v46 = vpop.f32.mrf.mxu3 }
0x1322   :  { %v5555_v13 = vadd.f32 %v2979_v46, %v2950_v21  ;;  %v2924_v4 = vpop.f32.mrf.mxu0 }
0x1323   :  { %v2953_v39 = vpop.f32.mrf.mxu1 }
0x1328   :  { %v2895_v40 = vpop.f32.mrf.mxu2 }
0x1329   :  { %v5557_v43 = vadd.f32 %v2924_v4, %v2895_v40  ;;  %v2982_v41 = vpop.f32.mrf.mxu3 }
0x132a   :  { %v5559_v11 = vadd.f32 %v2982_v41, %v2953_v39  ;;  %v3031_v53 = vpop.f32.mrf.mxu0 }
0x132b   :  { %v3060_v2 = vpop.f32.mrf.mxu1 }
0x132c   :  { %v3061_v5 = vadd.f32 %v3060_v2, %v2974_v55 }
0x1330   :  { %v3002_v48 = vpop.f32.mrf.mxu2 }
0x1331   :  { %v3089_v63 = vpop.f32.mrf.mxu3  ;;  %v3003_v57 = vadd.f32 %v3002_v48, %v2916_v20 }
0x1332   :  { %v3034_v37 = vpop.f32.mrf.mxu0  ;;  %v3090_v60 = vadd.f32 %v3089_v63, %v3061_v5 }
0x1333   :  { %v3063_v18 = vpop.f32.mrf.mxu1  ;;  %v3032_v14 = vadd.f32 %v3031_v53, %v3003_v57 }
0x1334   :  { %v3064_v54 = vadd.f32 %v3063_v18, %v5551_v1 }
0x1338   :  { %v3005_v58 = vpop.f32.mrf.mxu2 }
0x1339   :  { %v3092_v10 = vpop.f32.mrf.mxu3  ;;  %v3006_v35 = vadd.f32 %v3005_v58, %v2919_v16 }
0x133a   :  { %v5561_v50 = vpop.f32.mrf.mxu0  ;;  %v3093_v62 = vadd.f32 %v3092_v10, %v3064_v54 }
0x133b   :  { %v5563_v49 = vpop.f32.mrf.mxu1  ;;  %v3035_v52 = vadd.f32 %v3034_v37, %v3006_v35 }
0x133c   :  { %v3067_v4 = vadd.f32 %v5563_v49, %v5555_v13 }
0x1340   :  { %v5565_v12 = vpop.f32.mrf.mxu2 }
0x1341   :  { %v5567_v3 = vpop.f32.mrf.mxu3  ;;  %v3009_v16 = vadd.f32 %v5565_v12, %v5553_v61 }
0x1342   :  { %v5569_v51 = vpop.f32.mrf.mxu0  ;;  %v3096_v41 = vadd.f32 %v5567_v3, %v3067_v4 }
0x1343   :  { %v5571_v24 = vpop.f32.mrf.mxu1  ;;  %v3038_v21 = vadd.f32 %v5561_v50, %v3009_v16 }
0x1344   :  { %v3070_v50 = vadd.f32 %v5571_v24, %v5559_v11 }
0x1348   :  { %v5573_v6 = vpop.f32.mrf.mxu2 }
0x1349   :  { %v5575_v8 = vpop.f32.mrf.mxu3  ;;  %v3012_v2 = vadd.f32 %v5573_v6, %v5557_v43 }
0x134a   :  { %v3265_v30 = vpop.f32.mrf.mxu0  ;;  %v3099_v3 = vadd.f32 %v5575_v8, %v3070_v50 }
0x134b   :  { %v3294_v27 = vpop.f32.mrf.mxu1  ;;  %v3041_v43 = vadd.f32 %v5569_v51, %v3012_v2 }
0x1350   :  { %v3236_v59 = vpop.f32.mrf.mxu2 }
0x1351   :  { %v3266_v15 = vadd.f32 %v3265_v30, %v3236_v59  ;;  %v3323_v22 = vpop.f32.mrf.mxu3 }
0x1352   :  { %v3324_v23 = vadd.f32 %v3323_v22, %v3294_v27  ;;  %v3268_v32 = vpop.f32.mrf.mxu0 }
0x1353   :  { %v3335_v9 = vadd.f32 %v3266_v15, %v3032_v14  ;;  %v3297_v31 = vpop.f32.mrf.mxu1 }
0x1354   :  { %v3336_v33 = vadd.f32 %v3324_v23, %v3090_v60 }
0x1355   :  { %v3349_v42 = vadd.f32 %v5577_v26, %v3335_v9 }
0x1356   :  { %v3350_v34 = vadd.f32 %v5584_v45, %v3336_v33 }
0x1357   :  { %3358 = vst.msk [vmem:[%s5873_s15] sm:$0x1] %vm3357_vm7, %v3349_v42 }
0x1358   :  { %3361 = vst.msk [vmem:[%s5873_s15 + $0x1] sm:$0x2] %vm3360_vm8, %v3349_v42  ;;  %v3239_v29 = vpop.f32.mrf.mxu2 }
0x1359   :  { %3364 = vst.msk [vmem:[%s5873_s15 + $0x2] sm:$0x4] %vm3363_vm9, %v3349_v42  ;;  %v3269_v56 = vadd.f32 %v3268_v32, %v3239_v29  ;;  %v3326_v19 = vpop.f32.mrf.mxu3 }
0x135a   :  { %3367 = vst.msk [vmem:[%s5873_s15 + $0x3] sm:$0x8] %vm3366_vm10, %v3349_v42  ;;  %v3327_v44 = vadd.f32 %v3326_v19, %v3297_v31  ;;  %v3271_v47 = vpop.f32.mrf.mxu0 }
0x135b   :  { %3370 = vst.msk [vmem:[%s5873_s15 + $0x4] sm:$0x10] %vm3369_vm11, %v3349_v42  ;;  %v3337_v17 = vadd.f32 %v3269_v56, %v3035_v52  ;;  %v3300_v46 = vpop.f32.mrf.mxu1 }
0x135c   :  { %3373 = vst.msk [vmem:[%s5873_s15 + $0x5] sm:$0x20] %vm3372_vm12, %v3349_v42  ;;  %v3338_v28 = vadd.f32 %v3327_v44, %v3093_v62 }
0x135d   :  { %3376 = vst.msk [vmem:[%s5873_s15 + $0x6] sm:$0x40] %vm3375_vm13, %v3349_v42  ;;  %v3351_v38 = vadd.f32 %v5577_v26, %v3337_v17 }
0x135e   :  { %3379 = vst.msk [vmem:[%s5873_s15 + $0x7] sm:$0x80] %vm3378_vm14, %v3349_v42  ;;  %v3352_v1 = vadd.f32 %v5584_v45, %v3338_v28 }
0x135f   :  { %3397 = vst.msk [vmem:[%s5873_s15 + $0x1] sm:$0x1] %vm3357_vm7, %v3350_v34 }
0x1360   :  { %3399 = vst.msk [vmem:[%s5873_s15 + $0x2] sm:$0x2] %vm3360_vm8, %v3350_v34  ;;  %v3242_v0 = vpop.f32.mrf.mxu2 }
0x1361   :  { %3401 = vst.msk [vmem:[%s5873_s15 + $0x3] sm:$0x4] %vm3363_vm9, %v3350_v34  ;;  %v3272_v25 = vadd.f32 %v3271_v47, %v3242_v0  ;;  %v3329_v61 = vpop.f32.mrf.mxu3 }
0x1362   :  { %3403 = vst.msk [vmem:[%s5873_s15 + $0x4] sm:$0x8] %vm3366_vm10, %v3350_v34  ;;  %v3330_v40 = vadd.f32 %v3329_v61, %v3300_v46  ;;  %v3274_v48 = vpop.f32.mrf.mxu0 }
0x1363   :  { %3405 = vst.msk [vmem:[%s5873_s15 + $0x5] sm:$0x10] %vm3369_vm11, %v3350_v34  ;;  %v3339_v7 = vadd.f32 %v3272_v25, %v3038_v21  ;;  %v3303_v10 = vpop.f32.mrf.mxu1 }
0x1364   :  { %3407 = vst.msk [vmem:[%s5873_s15 + $0x6] sm:$0x20] %vm3372_vm12, %v3350_v34  ;;  %v3340_v13 = vadd.f32 %v3330_v40, %v3096_v41 }
0x1365   :  { %3409 = vst.msk [vmem:[%s5873_s15 + $0x7] sm:$0x40] %vm3375_vm13, %v3350_v34  ;;  %v3353_v39 = vadd.f32 %v5577_v26, %v3339_v7 }
0x1366   :  { %3411 = vst.msk [vmem:[%s5873_s15 + $0x8] sm:$0x80] %vm3378_vm14, %v3350_v34  ;;  %v3354_v63 = vadd.f32 %v5584_v45, %v3340_v13 }
0x1367   :  { %3381 = vst.msk [vmem:[%s5873_s15 + $0x10] sm:$0x1] %vm3357_vm7, %v3351_v38 }
0x1368   :  { %3383 = vst.msk [vmem:[%s5873_s15 + $0x11] sm:$0x2] %vm3360_vm8, %v3351_v38  ;;  %v3245_v53 = vpop.f32.mrf.mxu2 }
0x1369   :  { %3385 = vst.msk [vmem:[%s5873_s15 + $0x12] sm:$0x4] %vm3363_vm9, %v3351_v38  ;;  %v3275_v37 = vadd.f32 %v3274_v48, %v3245_v53  ;;  %v3332_v58 = vpop.f32.mrf.mxu3 }
0x136a   :  { %3387 = vst.msk [vmem:[%s5873_s15 + $0x13] sm:$0x8] %vm3366_vm10, %v3351_v38  ;;  %v3333_v12 = vadd.f32 %v3332_v58, %v3303_v10 }
0x136b   :  { %3389 = vst.msk [vmem:[%s5873_s15 + $0x14] sm:$0x10] %vm3369_vm11, %v3351_v38  ;;  %v3341_v18 = vadd.f32 %v3275_v37, %v3041_v43 }
0x136c   :  { %3391 = vst.msk [vmem:[%s5873_s15 + $0x15] sm:$0x20] %vm3372_vm12, %v3351_v38  ;;  %v3342_v11 = vadd.f32 %v3333_v12, %v3099_v3 }
0x136d   :  { %3393 = vst.msk [vmem:[%s5873_s15 + $0x16] sm:$0x40] %vm3375_vm13, %v3351_v38  ;;  %v3355_v49 = vadd.f32 %v5577_v26, %v3341_v18 }
0x136e   :  { %3395 = vst.msk [vmem:[%s5873_s15 + $0x17] sm:$0x80] %vm3378_vm14, %v3351_v38  ;;  %v3356_v51 = vadd.f32 %v5584_v45, %v3342_v11 }
0x136f   :  { %3413 = vst.msk [vmem:[%s5873_s15 + $0x11] sm:$0x1] %vm3357_vm7, %v3352_v1 }
0x1370   :  { %3415 = vst.msk [vmem:[%s5873_s15 + $0x12] sm:$0x2] %vm3360_vm8, %v3352_v1 }
0x1371   :  { %3417 = vst.msk [vmem:[%s5873_s15 + $0x13] sm:$0x4] %vm3363_vm9, %v3352_v1 }
0x1372   :  { %3419 = vst.msk [vmem:[%s5873_s15 + $0x14] sm:$0x8] %vm3366_vm10, %v3352_v1 }
0x1373   :  { %3421 = vst.msk [vmem:[%s5873_s15 + $0x15] sm:$0x10] %vm3369_vm11, %v3352_v1 }
0x1374   :  { %3423 = vst.msk [vmem:[%s5873_s15 + $0x16] sm:$0x20] %vm3372_vm12, %v3352_v1 }
0x1375   :  { %3425 = vst.msk [vmem:[%s5873_s15 + $0x17] sm:$0x40] %vm3375_vm13, %v3352_v1 }
0x1376   :  { %3427 = vst.msk [vmem:[%s5873_s15 + $0x18] sm:$0x80] %vm3378_vm14, %v3352_v1 }
0x1377   :  { %3359 = vst.msk [vmem:[%s5873_s15 + $0x20] sm:$0x1] %vm3357_vm7, %v3353_v39 }
0x1378   :  { %3362 = vst.msk [vmem:[%s5873_s15 + $0x21] sm:$0x2] %vm3360_vm8, %v3353_v39 }
0x1379   :  { %3365 = vst.msk [vmem:[%s5873_s15 + $0x22] sm:$0x4] %vm3363_vm9, %v3353_v39 }
0x137a   :  { %3368 = vst.msk [vmem:[%s5873_s15 + $0x23] sm:$0x8] %vm3366_vm10, %v3353_v39 }
0x137b   :  { %3371 = vst.msk [vmem:[%s5873_s15 + $0x24] sm:$0x10] %vm3369_vm11, %v3353_v39 }
0x137c   :  { %3374 = vst.msk [vmem:[%s5873_s15 + $0x25] sm:$0x20] %vm3372_vm12, %v3353_v39 }
0x137d   :  { %3377 = vst.msk [vmem:[%s5873_s15 + $0x26] sm:$0x40] %vm3375_vm13, %v3353_v39 }
0x137e   :  { %3380 = vst.msk [vmem:[%s5873_s15 + $0x27] sm:$0x80] %vm3378_vm14, %v3353_v39 }
0x137f   :  { %3398 = vst.msk [vmem:[%s5873_s15 + $0x21] sm:$0x1] %vm3357_vm7, %v3354_v63 }
0x1380   :  { %3400 = vst.msk [vmem:[%s5873_s15 + $0x22] sm:$0x2] %vm3360_vm8, %v3354_v63 }
0x1381   :  { %3402 = vst.msk [vmem:[%s5873_s15 + $0x23] sm:$0x4] %vm3363_vm9, %v3354_v63 }
0x1382   :  { %3404 = vst.msk [vmem:[%s5873_s15 + $0x24] sm:$0x8] %vm3366_vm10, %v3354_v63 }
0x1383   :  { %3406 = vst.msk [vmem:[%s5873_s15 + $0x25] sm:$0x10] %vm3369_vm11, %v3354_v63 }
0x1384   :  { %3408 = vst.msk [vmem:[%s5873_s15 + $0x26] sm:$0x20] %vm3372_vm12, %v3354_v63 }
0x1385   :  { %3410 = vst.msk [vmem:[%s5873_s15 + $0x27] sm:$0x40] %vm3375_vm13, %v3354_v63 }
0x1386   :  { %3412 = vst.msk [vmem:[%s5873_s15 + $0x28] sm:$0x80] %vm3378_vm14, %v3354_v63 }
0x1387   :  { %3382 = vst.msk [vmem:[%s5873_s15 + $0x30] sm:$0x1] %vm3357_vm7, %v3355_v49 }
0x1388   :  { %3384 = vst.msk [vmem:[%s5873_s15 + $0x31] sm:$0x2] %vm3360_vm8, %v3355_v49 }
0x1389   :  { %3386 = vst.msk [vmem:[%s5873_s15 + $0x32] sm:$0x4] %vm3363_vm9, %v3355_v49 }
0x138a   :  { %3388 = vst.msk [vmem:[%s5873_s15 + $0x33] sm:$0x8] %vm3366_vm10, %v3355_v49 }
0x138b   :  { %3390 = vst.msk [vmem:[%s5873_s15 + $0x34] sm:$0x10] %vm3369_vm11, %v3355_v49 }
0x138c   :  { %3392 = vst.msk [vmem:[%s5873_s15 + $0x35] sm:$0x20] %vm3372_vm12, %v3355_v49 }
0x138d   :  { %3394 = vst.msk [vmem:[%s5873_s15 + $0x36] sm:$0x40] %vm3375_vm13, %v3355_v49 }
0x138e   :  { %3396 = vst.msk [vmem:[%s5873_s15 + $0x37] sm:$0x80] %vm3378_vm14, %v3355_v49 }
0x138f   :  { %3414 = vst.msk [vmem:[%s5873_s15 + $0x31] sm:$0x1] %vm3357_vm7, %v3356_v51 }
0x1390   :  { %3416 = vst.msk [vmem:[%s5873_s15 + $0x32] sm:$0x2] %vm3360_vm8, %v3356_v51 }
0x1391   :  { %3418 = vst.msk [vmem:[%s5873_s15 + $0x33] sm:$0x4] %vm3363_vm9, %v3356_v51 }
0x1392   :  { %3420 = vst.msk [vmem:[%s5873_s15 + $0x34] sm:$0x8] %vm3366_vm10, %v3356_v51 }
0x1393   :  { %3422 = vst.msk [vmem:[%s5873_s15 + $0x35] sm:$0x10] %vm3369_vm11, %v3356_v51 }
0x1394   :  { %3424 = vst.msk [vmem:[%s5873_s15 + $0x36] sm:$0x20] %vm3372_vm12, %v3356_v51 }
0x1395   :  { %3426 = vst.msk [vmem:[%s5873_s15 + $0x37] sm:$0x40] %vm3375_vm13, %v3356_v51 }
0x1396   :  { %3428 = vst.msk [vmem:[%s5873_s15 + $0x38] sm:$0x80] %vm3378_vm14, %v3356_v51 }
0x1397   :  { %3433 = vsyncpa [#allocation7], 1 }
0x1398   :  { %3434 = vsyncpa [#allocation9], 1 }
0x1399   :  { %3435 = vsyncpa [#allocation12], 1 }
0x139a   :  { %3436 = vsyncpa [#allocation15], 1 }

</bundles_post_ra>
